<compile_context>
chip_gen: v7x
topology: tpu7x:2x2x1
jax: 0.10.0
libtpu: 0.0.40
codegen_flags: <defaults>
</compile_context>

<pallas_src>
import functools

import jax
import jax.numpy as jnp
from jax.experimental import pallas as pl
from jax.experimental.pallas import tpu as pltpu


# ----------------------------------------------------------------------------
# Kernel: one full encoder layer for a single batch element (grid axis 0 = batch)
# ----------------------------------------------------------------------------
def encoder_layer_kernel(
    x_ref,
    wqkv_ref, bqkv_ref,          # (D, 3*H*dh) bf16, (1, 3*H*dh) f32
    wo_ref, bo_ref,              # (H*dh, D) bf16, (1, D) f32
    w1_ref, b1_ref,              # (D, Dff) bf16, (1, Dff) f32
    w2_ref, b2_ref,              # (Dff, D) bf16, (1, D) f32
    g1_ref, be1_ref, g2_ref, be2_ref,   # LayerNorm 1/2 gamma & beta, (1, D) f32
    gf_ref, bef_ref,             # optional final LayerNorm gamma & beta, (1, D) f32
    xout_ref, q_out_ref, k_out_ref,
    *, n_heads, d_head, fuse_final_norm, eps=1e-5,
):
    x = x_ref[...]                               # (L, D) f32, batch squeezed by BlockSpec
    L, D = x.shape
    H, dh = n_heads, d_head
    HD = H * dh
    scale = 1.0 / (float(dh) ** 0.5)

    xb = x.astype(jnp.bfloat16)

    # --- fused QKV projection: one (L, D) @ (D, 3*H*dh) MXU matmul ------------
    qkv = jnp.dot(xb, wqkv_ref[...], preferred_element_type=jnp.float32)
    qkv = qkv + bqkv_ref[...]                    # (L, 3*HD) f32

    q = qkv[:, 0 * HD:1 * HD]                    # (L, HD), lane-aligned static slices
    k = qkv[:, 1 * HD:2 * HD]
    v = qkv[:, 2 * HD:3 * HD]

    # Layer outputs q/k: lane-dense (L, H*dh) bf16 (free reshape to (L,H,dh) outside).
    q_out_ref[...] = q.astype(jnp.bfloat16)
    k_out_ref[...] = k.astype(jnp.bfloat16)

    # Fold 1/sqrt(dh) into q (O(L*dh)) instead of scaling the (L, L) scores.
    qs = (q * scale).astype(jnp.bfloat16)
    kb = k.astype(jnp.bfloat16)
    vb = v.astype(jnp.bfloat16)

    # --- multi-head scaled-dot-product attention (static per-head unroll) -----
    # TODO(synk): the repo's sub-adjacent attention additionally applies a
    # sub-adjacent window mask to the scores; plain softmax attention here.
    # TODO(synk): replace the materialized (L, L) scores with a flash-style
    # query-tile loop for long sequences (see header note).
    o_heads = []
    for h in range(H):                           # static, tiny unroll
        sl = slice(h * dh, (h + 1) * dh)
        q_h, k_h, v_h = qs[:, sl], kb[:, sl], vb[:, sl]
        # Contract over dh without an explicit K transpose.
        s_h = jax.lax.dot_general(
            q_h, k_h, (((1,), (1,)), ((), ())),
            preferred_element_type=jnp.float32)              # (L, L) f32
        m_h = jnp.max(s_h, axis=-1, keepdims=True)
        p_h = jnp.exp(s_h - m_h)
        denom = jnp.sum(p_h, axis=-1, keepdims=True)         # (L, 1)
        o_h = jnp.dot(p_h.astype(jnp.bfloat16), v_h,
                      preferred_element_type=jnp.float32)    # (L, dh) f32
        # Deferred softmax normalization: O(L*dh) instead of O(L^2).
        o_heads.append(o_h * pl.reciprocal(denom, approx=True))

    o_flat = jnp.concatenate(o_heads, axis=-1).astype(jnp.bfloat16)   # (L, H*dh)

    # --- out-projection: single matmul, K = H*dh fills the 256-deep MXU -------
    new_x = jnp.dot(o_flat, wo_ref[...],
                    preferred_element_type=jnp.float32) + bo_ref[...]  # (L, D) f32

    # --- residual + LayerNorm 1 (f32) ------------------------------------------
    x1 = x + new_x
    mu = jnp.mean(x1, axis=-1, keepdims=True)
    var = jnp.mean(jnp.square(x1 - mu), axis=-1, keepdims=True)
    x1n = (x1 - mu) * jax.lax.rsqrt(var + eps) * g1_ref[...] + be1_ref[...]

    # --- feed-forward (1x1 convs == per-token linears), relu --------------------
    y = jnp.dot(x1n.astype(jnp.bfloat16), w1_ref[...],
                preferred_element_type=jnp.float32) + b1_ref[...]
    y = jnp.maximum(y, 0.0)
    y = jnp.dot(y.astype(jnp.bfloat16), w2_ref[...],
                preferred_element_type=jnp.float32) + b2_ref[...]

    # --- residual + LayerNorm 2 --------------------------------------------------
    z = x1n + y
    mu2 = jnp.mean(z, axis=-1, keepdims=True)
    var2 = jnp.mean(jnp.square(z - mu2), axis=-1, keepdims=True)
    out = (z - mu2) * jax.lax.rsqrt(var2 + eps) * g2_ref[...] + be2_ref[...]

    # --- optional fused final Encoder LayerNorm (last layer only) ---------------
    if fuse_final_norm:   # static Python flag
        mu3 = jnp.mean(out, axis=-1, keepdims=True)
        var3 = jnp.mean(jnp.square(out - mu3), axis=-1, keepdims=True)
        out = (out - mu3) * jax.lax.rsqrt(var3 + eps) * gf_ref[...] + bef_ref[...]

    xout_ref[...] = out


# ----------------------------------------------------------------------------
# Wrappers
# ----------------------------------------------------------------------------
def run_encoder_layer(x, p, n_heads, d_head, final_norm=None):
    """Runs one encoder layer; optionally fuses the Encoder's final LayerNorm."""
    B, L, D = x.shape
    H, dh = n_heads, d_head
    HD = H * dh
    d_ff = p["w1"].shape[1]

    fuse = final_norm is not None
    if fuse:
        gf, bef = final_norm["gamma"], final_norm["beta"]
    else:
        gf = jnp.ones((1, D), jnp.float32)
        bef = jnp.zeros((1, D), jnp.float32)

    kernel = functools.partial(
        encoder_layer_kernel, n_heads=H, d_head=dh, fuse_final_norm=fuse
    )

    def full(shape):
        n = len(shape)
        return pl.BlockSpec(shape, lambda b, _n=n: (0,) * _n)

    in_specs = [
        pl.BlockSpec((None, L, D), lambda b: (b, 0, 0)),     # x (batch dim squeezed)
        full((D, 3 * HD)), full((1, 3 * HD)),                # fused Wqkv, bqkv
        full((HD, D)), full((1, D)),                         # Wo, bo
        full((D, d_ff)), full((1, d_ff)),                    # conv1 (1x1)
        full((d_ff, D)), full((1, D)),                       # conv2 (1x1)
        full((1, D)), full((1, D)),                          # norm1 gamma/beta
        full((1, D)), full((1, D)),                          # norm2 gamma/beta
        full((1, D)), full((1, D)),                          # final norm gamma/beta
    ]
    out_specs = (
        pl.BlockSpec((None, L, D), lambda b: (b, 0, 0)),
        pl.BlockSpec((None, L, HD), lambda b: (b, 0, 0)),
        pl.BlockSpec((None, L, HD), lambda b: (b, 0, 0)),
    )
    out_shape = (
        jax.ShapeDtypeStruct((B, L, D), jnp.float32),
        jax.ShapeDtypeStruct((B, L, HD), jnp.bfloat16),      # halved HBM writeback
        jax.ShapeDtypeStruct((B, L, HD), jnp.bfloat16),
    )

    x_out, q, k = pl.pallas_call(
        kernel,
        grid=(B,),
        in_specs=in_specs,
        out_specs=out_specs,
        out_shape=out_shape,
        compiler_params=pltpu.CompilerParams(
            dimension_semantics=("parallel",),
            vmem_limit_bytes=48 * 1024 * 1024,   # safe on v7x's 64 MiB physical VMEM
        ),
    )(
        x,
        p["wqkv"], p["bqkv"], p["wo"], p["bo"],
        p["w1"], p["b1"], p["w2"], p["b2"],
        p["g1"], p["be1"], p["g2"], p["be2"],
        gf, bef,
    )
    # PyTorch AttentionLayer returns queries/keys as (B, L, H, d_head); the kernel
    # emits lane-dense (B, L, H*d_head) so this is a free reshape (no transpose,
    # no extra HBM round trip).
    q = q.reshape(B, L, H, dh)
    k = k.reshape(B, L, H, dh)
    return x_out, q, k


def encoder_forward(x, layer_params, final_norm_params, n_heads, d_head):
    """Mirror of Encoder.forward: returns (x, queries_list, keys_list)."""
    queries_list, keys_list = [], []
    n_layers = len(layer_params)
    for i, p in enumerate(layer_params):
        fused_norm = final_norm_params if (i == n_layers - 1) else None
        x, q, k = run_encoder_layer(x, p, n_heads, d_head, final_norm=fused_norm)
        queries_list.append(q)
        keys_list.append(k)
    return x, queries_list, keys_list


# ----------------------------------------------------------------------------
# Deterministic parameter construction (PyTorch-style layout, then kernel packing)
# ----------------------------------------------------------------------------
def init_layer_params(key, d_model, n_heads, d_head, d_ff):
    d_qk = n_heads * d_head
    ks = jax.random.split(key, 6)
    s = 0.02
    return {
        "wq": s * jax.random.normal(ks[0], (d_model, d_qk), jnp.float32),
        "bq": jnp.zeros((1, d_qk), jnp.float32),
        "wk": s * jax.random.normal(ks[1], (d_model, d_qk), jnp.float32),
        "bk": jnp.zeros((1, d_qk), jnp.float32),
        "wv": s * jax.random.normal(ks[2], (d_model, d_qk), jnp.float32),
        "bv": jnp.zeros((1, d_qk), jnp.float32),
        "wo": s * jax.random.normal(ks[3], (d_qk, d_model), jnp.float32),
        "bo": jnp.zeros((1, d_model), jnp.float32),
        "w1": s * jax.random.normal(ks[4], (d_model, d_ff), jnp.float32),
        "b1": jnp.zeros((1, d_ff), jnp.float32),
        "w2": s * jax.random.normal(ks[5], (d_ff, d_model), jnp.float32),
        "b2": jnp.zeros((1, d_model), jnp.float32),
        "g1": jnp.ones((1, d_model), jnp.float32),
        "be1": jnp.zeros((1, d_model), jnp.float32),
        "g2": jnp.ones((1, d_model), jnp.float32),
        "be2": jnp.zeros((1, d_model), jnp.float32),
    }


def prep_layer_params(raw):
    """Host-side (one-time) repack into the kernel layout: fused (D, 3*H*dh) QKV in
    bf16 (columns ordered [Q heads | K heads | V heads], head-major within each),
    bf16 out-projection / FF weights; biases and norm params stay f32."""
    wqkv = jnp.concatenate([raw["wq"], raw["wk"], raw["wv"]], axis=-1)   # (D, 3*HD)
    bqkv = jnp.concatenate([raw["bq"], raw["bk"], raw["bv"]], axis=-1)   # (1, 3*HD)
    return {
        "wqkv": wqkv.astype(jnp.bfloat16),
        "bqkv": bqkv.astype(jnp.float32),
        "wo": raw["wo"].astype(jnp.bfloat16),          # (H*dh, D)
        "bo": raw["bo"],
        "w1": raw["w1"].astype(jnp.bfloat16),
        "b1": raw["b1"],
        "w2": raw["w2"].astype(jnp.bfloat16),
        "b2": raw["b2"],
        "g1": raw["g1"], "be1": raw["be1"],
        "g2": raw["g2"], "be2": raw["be2"],
    }


if __name__ == "__main__":
    # Small but lane-dense shapes: L, D, d_ff, d_head are multiples of (8, 128).
    B, L, D = 2, 128, 256        # batch, seq_len, d_model
    n_heads = 2
    d_head = D // n_heads        # 128 -> full-lane-width heads (PyTorch default d_keys)
    d_ff = 256
    n_layers = 2

    root = jax.random.PRNGKey(0)
    kx, *layer_keys = jax.random.split(root, n_layers + 1)

    x = jax.random.normal(kx, (B, L, D), jnp.float32)
    layer_params = [
        prep_layer_params(init_layer_params(layer_keys[i], D, n_heads, d_head, d_ff))
        for i in range(n_layers)
    ]
    final_norm = {
        "gamma": jnp.ones((1, D), jnp.float32),
        "beta": jnp.zeros((1, D), jnp.float32),
    }

    x_out, queries_list, keys_list = encoder_forward(
        x, layer_params, final_norm, n_heads, d_head
    )
    jax.block_until_ready(x_out)
    for q, k in zip(queries_list, keys_list):
        jax.block_until_ready(q)
        jax.block_until_ready(k)

    assert x_out.shape == (B, L, D)
    assert len(queries_list) == n_layers and len(keys_list) == n_layers
    assert queries_list[0].shape == (B, L, n_heads, d_head)
    assert keys_list[0].shape == (B, L, n_heads, d_head)
    assert bool(jnp.all(jnp.isfinite(x_out)))
    print("KERNEL_OK")
</pallas_src>

<mosaic_0001>
module attributes {stable_mosaic.version = 11 : i64} {
  func.func @encoder_layer_kernel(%arg0: i32, %arg1: memref<1x128x256xf32, #tpu.memory_space<vmem>>, %arg2: memref<256x768xbf16, #tpu.memory_space<vmem>>, %arg3: memref<1x768xf32, #tpu.memory_space<vmem>>, %arg4: memref<256x256xbf16, #tpu.memory_space<vmem>>, %arg5: memref<1x256xf32, #tpu.memory_space<vmem>>, %arg6: memref<256x256xbf16, #tpu.memory_space<vmem>>, %arg7: memref<1x256xf32, #tpu.memory_space<vmem>>, %arg8: memref<256x256xbf16, #tpu.memory_space<vmem>>, %arg9: memref<1x256xf32, #tpu.memory_space<vmem>>, %arg10: memref<1x256xf32, #tpu.memory_space<vmem>>, %arg11: memref<1x256xf32, #tpu.memory_space<vmem>>, %arg12: memref<1x256xf32, #tpu.memory_space<vmem>>, %arg13: memref<1x256xf32, #tpu.memory_space<vmem>>, %arg14: memref<1x256xf32, #tpu.memory_space<vmem>>, %arg15: memref<1x256xf32, #tpu.memory_space<vmem>>, %arg16: memref<1x128x256xf32, #tpu.memory_space<vmem>>, %arg17: memref<1x128x256xbf16, #tpu.memory_space<vmem>>, %arg18: memref<1x128x256xbf16, #tpu.memory_space<vmem>>) attributes {dimension_semantics = [#tpu.dimension_semantics<parallel>], iteration_bounds = array<i64: 2>, scalar_prefetch = 0 : i64, scratch_operands = 0 : i64, tpu.core_type = #tpu.core_type<tc>, window_params = [{transform_indices = @transform_0, window_bounds = array<i64: 1, 128, 256>}, {pipeline_mode = #tpu.pipeline_mode<synchronous>, transform_indices = @transform_1, window_bounds = array<i64: 256, 768>}, {pipeline_mode = #tpu.pipeline_mode<synchronous>, transform_indices = @transform_2, window_bounds = array<i64: 1, 768>}, {pipeline_mode = #tpu.pipeline_mode<synchronous>, transform_indices = @transform_3, window_bounds = array<i64: 256, 256>}, {pipeline_mode = #tpu.pipeline_mode<synchronous>, transform_indices = @transform_4, window_bounds = array<i64: 1, 256>}, {pipeline_mode = #tpu.pipeline_mode<synchronous>, transform_indices = @transform_5, window_bounds = array<i64: 256, 256>}, {pipeline_mode = #tpu.pipeline_mode<synchronous>, transform_indices = @transform_6, window_bounds = array<i64: 1, 256>}, {pipeline_mode = #tpu.pipeline_mode<synchronous>, transform_indices = @transform_7, window_bounds = array<i64: 256, 256>}, {pipeline_mode = #tpu.pipeline_mode<synchronous>, transform_indices = @transform_8, window_bounds = array<i64: 1, 256>}, {pipeline_mode = #tpu.pipeline_mode<synchronous>, transform_indices = @transform_9, window_bounds = array<i64: 1, 256>}, {pipeline_mode = #tpu.pipeline_mode<synchronous>, transform_indices = @transform_10, window_bounds = array<i64: 1, 256>}, {pipeline_mode = #tpu.pipeline_mode<synchronous>, transform_indices = @transform_11, window_bounds = array<i64: 1, 256>}, {pipeline_mode = #tpu.pipeline_mode<synchronous>, transform_indices = @transform_12, window_bounds = array<i64: 1, 256>}, {pipeline_mode = #tpu.pipeline_mode<synchronous>, transform_indices = @transform_13, window_bounds = array<i64: 1, 256>}, {pipeline_mode = #tpu.pipeline_mode<synchronous>, transform_indices = @transform_14, window_bounds = array<i64: 1, 256>}, {transform_indices = @transform_15, window_bounds = array<i64: 1, 128, 256>}, {transform_indices = @transform_16, window_bounds = array<i64: 1, 128, 256>}, {transform_indices = @transform_17, window_bounds = array<i64: 1, 128, 256>}]} {
    %c0 = arith.constant 0 : index
    %c0_0 = arith.constant 0 : index
    %c0_1 = arith.constant 0 : index
    %0 = vector.load %arg1[%c0, %c0_0, %c0_1] : memref<1x128x256xf32, #tpu.memory_space<vmem>>, vector<1x128x256xf32>
    %1 = vector.shape_cast %0 : vector<1x128x256xf32> to vector<128x256xf32>
    %2 = arith.truncf %1 : vector<128x256xf32> to vector<128x256xbf16>
    %c0_2 = arith.constant 0 : index
    %c0_3 = arith.constant 0 : index
    %3 = vector.load %arg2[%c0_2, %c0_3] : memref<256x768xbf16, #tpu.memory_space<vmem>>, vector<256x768xbf16>
    %cst = arith.constant dense<0.000000e+00> : vector<128x768xf32>
    %4 = tpu.matmul %2, %3, %cst {dimension_numbers = #tpu.dot_dimension_numbers<[1], [0], [0], [1], [0, 0, 1, 1], [], []>} : vector<128x256xbf16>, vector<256x768xbf16>, vector<128x768xf32> -> vector<128x768xf32>
    %c0_4 = arith.constant 0 : index
    %c0_5 = arith.constant 0 : index
    %5 = vector.load %arg3[%c0_4, %c0_5] : memref<1x768xf32, #tpu.memory_space<vmem>>, vector<1x768xf32>
    %6 = vector.broadcast %5 : vector<1x768xf32> to vector<128x768xf32>
    %7 = arith.addf %4, %6 : vector<128x768xf32>
    %8 = vector.extract_strided_slice %7 {offsets = [0, 0], sizes = [128, 256], strides = [1, 1]} : vector<128x768xf32> to vector<128x256xf32>
    %9 = vector.extract_strided_slice %7 {offsets = [0, 256], sizes = [128, 256], strides = [1, 1]} : vector<128x768xf32> to vector<128x256xf32>
    %10 = vector.extract_strided_slice %7 {offsets = [0, 512], sizes = [128, 256], strides = [1, 1]} : vector<128x768xf32> to vector<128x256xf32>
    %11 = arith.truncf %8 : vector<128x256xf32> to vector<128x256xbf16>
    %c0_6 = arith.constant 0 : index
    %c0_7 = arith.constant 0 : index
    %c0_8 = arith.constant 0 : index
    %12 = vector.load %arg17[%c0_6, %c0_7, %c0_8] : memref<1x128x256xbf16, #tpu.memory_space<vmem>>, vector<1x128x256xbf16>
    %13 = vector.shape_cast %12 : vector<1x128x256xbf16> to vector<128x256xbf16>
    %14 = vector.shape_cast %11 : vector<128x256xbf16> to vector<1x128x256xbf16>
    tpu.vector_store %arg17[%c0_6, %c0_7, %c0_8], %14 {strides = array<i32>} : memref<1x128x256xbf16, #tpu.memory_space<vmem>>, vector<1x128x256xbf16>,
    %15 = arith.truncf %9 : vector<128x256xf32> to vector<128x256xbf16>
    %c0_9 = arith.constant 0 : index
    %c0_10 = arith.constant 0 : index
    %c0_11 = arith.constant 0 : index
    %16 = vector.load %arg18[%c0_9, %c0_10, %c0_11] : memref<1x128x256xbf16, #tpu.memory_space<vmem>>, vector<1x128x256xbf16>
    %17 = vector.shape_cast %16 : vector<1x128x256xbf16> to vector<128x256xbf16>
    %18 = vector.shape_cast %15 : vector<128x256xbf16> to vector<1x128x256xbf16>
    tpu.vector_store %arg18[%c0_9, %c0_10, %c0_11], %18 {strides = array<i32>} : memref<1x128x256xbf16, #tpu.memory_space<vmem>>, vector<1x128x256xbf16>,
    %cst_12 = arith.constant 0.0883883461 : f32
    %19 = vector.broadcast %cst_12 : f32 to vector<128x256xf32>
    %20 = arith.mulf %8, %19 : vector<128x256xf32>
    %21 = arith.truncf %20 : vector<128x256xf32> to vector<128x256xbf16>
    %22 = arith.truncf %9 : vector<128x256xf32> to vector<128x256xbf16>
    %23 = arith.truncf %10 : vector<128x256xf32> to vector<128x256xbf16>
    %24 = vector.extract_strided_slice %21 {offsets = [0, 0], sizes = [128, 128], strides = [1, 1]} : vector<128x256xbf16> to vector<128x128xbf16>
    %25 = vector.extract_strided_slice %22 {offsets = [0, 0], sizes = [128, 128], strides = [1, 1]} : vector<128x256xbf16> to vector<128x128xbf16>
    %26 = vector.extract_strided_slice %23 {offsets = [0, 0], sizes = [128, 128], strides = [1, 1]} : vector<128x256xbf16> to vector<128x128xbf16>
    %cst_13 = arith.constant dense<0.000000e+00> : vector<128x128xf32>
    %27 = tpu.matmul %24, %25, %cst_13 {dimension_numbers = #tpu.dot_dimension_numbers<[1], [1], [0], [0], [0, 0, 1, 0], [], []>} : vector<128x128xbf16>, vector<128x128xbf16>, vector<128x128xf32> -> vector<128x128xf32>
    %cst_14 = arith.constant dense<0xFF800000> : vector<128xf32>
    %28 = vector.multi_reduction <maximumf>, %27, %cst_14 [1] : vector<128x128xf32> to vector<128xf32>
    %29 = vector.shape_cast %28 : vector<128xf32> to vector<128x1xf32>
    %30 = vector.broadcast %29 : vector<128x1xf32> to vector<128x128xf32>
    %31 = arith.subf %27, %30 : vector<128x128xf32>
    %32 = math.exp %31 : vector<128x128xf32>
    %cst_15 = arith.constant dense<0.000000e+00> : vector<128xf32>
    %33 = vector.multi_reduction <add>, %32, %cst_15 [1] : vector<128x128xf32> to vector<128xf32>
    %34 = vector.shape_cast %33 : vector<128xf32> to vector<128x1xf32>
    %35 = arith.truncf %32 : vector<128x128xf32> to vector<128x128xbf16>
    %cst_16 = arith.constant dense<0.000000e+00> : vector<128x128xf32>
    %36 = tpu.matmul %35, %26, %cst_16 {dimension_numbers = #tpu.dot_dimension_numbers<[1], [0], [0], [1], [0, 0, 1, 1], [], []>} : vector<128x128xbf16>, vector<128x128xbf16>, vector<128x128xf32> -> vector<128x128xf32>
    %37 = tpu.reciprocal %34 {approx = true} : vector<128x1xf32> -> vector<128x1xf32>
    %38 = vector.broadcast %37 : vector<128x1xf32> to vector<128x128xf32>
    %39 = arith.mulf %36, %38 : vector<128x128xf32>
    %40 = vector.extract_strided_slice %21 {offsets = [0, 128], sizes = [128, 128], strides = [1, 1]} : vector<128x256xbf16> to vector<128x128xbf16>
    %41 = vector.extract_strided_slice %22 {offsets = [0, 128], sizes = [128, 128], strides = [1, 1]} : vector<128x256xbf16> to vector<128x128xbf16>
    %42 = vector.extract_strided_slice %23 {offsets = [0, 128], sizes = [128, 128], strides = [1, 1]} : vector<128x256xbf16> to vector<128x128xbf16>
    %cst_17 = arith.constant dense<0.000000e+00> : vector<128x128xf32>
    %43 = tpu.matmul %40, %41, %cst_17 {dimension_numbers = #tpu.dot_dimension_numbers<[1], [1], [0], [0], [0, 0, 1, 0], [], []>} : vector<128x128xbf16>, vector<128x128xbf16>, vector<128x128xf32> -> vector<128x128xf32>
    %cst_18 = arith.constant dense<0xFF800000> : vector<128xf32>
    %44 = vector.multi_reduction <maximumf>, %43, %cst_18 [1] : vector<128x128xf32> to vector<128xf32>
    %45 = vector.shape_cast %44 : vector<128xf32> to vector<128x1xf32>
    %46 = vector.broadcast %45 : vector<128x1xf32> to vector<128x128xf32>
    %47 = arith.subf %43, %46 : vector<128x128xf32>
    %48 = math.exp %47 : vector<128x128xf32>
    %cst_19 = arith.constant dense<0.000000e+00> : vector<128xf32>
    %49 = vector.multi_reduction <add>, %48, %cst_19 [1] : vector<128x128xf32> to vector<128xf32>
    %50 = vector.shape_cast %49 : vector<128xf32> to vector<128x1xf32>
    %51 = arith.truncf %48 : vector<128x128xf32> to vector<128x128xbf16>
    %cst_20 = arith.constant dense<0.000000e+00> : vector<128x128xf32>
    %52 = tpu.matmul %51, %42, %cst_20 {dimension_numbers = #tpu.dot_dimension_numbers<[1], [0], [0], [1], [0, 0, 1, 1], [], []>} : vector<128x128xbf16>, vector<128x128xbf16>, vector<128x128xf32> -> vector<128x128xf32>
    %53 = tpu.reciprocal %50 {approx = true} : vector<128x1xf32> -> vector<128x1xf32>
    %54 = vector.broadcast %53 : vector<128x1xf32> to vector<128x128xf32>
    %55 = arith.mulf %52, %54 : vector<128x128xf32>
    %56 = tpu.concatenate %39, %55 in 1 : vector<128x128xf32>, vector<128x128xf32> -> vector<128x256xf32>
    %57 = arith.truncf %56 : vector<128x256xf32> to vector<128x256xbf16>
    %c0_21 = arith.constant 0 : index
    %c0_22 = arith.constant 0 : index
    %58 = vector.load %arg4[%c0_21, %c0_22] : memref<256x256xbf16, #tpu.memory_space<vmem>>, vector<256x256xbf16>
    %cst_23 = arith.constant dense<0.000000e+00> : vector<128x256xf32>
    %59 = tpu.matmul %57, %58, %cst_23 {dimension_numbers = #tpu.dot_dimension_numbers<[1], [0], [0], [1], [0, 0, 1, 1], [], []>} : vector<128x256xbf16>, vector<256x256xbf16>, vector<128x256xf32> -> vector<128x256xf32>
    %c0_24 = arith.constant 0 : index
    %c0_25 = arith.constant 0 : index
    %60 = vector.load %arg5[%c0_24, %c0_25] : memref<1x256xf32, #tpu.memory_space<vmem>>, vector<1x256xf32>
    %61 = vector.broadcast %60 : vector<1x256xf32> to vector<128x256xf32>
    %62 = arith.addf %59, %61 : vector<128x256xf32>
    %63 = arith.addf %1, %62 : vector<128x256xf32>
    %cst_26 = arith.constant dense<0.000000e+00> : vector<128xf32>
    %64 = vector.multi_reduction <add>, %63, %cst_26 [1] : vector<128x256xf32> to vector<128xf32>
    %65 = vector.shape_cast %64 : vector<128xf32> to vector<128x1xf32>
    %cst_27 = arith.constant 2.560000e+02 : f32
    %66 = vector.broadcast %cst_27 : f32 to vector<128x1xf32>
    %67 = arith.divf %65, %66 : vector<128x1xf32>
    %68 = vector.broadcast %67 : vector<128x1xf32> to vector<128x256xf32>
    %69 = arith.subf %63, %68 : vector<128x256xf32>
    %70 = arith.mulf %69, %69 : vector<128x256xf32>
    %cst_28 = arith.constant dense<0.000000e+00> : vector<128xf32>
    %71 = vector.multi_reduction <add>, %70, %cst_28 [1] : vector<128x256xf32> to vector<128xf32>
    %72 = vector.shape_cast %71 : vector<128xf32> to vector<128x1xf32>
    %cst_29 = arith.constant 2.560000e+02 : f32
    %73 = vector.broadcast %cst_29 : f32 to vector<128x1xf32>
    %74 = arith.divf %72, %73 : vector<128x1xf32>
    %75 = vector.broadcast %67 : vector<128x1xf32> to vector<128x256xf32>
    %76 = arith.subf %63, %75 : vector<128x256xf32>
    %cst_30 = arith.constant 9.99999974E-6 : f32
    %77 = vector.broadcast %cst_30 : f32 to vector<128x1xf32>
    %78 = arith.addf %74, %77 : vector<128x1xf32>
    %79 = math.rsqrt %78 : vector<128x1xf32>
    %80 = vector.broadcast %79 : vector<128x1xf32> to vector<128x256xf32>
    %81 = arith.mulf %76, %80 : vector<128x256xf32>
    %c0_31 = arith.constant 0 : index
    %c0_32 = arith.constant 0 : index
    %82 = vector.load %arg10[%c0_31, %c0_32] : memref<1x256xf32, #tpu.memory_space<vmem>>, vector<1x256xf32>
    %83 = vector.broadcast %82 : vector<1x256xf32> to vector<128x256xf32>
    %84 = arith.mulf %81, %83 : vector<128x256xf32>
    %c0_33 = arith.constant 0 : index
    %c0_34 = arith.constant 0 : index
    %85 = vector.load %arg11[%c0_33, %c0_34] : memref<1x256xf32, #tpu.memory_space<vmem>>, vector<1x256xf32>
    %86 = vector.broadcast %85 : vector<1x256xf32> to vector<128x256xf32>
    %87 = arith.addf %84, %86 : vector<128x256xf32>
    %88 = arith.truncf %87 : vector<128x256xf32> to vector<128x256xbf16>
    %c0_35 = arith.constant 0 : index
    %c0_36 = arith.constant 0 : index
    %89 = vector.load %arg6[%c0_35, %c0_36] : memref<256x256xbf16, #tpu.memory_space<vmem>>, vector<256x256xbf16>
    %cst_37 = arith.constant dense<0.000000e+00> : vector<128x256xf32>
    %90 = tpu.matmul %88, %89, %cst_37 {dimension_numbers = #tpu.dot_dimension_numbers<[1], [0], [0], [1], [0, 0, 1, 1], [], []>} : vector<128x256xbf16>, vector<256x256xbf16>, vector<128x256xf32> -> vector<128x256xf32>
    %c0_38 = arith.constant 0 : index
    %c0_39 = arith.constant 0 : index
    %91 = vector.load %arg7[%c0_38, %c0_39] : memref<1x256xf32, #tpu.memory_space<vmem>>, vector<1x256xf32>
    %92 = vector.broadcast %91 : vector<1x256xf32> to vector<128x256xf32>
    %93 = arith.addf %90, %92 : vector<128x256xf32>
    %cst_40 = arith.constant 0.000000e+00 : f32
    %94 = vector.broadcast %cst_40 : f32 to vector<128x256xf32>
    %95 = arith.maximumf %93, %94 : vector<128x256xf32>
    %96 = arith.truncf %95 : vector<128x256xf32> to vector<128x256xbf16>
    %c0_41 = arith.constant 0 : index
    %c0_42 = arith.constant 0 : index
    %97 = vector.load %arg8[%c0_41, %c0_42] : memref<256x256xbf16, #tpu.memory_space<vmem>>, vector<256x256xbf16>
    %cst_43 = arith.constant dense<0.000000e+00> : vector<128x256xf32>
    %98 = tpu.matmul %96, %97, %cst_43 {dimension_numbers = #tpu.dot_dimension_numbers<[1], [0], [0], [1], [0, 0, 1, 1], [], []>} : vector<128x256xbf16>, vector<256x256xbf16>, vector<128x256xf32> -> vector<128x256xf32>
    %c0_44 = arith.constant 0 : index
    %c0_45 = arith.constant 0 : index
    %99 = vector.load %arg9[%c0_44, %c0_45] : memref<1x256xf32, #tpu.memory_space<vmem>>, vector<1x256xf32>
    %100 = vector.broadcast %99 : vector<1x256xf32> to vector<128x256xf32>
    %101 = arith.addf %98, %100 : vector<128x256xf32>
    %102 = arith.addf %87, %101 : vector<128x256xf32>
    %cst_46 = arith.constant dense<0.000000e+00> : vector<128xf32>
    %103 = vector.multi_reduction <add>, %102, %cst_46 [1] : vector<128x256xf32> to vector<128xf32>
    %104 = vector.shape_cast %103 : vector<128xf32> to vector<128x1xf32>
    %cst_47 = arith.constant 2.560000e+02 : f32
    %105 = vector.broadcast %cst_47 : f32 to vector<128x1xf32>
    %106 = arith.divf %104, %105 : vector<128x1xf32>
    %107 = vector.broadcast %106 : vector<128x1xf32> to vector<128x256xf32>
    %108 = arith.subf %102, %107 : vector<128x256xf32>
    %109 = arith.mulf %108, %108 : vector<128x256xf32>
    %cst_48 = arith.constant dense<0.000000e+00> : vector<128xf32>
    %110 = vector.multi_reduction <add>, %109, %cst_48 [1] : vector<128x256xf32> to vector<128xf32>
    %111 = vector.shape_cast %110 : vector<128xf32> to vector<128x1xf32>
    %cst_49 = arith.constant 2.560000e+02 : f32
    %112 = vector.broadcast %cst_49 : f32 to vector<128x1xf32>
    %113 = arith.divf %111, %112 : vector<128x1xf32>
    %114 = vector.broadcast %106 : vector<128x1xf32> to vector<128x256xf32>
    %115 = arith.subf %102, %114 : vector<128x256xf32>
    %cst_50 = arith.constant 9.99999974E-6 : f32
    %116 = vector.broadcast %cst_50 : f32 to vector<128x1xf32>
    %117 = arith.addf %113, %116 : vector<128x1xf32>
    %118 = math.rsqrt %117 : vector<128x1xf32>
    %119 = vector.broadcast %118 : vector<128x1xf32> to vector<128x256xf32>
    %120 = arith.mulf %115, %119 : vector<128x256xf32>
    %c0_51 = arith.constant 0 : index
    %c0_52 = arith.constant 0 : index
    %121 = vector.load %arg12[%c0_51, %c0_52] : memref<1x256xf32, #tpu.memory_space<vmem>>, vector<1x256xf32>
    %122 = vector.broadcast %121 : vector<1x256xf32> to vector<128x256xf32>
    %123 = arith.mulf %120, %122 : vector<128x256xf32>
    %c0_53 = arith.constant 0 : index
    %c0_54 = arith.constant 0 : index
    %124 = vector.load %arg13[%c0_53, %c0_54] : memref<1x256xf32, #tpu.memory_space<vmem>>, vector<1x256xf32>
    %125 = vector.broadcast %124 : vector<1x256xf32> to vector<128x256xf32>
    %126 = arith.addf %123, %125 : vector<128x256xf32>
    %c0_55 = arith.constant 0 : index
    %c0_56 = arith.constant 0 : index
    %c0_57 = arith.constant 0 : index
    %127 = vector.load %arg16[%c0_55, %c0_56, %c0_57] : memref<1x128x256xf32, #tpu.memory_space<vmem>>, vector<1x128x256xf32>
    %128 = vector.shape_cast %127 : vector<1x128x256xf32> to vector<128x256xf32>
    %129 = vector.shape_cast %126 : vector<128x256xf32> to vector<1x128x256xf32>
    tpu.vector_store %arg16[%c0_55, %c0_56, %c0_57], %129 {strides = array<i32>} : memref<1x128x256xf32, #tpu.memory_space<vmem>>, vector<1x128x256xf32>,
    return
  }
  func.func @transform_0(%arg0: i32) -> (i32, i32, i32) {
    %c0_i32 = arith.constant 0 : i32
    %c0_i32_0 = arith.constant 0 : i32
    %c0_i32_1 = arith.constant 0 : i32
    return %arg0, %c0_i32, %c0_i32_0 : i32, i32, i32
  }
  func.func @transform_1(%arg0: i32) -> (i32, i32) {
    %c0_i32 = arith.constant 0 : i32
    %c0_i32_0 = arith.constant 0 : i32
    %c0_i32_1 = arith.constant 0 : i32
    return %c0_i32, %c0_i32_0 : i32, i32
  }
  func.func @transform_2(%arg0: i32) -> (i32, i32) {
    %c0_i32 = arith.constant 0 : i32
    %c0_i32_0 = arith.constant 0 : i32
    %c0_i32_1 = arith.constant 0 : i32
    return %c0_i32, %c0_i32_0 : i32, i32
  }
  func.func @transform_3(%arg0: i32) -> (i32, i32) {
    %c0_i32 = arith.constant 0 : i32
    %c0_i32_0 = arith.constant 0 : i32
    %c0_i32_1 = arith.constant 0 : i32
    return %c0_i32, %c0_i32_0 : i32, i32
  }
  func.func @transform_4(%arg0: i32) -> (i32, i32) {
    %c0_i32 = arith.constant 0 : i32
    %c0_i32_0 = arith.constant 0 : i32
    %c0_i32_1 = arith.constant 0 : i32
    return %c0_i32, %c0_i32_0 : i32, i32
  }
  func.func @transform_5(%arg0: i32) -> (i32, i32) {
    %c0_i32 = arith.constant 0 : i32
    %c0_i32_0 = arith.constant 0 : i32
    %c0_i32_1 = arith.constant 0 : i32
    return %c0_i32, %c0_i32_0 : i32, i32
  }
  func.func @transform_6(%arg0: i32) -> (i32, i32) {
    %c0_i32 = arith.constant 0 : i32
    %c0_i32_0 = arith.constant 0 : i32
    %c0_i32_1 = arith.constant 0 : i32
    return %c0_i32, %c0_i32_0 : i32, i32
  }
  func.func @transform_7(%arg0: i32) -> (i32, i32) {
    %c0_i32 = arith.constant 0 : i32
    %c0_i32_0 = arith.constant 0 : i32
    %c0_i32_1 = arith.constant 0 : i32
    return %c0_i32, %c0_i32_0 : i32, i32
  }
  func.func @transform_8(%arg0: i32) -> (i32, i32) {
    %c0_i32 = arith.constant 0 : i32
    %c0_i32_0 = arith.constant 0 : i32
    %c0_i32_1 = arith.constant 0 : i32
    return %c0_i32, %c0_i32_0 : i32, i32
  }
  func.func @transform_9(%arg0: i32) -> (i32, i32) {
    %c0_i32 = arith.constant 0 : i32
    %c0_i32_0 = arith.constant 0 : i32
    %c0_i32_1 = arith.constant 0 : i32
    return %c0_i32, %c0_i32_0 : i32, i32
  }
  func.func @transform_10(%arg0: i32) -> (i32, i32) {
    %c0_i32 = arith.constant 0 : i32
    %c0_i32_0 = arith.constant 0 : i32
    %c0_i32_1 = arith.constant 0 : i32
    return %c0_i32, %c0_i32_0 : i32, i32
  }
  func.func @transform_11(%arg0: i32) -> (i32, i32) {
    %c0_i32 = arith.constant 0 : i32
    %c0_i32_0 = arith.constant 0 : i32
    %c0_i32_1 = arith.constant 0 : i32
    return %c0_i32, %c0_i32_0 : i32, i32
  }
  func.func @transform_12(%arg0: i32) -> (i32, i32) {
    %c0_i32 = arith.constant 0 : i32
    %c0_i32_0 = arith.constant 0 : i32
    %c0_i32_1 = arith.constant 0 : i32
    return %c0_i32, %c0_i32_0 : i32, i32
  }
  func.func @transform_13(%arg0: i32) -> (i32, i32) {
    %c0_i32 = arith.constant 0 : i32
    %c0_i32_0 = arith.constant 0 : i32
    %c0_i32_1 = arith.constant 0 : i32
    return %c0_i32, %c0_i32_0 : i32, i32
  }
  func.func @transform_14(%arg0: i32) -> (i32, i32) {
    %c0_i32 = arith.constant 0 : i32
    %c0_i32_0 = arith.constant 0 : i32
    %c0_i32_1 = arith.constant 0 : i32
    return %c0_i32, %c0_i32_0 : i32, i32
  }
  func.func @transform_15(%arg0: i32) -> (i32, i32, i32) {
    %c0_i32 = arith.constant 0 : i32
    %c0_i32_0 = arith.constant 0 : i32
    %c0_i32_1 = arith.constant 0 : i32
    return %arg0, %c0_i32, %c0_i32_0 : i32, i32, i32
  }
  func.func @transform_16(%arg0: i32) -> (i32, i32, i32) {
    %c0_i32 = arith.constant 0 : i32
    %c0_i32_0 = arith.constant 0 : i32
    %c0_i32_1 = arith.constant 0 : i32
    return %arg0, %c0_i32, %c0_i32_0 : i32, i32, i32
  }
  func.func @transform_17(%arg0: i32) -> (i32, i32, i32) {
    %c0_i32 = arith.constant 0 : i32
    %c0_i32_0 = arith.constant 0 : i32
    %c0_i32_1 = arith.constant 0 : i32
    return %arg0, %c0_i32, %c0_i32_0 : i32, i32, i32
  }
}

</mosaic_0001>

<bundles_post_ra>
// kernel: tpu_custom_call.1
= control target key start
LH: loop header
LB: loop body
LE: loop exit
PB: predicated region body
PF: predicated region fallthrough
CT: control target
= control target key end

     0   :  { %s8415_s0 = inlined_call_operand.hbm [shape: f32[2,128,256], index: 0, kind: input, shape index: {}]   ;;  %s8416_s1 = inlined_call_operand.hbm [shape: bf16[256,768], index: 1, kind: input, shape index: {}]   ;;  %s8417_s2 = inlined_call_operand.vmem [shape: f32[1,768], index: 2, kind: input, shape index: {}]   ;;  %s8418_s3 = inlined_call_operand.hbm [shape: bf16[256,256], index: 3, kind: input, shape index: {}]   ;;  %s8419_s4 = inlined_call_operand.vmem [shape: f32[1,256], index: 4, kind: input, shape index: {}]   ;;  %s8420_s5 = inlined_call_operand.hbm [shape: bf16[256,256], index: 5, kind: input, shape index: {}]   ;;  %s8421_s6 = inlined_call_operand.vmem [shape: f32[1,256], index: 6, kind: input, shape index: {}]   ;;  %s8422_s7 = inlined_call_operand.hbm [shape: bf16[256,256], index: 7, kind: input, shape index: {}]   ;;  %s8423_s8 = inlined_call_operand.vmem [shape: f32[1,256], index: 8, kind: input, shape index: {}]   ;;  %s8424_s9 = inlined_call_operand.vmem [shape: f32[1,256], index: 9, kind: input, shape index: {}]   ;;  %s8425_s10 = inlined_call_operand.vmem [shape: f32[1,256], index: 10, kind: input, shape index: {}]   ;;  %s8426_s11 = inlined_call_operand.vmem [shape: f32[1,256], index: 11, kind: input, shape index: {}]   ;;  %s8427_s12 = inlined_call_operand.vmem [shape: f32[1,256], index: 12, kind: input, shape index: {}]   ;;  %s8428_s13 = inlined_call_operand.vmem [shape: f32[1,256], index: 13, kind: input, shape index: {}]   ;;  %s8429_s14 = inlined_call_operand.vmem [shape: f32[1,256], index: 14, kind: input, shape index: {}]   ;;  %s8430_s15 = inlined_call_operand.hbm [shape: f32[2,128,256], index: 15, kind: output, shape index: {0}]   ;;  %s8431_s16 = inlined_call_operand.hbm [shape: bf16[2,128,256], index: 16, kind: output, shape index: {1}]   ;;  %s8432_s17 = inlined_call_operand.hbm [shape: bf16[2,128,256], index: 17, kind: output, shape index: {2}]  }
   0x1   :  { %8462 = sst [smem:[#allocation39_spill]] %s8415_s0 }
   0x2   :  { %8463 = sst [smem:[#allocation40_spill]] %s8416_s1 }
   0x3   :  { %8464 = sst [smem:[#allocation41_spill]] %s8417_s2 }
   0x4   :  { %8465 = sst [smem:[#allocation42_spill]] %s8418_s3 }
   0x5   :  { %8466 = sst [smem:[#allocation43_spill]] %s8421_s6 }
   0x6   :  { %8467 = sst [smem:[#allocation44_spill]] %s8423_s8 }
   0x7   :  { %8468 = sst [smem:[#allocation45_spill]] %s8426_s11 }
   0x8   :  { %8469 = sst [smem:[#allocation46_spill]] %s8427_s12 }
   0x9   :  { %8470 = sst [smem:[#allocation47_spill]] %s8430_s15 }
   0xa   :  { %8471 = sst [smem:[#allocation48_spill]] %s8431_s16 }
   0xb   :  { %8472 = sst [smem:[#allocation49_spill]] %s8432_s17 }
   0xc   :  { %23 = vsyncpa [#allocation3], 0 }
   0xd   :  { %25 = vsyncpa [#allocation3 + $0x1], 0 }
   0xe   :  { %26 = vsyncpa [#allocation6], 0 }
   0xf   :  { %27 = vsyncpa [#allocation9], 0 }
  0x10   :  { %28 = vsyncpa [#allocation4], 0 }
  0x11   :  { %30 = vsyncpa [#allocation4 + $0x1], 0 }
  0x12   :  { %31 = vsyncpa [#allocation13], 0 }
  0x13   :  { %33 = vsyncpa [#allocation13 + $0x1], 0  ;;  %s6182_s13 = smov 0   ;;  %s6184_s14 = smov 0  }
  0x14   :  { %s6186_s24 = smov 0   ;;  %s6188_s25 = smov 0  }
  0x15 LB: > { %8473 = sst [smem:[#allocation20_spill]] %s6060_s13  ;;  %s6203_s26 = sadd.s32 4294967295, %s6072_s25   ;;  %s6072_s25 = sphi %s6188_s25, %s8543_s25   ;;  %s6068_s24 = sphi %s6186_s24, %s8542_s24   ;;  %s6064_s14 = sphi %s6184_s14, %s8541_s14   ;;  %s6060_s13 = sphi %s6182_s13, %s8540_s13  }
  0x16   : > { %s8435_s27 = sadd.s32 4294967294, %s6072_s25   ;;  %p59_p0 = scmp.ne.s32.totalorder %s6064_s14, %s6060_s13 }
  0x17   : > { %p8439_p1 = scmp.eq.s32.totalorder %s6203_s26, 0  ;;  %p383_p3 = scmp.eq.s32.totalorder %s8435_s27, 1 }
  0x18   : > { %p4664_p5 = scmp.ge.s32.totalorder %s6072_s25, 1  ;;  %p442_p7 = scmp.lt.s32.totalorder %s6072_s25, 3 }
  0x19   : > { %p6214_p4 = por %p8439_p1, %p59_p0  ;;  %p6219_p6 = por %p383_p3, %p59_p0 }
  0x1a   : > { %p6224_p8 = pnand %p4664_p5, %p442_p7  ;;  %s6074_s30 = smov [#allocation5]  }
  0x1b   : > { %s8474_s28 = scalar_select %p6214_p4, 1, 0 }
  0x1c   : > { %s8475_s29 = scalar_select %p6219_p6, 1, 0 }
  0x1d   : > { %s8477_s0 = scalar_select %p6224_p8, 1, 0 }
  0x1e   : > { %8476 = sst [smem:[#allocation21_spill]] %s8475_s29  ;;  %s454_s18 = sshll.u32 %s6074_s30, 4  ;;  %s455_s18 = int_to_ptr.vmem [resolvable:$true] %s454_s18 }
  0x1f   : > { %p5201_p9 = pneg %p6224_p8  ;;  %s6075_s1 = smov [#allocation8]  }
  0x20   : > { %s486_s20 = sshll.u32 %s6075_s1, 4  ;;  %s8479_s23 = sld [smem:[#allocation40_spill]]  ;;  %s487_s20 = int_to_ptr.vmem [resolvable:$true] %s486_s20 }
  0x21   : > { %p6233_p11 = pnand %p5201_p9, %p8439_p1 }
  0x23   : > { %p6245_p13 = pneg %p6233_p11 }
  0x26   : > { %s5796_s27 = scalar_lea.hbm %s8479_s23, 12288 }
  0x27   : > { %p5797_p12 = scmp.ne.s32.totalorder %s8479_s23, %s5796_s27  ;;  %p5803_p5 = scmp.lt.u32.totalorder %s5796_s27, %s8479_s23 }
  0x29   : > { %p5799_p0 = pnand %p6245_p13, %p5797_p12 }
  0x2b   : > { %p5800_p3 = pneg %p5799_p0 }
  0x2d   : > { %p5805_p7 = pnand %p5803_p5, %p5800_p3 }
  0x2f   : > { %5808 = shalt.err (!%p5805_p7)
}
  0x30   : > { %s5809_s1 = scalar_lea.vmem %s455_s18, 12288  ;;  %p5817_p2 = scmp.lt.s32.totalorder %s455_s18, %s455_s18 }
  0x31   : > { %p5810_p9 = scmp.ne.s32.totalorder %s455_s18, %s5809_s1  ;;  %p5818_p6 = scmp.lt.s32.totalorder %s5809_s1, %s5809_s1 }
  0x33   : > { %p5812_p10 = pnand %p5810_p9, %p6245_p13  ;;  %p5819_p4 = por %p5818_p6, %p5817_p2 }
  0x35   : > { %p5813_p1 = pneg %p5812_p10 }
  0x37   : > { %p5820_p8 = pnand %p5819_p4, %p5813_p1 }
  0x39   : > { %5823 = shalt.err (!%p5820_p8)
}
  0x3a   : > { %s6076_s13 = smov 384   ;;  %s6077_s29 = smov 24  }
  0x3b   : > { %5204 = dma.hbm_to_vmem [thread:$0]  (!%p6233_p11), %s8479_s23, 12288, %s455_s18, [#allocation6], %s6076_s13, %s6076_s13, %s6077_s29  }
  0x3c   : > { %s6078_s27 = smov [#allocation7]   ;;  %s5824_s17 = scalar_lea.hbm %s8420_s5, 4096 }
  0x3d   : > { %s470_s21 = sshll.u32 %s6078_s27, 4  ;;  %p5825_p1 = scmp.ne.s32.totalorder %s8420_s5, %s5824_s17  ;;  %s471_s21 = int_to_ptr.vmem [resolvable:$true] %s470_s21 }
  0x3e   : > { %p5831_p6 = scmp.lt.u32.totalorder %s5824_s17, %s8420_s5 }
  0x3f   : > { %p5827_p2 = pnand %p5825_p1, %p6245_p13 }
  0x41   : > { %p5828_p4 = pneg %p5827_p2 }
  0x43   : > { %p5833_p8 = pnand %p5831_p6, %p5828_p4 }
  0x45   : > { %5836 = shalt.err (!%p5833_p8)
}
  0x46   : > { %s5837_s18 = scalar_lea.vmem %s487_s20, 4096  ;;  %p5845_p3 = scmp.lt.s32.totalorder %s487_s20, %s487_s20 }
  0x47   : > { %p5838_p10 = scmp.ne.s32.totalorder %s487_s20, %s5837_s18  ;;  %p5846_p5 = scmp.lt.s32.totalorder %s5837_s18, %s5837_s18 }
  0x49   : > { %p5840_p12 = pnand %p5838_p10, %p6245_p13  ;;  %p5847_p7 = por %p5846_p5, %p5845_p3 }
  0x4b   : > { %p5841_p0 = pneg %p5840_p12 }
  0x4d   : > { %p5848_p9 = pnand %p5847_p7, %p5841_p0 }
  0x4f   : > { %5851 = shalt.err (!%p5848_p9)
}
  0x50   : > { %s6079_s11 = smov 128   ;;  %s6080_s16 = smov 8  }
  0x51   : > { %5210 = dma.hbm_to_vmem [thread:$0]  (!%p6233_p11), %s8420_s5, 4096, %s487_s20, [#allocation9], %s6079_s11, %s6079_s11, %s6080_s16  }
  0x52   : > { %s8481_s3 = sld [smem:[#allocation42_spill]] }
  0x58   : > { %s5852_s29 = scalar_lea.hbm %s8481_s3, 4096 }
  0x59   : > { %p5853_p1 = scmp.ne.s32.totalorder %s8481_s3, %s5852_s29  ;;  %p5859_p6 = scmp.lt.u32.totalorder %s5852_s29, %s8481_s3 }
  0x5b   : > { %p5855_p2 = pnand %p5853_p1, %p6245_p13 }
  0x5d   : > { %p5856_p4 = pneg %p5855_p2 }
  0x5f   : > { %p5861_p8 = pnand %p5859_p6, %p5856_p4 }
  0x61   : > { %5864 = shalt.err (!%p5861_p8)
}
  0x62   : > { %s5865_s1 = scalar_lea.vmem %s471_s21, 4096  ;;  %p5873_p3 = scmp.lt.s32.totalorder %s471_s21, %s471_s21 }
  0x63   : > { %p5866_p10 = scmp.ne.s32.totalorder %s471_s21, %s5865_s1  ;;  %p5874_p5 = scmp.lt.s32.totalorder %s5865_s1, %s5865_s1 }
  0x65   : > { %p5868_p12 = pnand %p5866_p10, %p6245_p13  ;;  %p5875_p7 = por %p5874_p5, %p5873_p3 }
  0x67   : > { %p5869_p0 = pneg %p5868_p12 }
  0x69   : > { %p5876_p9 = pnand %p5875_p7, %p5869_p0 }
  0x6b   : > { %5879 = shalt.err (!%p5876_p9)
}
  0x6c   : > { %5207 = dma.hbm_to_vmem [thread:$0]  (!%p6233_p11), %s8481_s3, 4096, %s471_s21, [#allocation6], %s6079_s11, %s6079_s11, %s6080_s16  }
  0x6d   : > { %s6081_s6 = smov [#allocation10]   ;;  %s5880_s29 = scalar_lea.hbm %s8422_s7, 4096 }
  0x6e   : > { %s502_s8 = sshll.u32 %s6081_s6, 4  ;;  %p5881_p1 = scmp.ne.s32.totalorder %s8422_s7, %s5880_s29  ;;  %s503_s8 = int_to_ptr.vmem [resolvable:$true] %s502_s8 }
  0x6f   : > { %p5887_p6 = scmp.lt.u32.totalorder %s5880_s29, %s8422_s7 }
  0x70   : > { %p5883_p2 = pnand %p5881_p1, %p6245_p13 }
  0x72   : > { %p5884_p4 = pneg %p5883_p2 }
  0x74   : > { %p5889_p8 = pnand %p5887_p6, %p5884_p4 }
  0x76   : > { %5892 = shalt.err (!%p5889_p8)
}
  0x77   : > { %s5893_s21 = scalar_lea.vmem %s503_s8, 4096  ;;  %p5901_p3 = scmp.lt.s32.totalorder %s503_s8, %s503_s8 }
  0x78   : > { %p5894_p10 = scmp.ne.s32.totalorder %s503_s8, %s5893_s21  ;;  %p5902_p5 = scmp.lt.s32.totalorder %s5893_s21, %s5893_s21 }
  0x7a   : > { %p5896_p12 = pnand %p5894_p10, %p6245_p13  ;;  %p5903_p7 = por %p5902_p5, %p5901_p3 }
  0x7c   : > { %p5897_p0 = pneg %p5896_p12 }
  0x7e   : > { %p5904_p9 = pnand %p5903_p7, %p5897_p0 }
  0x80   : > { %5907 = shalt.err (!%p5904_p9)
}
  0x81   : > { %5213 = dma.hbm_to_vmem [thread:$0]  (!%p6233_p11), %s8422_s7, 4096, %s503_s8, [#allocation9], %s6079_s11, %s6079_s11, %s6080_s16  }
  0x82   : > { %s6325_s30 = sadd.s32 1, %s6072_s25   ;;  %s46_s19 = sadd.s32 1, %s6068_s24 }
  0x83   : > { %s43_s18 = ssub.s32 %s6072_s25, %s6325_s30  ;;  %p53_p13 = scmp.ne.s32.totalorder %s6068_s24, %s6064_s14 }
  0x84   : > { %p44_p1 = scmp.eq.s32.totalorder %s43_s18, 0  ;;  %p54_p2 = scmp.eq.s32.totalorder %s6072_s25, 0 }
  0x85   : > { %p8482_p4 = scmp.eq.s32.totalorder %s6203_s26, 1  ;;  %p5232_p8 = scmp.lt.s32.totalorder %s6072_s25, 2 }
  0x86   : > { %s6341_s17 = scalar_select %p44_p1, %s6068_s24, %s46_s19  }
  0x87   : > { %p6335_p6 = por %p8482_p4, %p53_p13  ;;  %p55_p10 = por %p54_p2, %p53_p13 }
  0x88   : > { %s537_s13 = sand.u32 1, %s6068_s24   ;;  %s4917_s11 = sshll.u32 %s6072_s25, 12 }
  0x89   : > { %s4670_s29 = sshll.u32 %s537_s13, 8  ;;  %s8484_s12 = sld [smem:[#allocation39_spill]] }
  0x8a   : > { %s541_s27 = scalar_lea.vmem [#allocation2], %s4670_s29  ;;  %p6352_p11 = pnand %p5232_p8, %p55_p10 }
  0x8b   : > { %s548_s22 = sshll.u32 %s541_s27, 4  ;;  %s6356_s1 = scalar_lea.sflag [#allocation3], %s537_s13  ;;  %s6350_s22 = int_to_ptr.vmem [resolvable:$true] %s548_s22 }
  0x8c   : > { %p5910_p0 = pneg %p6352_p11 }
  0x8f   : > { %s6348_s15 = scalar_lea.hbm %s8484_s12, %s4917_s11  ;;  %s5913_s29 = scalar_lea.hbm %s8484_s12, 8192 }
  0x90   : > { %s5908_s20 = scalar_lea.hbm %s6348_s15, 4096  ;;  %p5914_p7 = scmp.lt.u32.totalorder %s6348_s15, %s8484_s12 }
  0x91   : > { %p5909_p12 = scmp.ne.s32.totalorder %s6348_s15, %s5908_s20  ;;  %p5915_p9 = scmp.lt.u32.totalorder %s5913_s29, %s5908_s20 }
  0x92   : > { %p5917_p1 = scmp.lt.u32.totalorder %s5908_s20, %s6348_s15 }
  0x93   : > { %p5911_p3 = pnand %p5910_p0, %p5909_p12  ;;  %p5916_p13 = por %p5915_p9, %p5914_p7 }
  0x95   : > { %p5912_p5 = pneg %p5911_p3  ;;  %p5918_p2 = por %p5917_p1, %p5916_p13 }
  0x97   : > { %p5919_p4 = pnand %p5918_p2, %p5912_p5 }
  0x99   : > { %5922 = shalt.err (!%p5919_p4)
}
  0x9a   : > { %s5923_s13 = scalar_lea.vmem %s6350_s22, 4096  ;;  %s6082_s8 = smov [#allocation2]  }
  0x9b   : > { %p5924_p8 = scmp.ne.s32.totalorder %s6350_s22, %s5923_s13  ;;  %s5928_s27 = sshll.u32 %s6082_s8, 4  ;;  %s5929_s27 = int_to_ptr.vmem [resolvable:$false] %s5928_s27 }
  0x9c   : > { %s5930_s19 = scalar_lea.vmem %s5929_s27, 8192  ;;  %p5931_p3 = scmp.lt.s32.totalorder %s6350_s22, %s5929_s27 }
  0x9d   : > { %p5926_p10 = pnand %p5924_p8, %p5910_p0  ;;  %p5932_p7 = scmp.lt.s32.totalorder %s5930_s19, %s5923_s13 }
  0x9f   : > { %p5927_p12 = pneg %p5926_p10  ;;  %p5933_p9 = por %p5932_p7, %p5931_p3 }
  0xa1   : > { %p5934_p13 = pnand %p5933_p9, %p5927_p12 }
  0xa3   : > { %5937 = shalt.err (!%p5934_p13)
}
  0xa4   : > { %s6083_s20 = smov 256   ;;  %s6084_s18 = smov 16  }
  0xa5   : > { %5217 = dma.hbm_to_vmem [thread:$0]  (!%p6352_p11), %s6348_s15, 4096, %s6350_s22, %s6356_s1, %s6083_s20, %s6083_s20, %s6084_s18  }
  0xa6   : > { %p8486_p0 = scmp.ne.s32.totalorder %s8477_s0, 0 }
  0xa8   : > { %560 = sbr.rel (%p8486_p0) target bundleno = 2528 (0x9e0), region = 80 }
  0xaf   : > { %s6387_s29 = sand.u32 1, %s6064_s14   ;;  %p8487_p5 = scmp.ne.s32.totalorder %s8474_s28, 0 }
  0xb0   : > { %s8461_s11 = sshll.u32 %s6387_s29, 8  ;;  %s563_s16 = scalar_lea.sflag [#allocation3], %s6387_s29 }
  0xb1   : > { %s6393_s13 = scalar_lea.vmem [#allocation2], %s8461_s11 }
  0xb2   : > { %6039 = dma.done.wait (%p8487_p5), %s563_s16, 4096  }
  0xb3   : > { %6041 = vsyncadd (%p8487_p5), %s563_s16, 4294963200  ;;  %p8488_p11 = scmp.eq.s32.totalorder %s6203_s26, 0 }
  0xb5   : > { %6043 = dma.done.wait (%p8488_p11), [#allocation6], 16384   ;;  %p8489_p1 = pmov %p8488_p11 }
  0xb7   : > { %6045 = vsyncadd (%p8489_p1), [#allocation6], 4294950912  ;;  %p8490_p2 = pmov %p8489_p1 }
  0xb8   : > { %p8491_p4 = pmov %p8489_p1 }
  0xb9   : > { %6047 = dma.done.wait (%p8490_p2), [#allocation9], 8192  }
  0xba   : > { %6049 = vsyncadd (%p8491_p4), [#allocation9], 4294959104  ;;  %v5284_v0 = vld [vmem:[#allocation5 + $0xc] ss:$24 sps:$4 sm:$0xff]   ;;  %v5286_v1 = vld [vmem:[#allocation5 + $0x8] ss:$24 sps:$4 sm:$0xff]  }
  0xbb   : > { %1413 = vmatprep.subr.bf16.mxu1 %v5284_v0  ;;  %v5287_v2 = vld [vmem:[#allocation5 + $0x3c] ss:$24 sps:$4 sm:$0xff]   ;;  %v5289_v3 = vld [vmem:[#allocation5 + $0x38] ss:$24 sps:$4 sm:$0xff]   ;;  %v5290_v4 = vld [vmem:[#allocation5 + $0x6c] ss:$24 sps:$4 sm:$0xff]  }
  0xbc   : > { %1414 = vmatpush1.bf16.msra.mxu1 %v5286_v1  ;;  %v5292_v5 = vld [vmem:[#allocation5 + $0x68] ss:$24 sps:$4 sm:$0xff]   ;;  %v5293_v6 = vld [vmem:[#allocation5 + $0x9c] ss:$24 sps:$4 sm:$0xff]   ;;  %v5295_v8 = vld [vmem:[#allocation5 + $0x98] ss:$24 sps:$4 sm:$0xff]  }
  0xbd   : > { %1415 = vmatprep.subr.bf16.mxu1 %v5287_v2  ;;  %v5305_v7 = vld [vmem:[#allocation5 + $0x4] ss:$24 sps:$4 sm:$0xff]   ;;  %v5309_v10 = vld [vmem:[#allocation5] ss:$24 sps:$4 sm:$0xff]   ;;  %v5311_v11 = vld [vmem:[#allocation5 + $0x34] ss:$24 sps:$4 sm:$0xff]  }
  0xbe   : > { %v5296_v9 = vld [vmem:[#allocation5 + $0xcc] ss:$24 sps:$4 sm:$0xff]   ;;  %1300 = vmatprep.subr.bf16.mxu0 %v5305_v7  ;;  %v5298_v12 = vld [vmem:[#allocation5 + $0xc8] ss:$24 sps:$4 sm:$0xff]   ;;  %v5299_v15 = vld [vmem:[#allocation5 + $0xfc] ss:$24 sps:$4 sm:$0xff]  }
  0xbf   : > { %1301 = vmatpush1.bf16.msra.mxu0 %v5309_v10  ;;  %v5315_v13 = vld [vmem:[#allocation5 + $0x30] ss:$24 sps:$4 sm:$0xff]   ;;  %v5317_v14 = vld [vmem:[#allocation5 + $0x64] ss:$24 sps:$4 sm:$0xff]   ;;  %v5321_v16 = vld [vmem:[#allocation5 + $0x60] ss:$24 sps:$4 sm:$0xff]  }
  0xc0   : > { %1416 = vmatpush1.bf16.msra.mxu1 %v5289_v3  ;;  %1302 = vmatprep.subr.bf16.mxu0 %v5311_v11  ;;  %v5323_v17 = vld [vmem:[#allocation5 + $0x94] ss:$24 sps:$4 sm:$0xff]   ;;  %v5301_v18 = vld [vmem:[#allocation5 + $0xf8] ss:$24 sps:$4 sm:$0xff]   ;;  %v5329_v21 = vld [vmem:[#allocation5 + $0xc4] ss:$24 sps:$4 sm:$0xff]  }
  0xc1   : > { %1417 = vmatprep.subr.bf16.mxu1 %v5290_v4  ;;  %v5302_v19 = vld [vmem:[#allocation5 + $0x12c] ss:$24 sps:$4 sm:$0xff]   ;;  %v5327_v20 = vld [vmem:[#allocation5 + $0x90] ss:$24 sps:$4 sm:$0xff]   ;;  %v5307_v23 = vld [vmem:[#allocation5 + $0x15c] ss:$24 sps:$4 sm:$0xff]  }
  0xc2   : > { %v5304_v22 = vld [vmem:[#allocation5 + $0x128] ss:$24 sps:$4 sm:$0xff]   ;;  %v5335_v25 = vld [vmem:[#allocation5 + $0xf4] ss:$24 sps:$4 sm:$0xff]   ;;  %v5310_v26 = vld [vmem:[#allocation5 + $0x158] ss:$24 sps:$4 sm:$0xff]  }
  0xc3   : > { %1303 = vmatpush1.bf16.msra.mxu0 %v5315_v13  ;;  %v5333_v24 = vld [vmem:[#allocation5 + $0xc0] ss:$24 sps:$4 sm:$0xff]   ;;  %v5313_v27 = vld [vmem:[#allocation5 + $0x18c] ss:$24 sps:$4 sm:$0xff]   ;;  %v5339_v28 = vld [vmem:[#allocation5 + $0xf0] ss:$24 sps:$4 sm:$0xff]  }
  0xc4   : > { %1418 = vmatpush1.bf16.msra.mxu1 %v5292_v5  ;;  %1304 = vmatprep.subr.bf16.mxu0 %v5317_v14  ;;  %v5341_v29 = vld [vmem:[#allocation5 + $0x124] ss:$24 sps:$4 sm:$0xff]   ;;  %v5316_v30 = vld [vmem:[#allocation5 + $0x188] ss:$24 sps:$4 sm:$0xff]   ;;  %v5347_v35 = vld [vmem:[#allocation5 + $0x154] ss:$24 sps:$4 sm:$0xff]  }
  0xc5   : > { %1419 = vmatprep.subr.bf16.mxu1 %v5293_v6  ;;  %v5319_v31 = vld [vmem:[#allocation5 + $0x1bc] ss:$24 sps:$4 sm:$0xff]   ;;  %v5345_v32 = vld [vmem:[#allocation5 + $0x120] ss:$24 sps:$4 sm:$0xff]   ;;  %v645_v33 = vld [vmem:[%s6393_s13 + $0x8] sm:$0xff]  ;;  %s8492_s2 = sld [smem:[#allocation41_spill]] }
  0xc6   : > { %v647_v34 = vld [vmem:[%s6393_s13 + $0x18] sm:$0xff]  ;;  %v5325_v38 = vld [vmem:[#allocation5 + $0x1ec] ss:$24 sps:$4 sm:$0xff]   ;;  %v5351_v39 = vld [vmem:[#allocation5 + $0x150] ss:$24 sps:$4 sm:$0xff]   ;;  %s4680_s15 = sshll.u32 %s6387_s29, 7 }
  0xc7   : > { %1305 = vmatpush1.bf16.msra.mxu0 %v5321_v16  ;;  %v6409_v36 = vpack.c.bf16 %v647_v34, %v645_v33  ;;  %v5322_v37 = vld [vmem:[#allocation5 + $0x1b8] ss:$24 sps:$4 sm:$0xff]   ;;  %v5353_v40 = vld [vmem:[#allocation5 + $0x184] ss:$24 sps:$4 sm:$0xff]   ;;  %v5328_v41 = vld [vmem:[#allocation5 + $0x1e8] ss:$24 sps:$4 sm:$0xff]  }
  0xc8   : > { %1420 = vmatpush1.bf16.msra.mxu1 %v5295_v8  ;;  %1306 = vmatprep.subr.bf16.mxu0 %v5323_v17  ;;  %v5331_v42 = vld [vmem:[#allocation5 + $0x21c] ss:$24 sps:$4 sm:$0xff]   ;;  %v5357_v43 = vld [vmem:[#allocation5 + $0x180] ss:$24 sps:$4 sm:$0xff]   ;;  %v5337_v46 = vld [vmem:[#allocation5 + $0x24c] ss:$24 sps:$4 sm:$0xff]  }
  0xc9   : > { %1421 = vmatprep.subr.bf16.mxu1 %v5296_v9  ;;  %1445 = vmatprep.mubr.bf16.mxu1 %v6409_v36  ;;  %v5359_v44 = vld [vmem:[#allocation5 + $0x1b4] ss:$24 sps:$4 sm:$0xff]   ;;  %v5334_v45 = vld [vmem:[#allocation5 + $0x218] ss:$24 sps:$4 sm:$0xff]   ;;  %v5362_v48 = vld [vmem:[#allocation5 + $0x1e4] ss:$24 sps:$4 sm:$0xff]  }
  0xca   : > { %1332 = vmatprep.mubr.bf16.mxu0 %v6409_v36  ;;  %v5361_v47 = vld [vmem:[#allocation5 + $0x1b0] ss:$24 sps:$4 sm:$0xff]   ;;  %v5343_v50 = vld [vmem:[#allocation5 + $0x27c] ss:$24 sps:$4 sm:$0xff]   ;;  %v5364_v51 = vld [vmem:[#allocation5 + $0x1e0] ss:$24 sps:$4 sm:$0xff]  }
  0xcb   : > { %1307 = vmatpush1.bf16.msra.mxu0 %v5327_v20  ;;  %v5340_v49 = vld [vmem:[#allocation5 + $0x248] ss:$24 sps:$4 sm:$0xff]   ;;  %v5365_v52 = vld [vmem:[#allocation5 + $0x214] ss:$24 sps:$4 sm:$0xff]   ;;  %v5346_v53 = vld [vmem:[#allocation5 + $0x278] ss:$24 sps:$4 sm:$0xff]  }
  0xcc   : > { %1422 = vmatpush1.bf16.msra.mxu1 %v5298_v12  ;;  %1308 = vmatprep.subr.bf16.mxu0 %v5329_v21  ;;  %v5349_v54 = vld [vmem:[#allocation5 + $0x2ac] ss:$24 sps:$4 sm:$0xff]   ;;  %v5367_v55 = vld [vmem:[#allocation5 + $0x210] ss:$24 sps:$4 sm:$0xff]   ;;  %v5355_v58 = vld [vmem:[#allocation5 + $0x2dc] ss:$24 sps:$4 sm:$0xff]  }
  0xcd   : > { %1423 = vmatprep.subr.bf16.mxu1 %v5299_v15  ;;  %v5368_v56 = vld [vmem:[#allocation5 + $0x244] ss:$24 sps:$4 sm:$0xff]   ;;  %v5352_v57 = vld [vmem:[#allocation5 + $0x2a8] ss:$24 sps:$4 sm:$0xff]   ;;  %v5358_v59 = vld [vmem:[#allocation5 + $0x2d8] ss:$24 sps:$4 sm:$0xff]  }
  0xce   : > { %v5370_v60 = vld [vmem:[#allocation5 + $0x240] ss:$24 sps:$4 sm:$0xff]   ;;  %v5371_v62 = vld [vmem:[#allocation5 + $0x274] ss:$24 sps:$4 sm:$0xff]   ;;  %v5373_v2 = vld [vmem:[#allocation5 + $0x270] ss:$24 sps:$4 sm:$0xff]  }
  0xcf   : > { %1309 = vmatpush1.bf16.msra.mxu0 %v5333_v24  ;;  %v644_v61 = vld [vmem:[%s6393_s13] sm:$0xff]  ;;  %v646_v63 = vld [vmem:[%s6393_s13 + $0x10] sm:$0xff]  ;;  %v649_v0 = vld [vmem:[%s6393_s13 + $0x28] sm:$0xff]  ;;  %s6532_s22 = scalar_lea.vmem [#allocation14], %s4680_s15  ;;  %s6556_s21 = scalar_lea.vmem [#allocation12], %s4680_s15 }
  0xd0   : > { %1424 = vmatpush1.bf16.msra.mxu1 %v5301_v18  ;;  %1310 = vmatprep.subr.bf16.mxu0 %v5335_v25  ;;  %v651_v1 = vld [vmem:[%s6393_s13 + $0x38] sm:$0xff]  ;;  %v6417_v3 = vpack.c.bf16 %v646_v63, %v644_v61  ;;  %v648_v7 = vld [vmem:[%s6393_s13 + $0x20] sm:$0xff]  ;;  %v5377_v8 = vld [vmem:[#allocation5 + $0x2d4] ss:$24 sps:$4 sm:$0xff]   ;;  %s8524_s28 = sld [smem:[#allocation43_spill]]  ;;  %s8525_s1 = sld [smem:[#allocation44_spill]] }
  0xd1   : > { %1425 = vmatprep.subr.bf16.mxu1 %v5302_v19  ;;  %v5374_v4 = vld [vmem:[#allocation5 + $0x2a4] ss:$24 sps:$4 sm:$0xff]   ;;  %v6419_v5 = vpack.c.bf16 %v651_v1, %v649_v0  ;;  %v5376_v6 = vld [vmem:[#allocation5 + $0x2a0] ss:$24 sps:$4 sm:$0xff]   ;;  %v650_v9 = vld [vmem:[%s6393_s13 + $0x30] sm:$0xff]  ;;  %s4440_s8 = sand.u32 1, %s6203_s26  }
  0xd2   : > { %v653_v10 = vld [vmem:[%s6393_s13 + $0x48] sm:$0xff]  ;;  %v655_v11 = vld [vmem:[%s6393_s13 + $0x58] sm:$0xff]  ;;  %v6427_v13 = vpack.c.bf16 %v650_v9, %v648_v7  ;;  %v652_v16 = vld [vmem:[%s6393_s13 + $0x40] sm:$0xff]  ;;  %s4951_s27 = sshll.u32 %s6203_s26, 11  ;;  %s8529_s18 = sld [smem:[#allocation48_spill]] }
  0xd3   : > { %1311 = vmatpush1.bf16.msra.mxu0 %v5339_v28  ;;  %v5379_v12 = vld [vmem:[#allocation5 + $0x2d0] ss:$24 sps:$4 sm:$0xff]   ;;  %v5382_v14 = vld [vmem:[#allocation5 + $0x14] ss:$24 sps:$4 sm:$0xff]   ;;  %v6429_v15 = vpack.c.bf16 %v655_v11, %v653_v10  ;;  %v659_v20 = vld [vmem:[%s6393_s13 + $0x78] sm:$0xff]  ;;  %s6085_s15 = smov [#allocation12]  }
  0xd4   : > { %1426 = vmatpush1.bf16.msra.mxu1 %v5304_v22  ;;  %1312 = vmatprep.subr.bf16.mxu0 %v5341_v29  ;;  %v654_v17 = vld [vmem:[%s6393_s13 + $0x50] sm:$0xff]  ;;  %v657_v19 = vld [vmem:[%s6393_s13 + $0x68] sm:$0xff]  ;;  %v5385_v21 = vld [vmem:[#allocation5 + $0x44] ss:$24 sps:$4 sm:$0xff]  }
  0xd5   : > { %1427 = vmatprep.subr.bf16.mxu1 %v5307_v23  ;;  %v5380_v18 = vld [vmem:[#allocation5 + $0x10] ss:$24 sps:$4 sm:$0xff]   ;;  %v5383_v22 = vld [vmem:[#allocation5 + $0x40] ss:$24 sps:$4 sm:$0xff]   ;;  %v5388_v23 = vld [vmem:[#allocation5 + $0x74] ss:$24 sps:$4 sm:$0xff]   ;;  %v6439_v24 = vpack.c.bf16 %v654_v17, %v652_v16  ;;  %v6441_v25 = vpack.c.bf16 %v659_v20, %v657_v19 }
  0xd6   : > { %v656_v28 = vld [vmem:[%s6393_s13 + $0x60] sm:$0xff]  ;;  %v658_v29 = vld [vmem:[%s6393_s13 + $0x70] sm:$0xff]  ;;  %v673_v61 = vld [vmem:[%s6393_s13 + $0xe8] sm:$0xff] }
  0xd7   : > { %1313 = vmatpush1.bf16.msra.mxu0 %v5345_v32  ;;  %v5389_v32 = vld [vmem:[#allocation5 + $0xa0] ss:$24 sps:$4 sm:$0xff]   ;;  %v5394_v33 = vld [vmem:[#allocation5 + $0xd4] ss:$24 sps:$4 sm:$0xff]   ;;  %v6451_v34 = vpack.c.bf16 %v658_v29, %v656_v28  ;;  %v5427_v19 = vld [vmem:[#allocation5 + $0x2e4] ss:$24 sps:$4 sm:$0xff]  }
  0xd8   : > { %1428 = vmatpush1.bf16.msra.mxu1 %v5310_v26  ;;  %1314 = vmatprep.subr.bf16.mxu0 %v5347_v35  ;;  %v5386_v26 = vld [vmem:[#allocation5 + $0x70] ss:$24 sps:$4 sm:$0xff]   ;;  %v5407_v63 = vld [vmem:[#allocation5 + $0x1c0] ss:$24 sps:$4 sm:$0xff]   ;;  %v5412_v1 = vld [vmem:[#allocation5 + $0x1f4] ss:$24 sps:$4 sm:$0xff]   ;;  %s8145_s16 = scalar_lea.hbm %s8529_s18, %s4951_s27 }
  0xd9   : > { %1429 = vmatprep.subr.bf16.mxu1 %v5313_v27  ;;  %v5391_v27 = vld [vmem:[#allocation5 + $0xa4] ss:$24 sps:$4 sm:$0xff]   ;;  %v5413_v9 = vld [vmem:[#allocation5 + $0x220] ss:$24 sps:$4 sm:$0xff]   ;;  %v5418_v11 = vld [vmem:[#allocation5 + $0x254] ss:$24 sps:$4 sm:$0xff]  }
  0xda   : > { %v672_v7 = vld [vmem:[%s6393_s13 + $0xe0] sm:$0xff]  ;;  %v5424_v17 = vld [vmem:[#allocation5 + $0x2b4] ss:$24 sps:$4 sm:$0xff]  }
  0xdb   : > { %1315 = vmatpush1.bf16.msra.mxu0 %v5351_v39  ;;  %v660_v39 = vld [vmem:[%s6393_s13 + $0x80] sm:$0xff] }
  0xdc   : > { %1430 = vmatpush1.bf16.msra.mxu1 %v5316_v30  ;;  %1316 = vmatprep.subr.bf16.mxu0 %v5353_v40  ;;  %v661_v30 = vld [vmem:[%s6393_s13 + $0x88] sm:$0xff]  ;;  %v662_v40 = vld [vmem:[%s6393_s13 + $0x90] sm:$0xff]  ;;  %v5419_v16 = vld [vmem:[#allocation5 + $0x280] ss:$24 sps:$4 sm:$0xff]  }
  0xdd   : > { %1431 = vmatprep.subr.bf16.mxu1 %v5319_v31  ;;  %v663_v31 = vld [vmem:[%s6393_s13 + $0x98] sm:$0xff] }
  0xde   : > { %v6453_v35 = vpack.c.bf16 %v663_v31, %v661_v30  ;;  %v5425_v20 = vld [vmem:[#allocation5 + $0x2e0] ss:$24 sps:$4 sm:$0xff]  }
  0xdf   : > { %1317 = vmatpush1.bf16.msra.mxu0 %v5357_v43  ;;  %v5395_v43 = vld [vmem:[#allocation5 + $0x100] ss:$24 sps:$4 sm:$0xff]  }
  0xe0   : > { %1432 = vmatpush1.bf16.msra.mxu1 %v5322_v37  ;;  %1318 = vmatprep.subr.bf16.mxu0 %v5359_v44  ;;  %v5392_v37 = vld [vmem:[#allocation5 + $0xd0] ss:$24 sps:$4 sm:$0xff]   ;;  %v5400_v44 = vld [vmem:[#allocation5 + $0x134] ss:$24 sps:$4 sm:$0xff]  }
  0xe1   : > { %1433 = vmatprep.subr.bf16.mxu1 %v5325_v38  ;;  %v5397_v38 = vld [vmem:[#allocation5 + $0x104] ss:$24 sps:$4 sm:$0xff]  }
  0xe3   : > { %1319 = vmatpush1.bf16.msra.mxu0 %v5361_v47  ;;  %v5398_v47 = vld [vmem:[#allocation5 + $0x130] ss:$24 sps:$4 sm:$0xff]  }
  0xe4   : > { %1434 = vmatpush1.bf16.msra.mxu1 %v5328_v41  ;;  %1320 = vmatprep.subr.bf16.mxu0 %v5362_v48  ;;  %v665_v41 = vld [vmem:[%s6393_s13 + $0xa8] sm:$0xff]  ;;  %v5403_v48 = vld [vmem:[#allocation5 + $0x164] ss:$24 sps:$4 sm:$0xff]  }
  0xe5   : > { %1435 = vmatprep.subr.bf16.mxu1 %v5331_v42  ;;  %v667_v42 = vld [vmem:[%s6393_s13 + $0xb8] sm:$0xff] }
  0xe7   : > { %1321 = vmatpush1.bf16.msra.mxu0 %v5364_v51  ;;  %v669_v51 = vld [vmem:[%s6393_s13 + $0xc8] sm:$0xff] }
  0xe8   : > { %1436 = vmatpush1.bf16.msra.mxu1 %v5334_v45  ;;  %1322 = vmatprep.subr.bf16.mxu0 %v5365_v52  ;;  %v6463_v45 = vpack.c.bf16 %v662_v40, %v660_v39  ;;  %v671_v52 = vld [vmem:[%s6393_s13 + $0xd8] sm:$0xff] }
  0xe9   : > { %1437 = vmatprep.subr.bf16.mxu1 %v5337_v46  ;;  %v6465_v46 = vpack.c.bf16 %v667_v42, %v665_v41 }
  0xeb   : > { %1323 = vmatpush1.bf16.msra.mxu0 %v5367_v55 }
  0xec   : > { %1438 = vmatpush1.bf16.msra.mxu1 %v5340_v49  ;;  %1324 = vmatprep.subr.bf16.mxu0 %v5368_v56  ;;  %v664_v49 = vld [vmem:[%s6393_s13 + $0xa0] sm:$0xff]  ;;  %v6477_v56 = vpack.c.bf16 %v671_v52, %v669_v51 }
  0xed   : > { %1439 = vmatprep.subr.bf16.mxu1 %v5343_v50  ;;  %v666_v50 = vld [vmem:[%s6393_s13 + $0xb0] sm:$0xff] }
  0xee   : > { %v6475_v55 = vpack.c.bf16 %v666_v50, %v664_v49 }
  0xef   : > { %1325 = vmatpush1.bf16.msra.mxu0 %v5370_v60  ;;  %v670_v60 = vld [vmem:[%s6393_s13 + $0xd0] sm:$0xff] }
  0xf0   : > { %1440 = vmatpush1.bf16.msra.mxu1 %v5346_v53  ;;  %1326 = vmatprep.subr.bf16.mxu0 %v5371_v62  ;;  %v5401_v53 = vld [vmem:[#allocation5 + $0x160] ss:$24 sps:$4 sm:$0xff]  }
  0xf1   : > { %1441 = vmatprep.subr.bf16.mxu1 %v5349_v54  ;;  %v5406_v54 = vld [vmem:[#allocation5 + $0x194] ss:$24 sps:$4 sm:$0xff]   ;;  %v675_v62 = vld [vmem:[%s6393_s13 + $0xf8] sm:$0xff] }
  0xf3   : > { %1327 = vmatpush1.bf16.msra.mxu0 %v5373_v2  ;;  %v691_v2 = vpack.c.bf16 %v675_v62, %v673_v61 }
  0xf4   : > { %1442 = vmatpush1.bf16.msra.mxu1 %v5352_v57  ;;  %1328 = vmatprep.subr.bf16.mxu0 %v5374_v4  ;;  %v5404_v57 = vld [vmem:[#allocation5 + $0x190] ss:$24 sps:$4 sm:$0xff]  }
  0xf5   : > { %1443 = vmatprep.subr.bf16.mxu1 %v5355_v58  ;;  %v5409_v58 = vld [vmem:[#allocation5 + $0x1c4] ss:$24 sps:$4 sm:$0xff]   ;;  %v5410_v4 = vld [vmem:[#allocation5 + $0x1f0] ss:$24 sps:$4 sm:$0xff]  }
  0xf7   : > { %1329 = vmatpush1.bf16.msra.mxu0 %v5376_v6  ;;  %v5415_v6 = vld [vmem:[#allocation5 + $0x224] ss:$24 sps:$4 sm:$0xff]  }
  0xf8   : > { %1444 = vmatpush1.bf16.msra.mxu1 %v5358_v59  ;;  %1330 = vmatprep.subr.bf16.mxu0 %v5377_v8  ;;  %v668_v59 = vld [vmem:[%s6393_s13 + $0xc0] sm:$0xff]  ;;  %v674_v8 = vld [vmem:[%s6393_s13 + $0xf0] sm:$0xff] }
  0xf9   : > { %v688_v0 = vpack.c.bf16 %v670_v60, %v668_v59  ;;  %v690_v10 = vpack.c.bf16 %v674_v8, %v672_v7 }
  0xfb   : > { %1446 = vmatmul.mubr.bf16.vlgmr.msra.gmra.mrb[0].mxu1 %v6417_v3  ;;  %1331 = vmatpush1.bf16.msra.mxu0 %v5379_v12  ;;  %v5416_v12 = vld [vmem:[#allocation5 + $0x250] ss:$24 sps:$4 sm:$0xff]  }
  0xfc   : > { %1455 = vmatprep.mubr.bf16.mxu1 %v6419_v5  ;;  %1526 = vmatprep.subr.bf16.mxu0 %v5382_v14  ;;  %v5421_v14 = vld [vmem:[#allocation5 + $0x284] ss:$24 sps:$4 sm:$0xff]  }
  0xfe   : > { %1333 = vmatmul.mubr.bf16.vlgmr.msra.gmra.mrb[0].mxu0 %v6417_v3 }
  0xff   : > { %1342 = vmatprep.mubr.bf16.mxu0 %v6419_v5  ;;  %1527 = vmatpush1.bf16.msra.mxu0 %v5380_v18  ;;  %v5422_v18 = vld [vmem:[#allocation5 + $0x2b0] ss:$24 sps:$4 sm:$0xff]  }
 0x100   : > { %1528 = vmatprep.subr.bf16.mxu0 %v5385_v21 }
 0x103   : > { %1456 = vmatmul.mubr.bf16.gmra.mrb[4].mxu1 %v6427_v13  ;;  %1529 = vmatpush1.bf16.msra.mxu0 %v5383_v22 }
 0x104   : > { %1465 = vmatprep.mubr.bf16.mxu1 %v6429_v15  ;;  %1530 = vmatprep.subr.bf16.mxu0 %v5388_v23 }
 0x106   : > { %1343 = vmatmul.mubr.bf16.gmra.mrb[4].mxu0 %v6427_v13 }
 0x107   : > { %1352 = vmatprep.mubr.bf16.mxu0 %v6429_v15  ;;  %1531 = vmatpush1.bf16.msra.mxu0 %v5386_v26 }
 0x108   : > { %1532 = vmatprep.subr.bf16.mxu0 %v5391_v27 }
 0x10b   : > { %1466 = vmatmul.mubr.bf16.gmra.mrb[8].mxu1 %v6439_v24  ;;  %1533 = vmatpush1.bf16.msra.mxu0 %v5389_v32 }
 0x10c   : > { %1475 = vmatprep.mubr.bf16.mxu1 %v6441_v25  ;;  %1534 = vmatprep.subr.bf16.mxu0 %v5394_v33 }
 0x10e   : > { %1353 = vmatmul.mubr.bf16.gmra.mrb[8].mxu0 %v6439_v24 }
 0x10f   : > { %1362 = vmatprep.mubr.bf16.mxu0 %v6441_v25  ;;  %1535 = vmatpush1.bf16.msra.mxu0 %v5392_v37 }
 0x110   : > { %1536 = vmatprep.subr.bf16.mxu0 %v5397_v38 }
 0x113   : > { %1476 = vmatmul.mubr.bf16.gmra.mrb[12].mxu1 %v6451_v34  ;;  %1537 = vmatpush1.bf16.msra.mxu0 %v5395_v43 }
 0x114   : > { %1485 = vmatprep.mubr.bf16.mxu1 %v6453_v35  ;;  %1538 = vmatprep.subr.bf16.mxu0 %v5400_v44 }
 0x116   : > { %1363 = vmatmul.mubr.bf16.gmra.mrb[12].mxu0 %v6451_v34 }
 0x117   : > { %1372 = vmatprep.mubr.bf16.mxu0 %v6453_v35  ;;  %1539 = vmatpush1.bf16.msra.mxu0 %v5398_v47 }
 0x118   : > { %1540 = vmatprep.subr.bf16.mxu0 %v5403_v48 }
 0x11b   : > { %1486 = vmatmul.mubr.bf16.gmra.mrb[16].mxu1 %v6463_v45  ;;  %1541 = vmatpush1.bf16.msra.mxu0 %v5401_v53 }
 0x11c   : > { %1495 = vmatprep.mubr.bf16.mxu1 %v6465_v46  ;;  %1542 = vmatprep.subr.bf16.mxu0 %v5406_v54 }
 0x11e   : > { %1373 = vmatmul.mubr.bf16.gmra.mrb[16].mxu0 %v6463_v45 }
 0x11f   : > { %1382 = vmatprep.mubr.bf16.mxu0 %v6465_v46  ;;  %1543 = vmatpush1.bf16.msra.mxu0 %v5404_v57 }
 0x120   : > { %1544 = vmatprep.subr.bf16.mxu0 %v5409_v58 }
 0x123   : > { %1496 = vmatmul.mubr.bf16.gmra.mrb[20].mxu1 %v6475_v55  ;;  %1545 = vmatpush1.bf16.msra.mxu0 %v5407_v63 }
 0x124   : > { %1505 = vmatprep.mubr.bf16.mxu1 %v6477_v56  ;;  %1546 = vmatprep.subr.bf16.mxu0 %v5412_v1 }
 0x126   : > { %1383 = vmatmul.mubr.bf16.gmra.mrb[20].mxu0 %v6475_v55 }
 0x127   : > { %1392 = vmatprep.mubr.bf16.mxu0 %v6477_v56  ;;  %1547 = vmatpush1.bf16.msra.mxu0 %v5410_v4 }
 0x128   : > { %1548 = vmatprep.subr.bf16.mxu0 %v5415_v6 }
 0x12b   : > { %1506 = vmatmul.mubr.bf16.gmra.mrb[24].mxu1 %v688_v0  ;;  %1549 = vmatpush1.bf16.msra.mxu0 %v5413_v9 }
 0x12c   : > { %1515 = vmatprep.mubr.bf16.mxu1 %v691_v2  ;;  %1550 = vmatprep.subr.bf16.mxu0 %v5418_v11 }
 0x12e   : > { %1393 = vmatmul.mubr.bf16.gmra.mrb[24].mxu0 %v688_v0 }
 0x12f   : > { %1402 = vmatprep.mubr.bf16.mxu0 %v691_v2  ;;  %1551 = vmatpush1.bf16.msra.mxu0 %v5416_v12 }
 0x130   : > { %1552 = vmatprep.subr.bf16.mxu0 %v5421_v14 }
 0x133   : > { %1516 = vmatmul.mubr.bf16.gmra.mrb[28].mxu1 %v690_v10  ;;  %1553 = vmatpush1.bf16.msra.mxu0 %v5419_v16 }
 0x134   : > { %1554 = vmatprep.subr.bf16.mxu0 %v5424_v17 }
 0x136   : > { %1403 = vmatmul.mubr.bf16.gmra.mrb[28].mxu0 %v690_v10 }
 0x137   : > { %1555 = vmatpush1.bf16.msra.mxu0 %v5422_v18  ;;  %1558 = vmatprep.mubr.bf16.mxu0 %v6409_v36  ;;  %v790_v36 = vlaneseq }
 0x138   : > { %1556 = vmatprep.subr.bf16.mxu0 %v5427_v19 }
 0x13b   : > { %1557 = vmatpush1.bf16.msra.mxu0 %v5425_v20 }
 0x13e   : > { %1559 = vmatmul.mubr.bf16.vlgmr.msra.gmra.mrb[32].mxu0 %v6417_v3  ;;  %v6504_v3 = vshrl.u32 %v790_v36, 7 }
 0x13f   : > { %1568 = vmatprep.mubr.bf16.mxu0 %v6419_v5 }
 0x140   : > { %v800_v5 = vsub.s32 2, %v6504_v3  ;;  %v6524_v30 = vsub.s32 0, %v6504_v3  ;;  %v6528_v33 = vsub.s32 1, %v6504_v3 }
 0x146   : > { %1569 = vmatmul.mubr.bf16.gmra.mrb[36].mxu0 %v6427_v13  ;;  %v6510_v13 = vld [vmem:[%s8492_s2] sm:$0x3f] }
 0x147   : > { %1578 = vmatprep.mubr.bf16.mxu0 %v6429_v15  ;;  %v804_v15 = vsub.s32 3, %v6504_v3  ;;  %v6514_v21 = vrot.slane %v6510_v13, %v800_v5  ;;  %v6537_v38 = vrot.slane %v6510_v13, %v6524_v30  ;;  %v6542_v40 = vrot.slane %v6510_v13, %v6528_v33 }
 0x149   : > { %v6517_v22 = vrot.slane %v6510_v13, %v804_v15 }
 0x14e   : > { %1579 = vmatmul.mubr.bf16.gmra.mrb[40].mxu0 %v6439_v24 }
 0x14f   : > { %1588 = vmatprep.mubr.bf16.mxu0 %v6441_v25 }
 0x156   : > { %1589 = vmatmul.mubr.bf16.gmra.mrb[44].mxu0 %v6451_v34 }
 0x157   : > { %1598 = vmatprep.mubr.bf16.mxu0 %v6453_v35 }
 0x15e   : > { %1599 = vmatmul.mubr.bf16.gmra.mrb[48].mxu0 %v6463_v45 }
 0x15f   : > { %1608 = vmatprep.mubr.bf16.mxu0 %v6465_v46 }
 0x166   : > { %1609 = vmatmul.mubr.bf16.gmra.mrb[52].mxu0 %v6475_v55 }
 0x167   : > { %1618 = vmatprep.mubr.bf16.mxu0 %v6477_v56 }
 0x16e   : > { %1619 = vmatmul.mubr.bf16.gmra.mrb[56].mxu0 %v688_v0 }
 0x16f   : > { %1628 = vmatprep.mubr.bf16.mxu0 %v691_v2 }
 0x176   : > { %1629 = vmatmul.mubr.bf16.gmra.mrb[60].mxu0 %v690_v10 }
 0x1ce   : > { %v1447_v23 = vpop.f32.mrb[0].mxu1 }
 0x1cf   : > { %v1448_v24 = vadd.f32 %v1447_v23, %v6514_v21  ;;  %v1449_v25 = vpop.f32.mrb[1].mxu1 }
 0x1d0   : > { %v1450_v26 = vadd.f32 %v1449_v25, %v6517_v22  ;;  %v1451_v27 = vpop.f32.mrb[2].mxu1 }
 0x1d1   : > { %v1452_v28 = vadd.f32 %v1451_v27, %v6514_v21  ;;  %v1453_v29 = vpop.f32.mrb[3].mxu1  ;;  %v1334_v45 = vpop.f32.mrb[0].mxu0 }
 0x1d2   : > { %v4934_v31 = vpack.c.bf16 %v1450_v26, %v1448_v24  ;;  %v1454_v32 = vadd.f32 %v1453_v29, %v6517_v22  ;;  %v1335_v48 = vadd.f32 %v1334_v45, %v6537_v38  ;;  %v1336_v49 = vpop.f32.mrb[1].mxu0 }
 0x1d3   : > { %v1751_v34 = vpack.c.bf16 %v1452_v28, %v1448_v24  ;;  %v1337_v52 = vadd.f32 %v1336_v49, %v6542_v40  ;;  %v1338_v53 = vpop.f32.mrb[2].mxu0 }
 0x1d4   : > { %1847 = vst [vmem:[%s6532_s22] sm:$0xff] %v4934_v31  ;;  %v1752_v35 = vpack.c.bf16 %v1454_v32, %v1450_v26  ;;  %v4935_v37 = vpack.c.bf16 %v1454_v32, %v1452_v28  ;;  %v1863_v55 = vmul.f32 0.088388346, %v1335_v48  ;;  %v1339_v56 = vadd.f32 %v1338_v53, %v6537_v38  ;;  %v1340_v57 = vpop.f32.mrb[3].mxu0 }
 0x1d5   : > { %5017 = vmatprep.subr.bf16.mxu1 %v1751_v34  ;;  %v4918_v60 = vpack.c.bf16 %v1337_v52, %v1335_v48  ;;  %v1864_v61 = vmul.f32 0.088388346, %v1337_v52  ;;  %v1341_v63 = vadd.f32 %v1340_v57, %v6542_v40 }
 0x1d6   : > { %1848 = vst [vmem:[%s6532_s22 + $0x8] sm:$0xff] %v4935_v37  ;;  %v1457_v39 = vpop.f32.mrb[4].mxu1  ;;  %5018 = vmatpush3.bf16.xpose.msra.mxu1 %v1751_v34  ;;  %5081 = vmatprep.subr.bf16.mxu0 %v1752_v35  ;;  %v1865_v62 = vmul.f32 0.088388346, %v1339_v56 }
 0x1d7   : > { %v1458_v41 = vadd.f32 %v1457_v39, %v6514_v21  ;;  %v1459_v42 = vpop.f32.mrb[5].mxu1  ;;  %5082 = vmatpush3.bf16.xpose.msra.mxu0 %v1752_v35  ;;  %1735 = vst [vmem:[%s6556_s21] sm:$0xff] %v4918_v60  ;;  %v4919_v4 = vpack.c.bf16 %v1341_v63, %v1339_v56  ;;  %v1866_v6 = vmul.f32 0.088388346, %v1341_v63 }
 0x1d8   : > { %v1460_v43 = vadd.f32 %v1459_v42, %v6517_v22  ;;  %v1461_v44 = vpop.f32.mrb[6].mxu1  ;;  %v1895_v7 = vpack.c.bf16 %v1865_v62, %v1863_v55 }
 0x1d9   : > { %v1462_v46 = vadd.f32 %v1461_v44, %v6514_v21  ;;  %v1463_v47 = vpop.f32.mrb[7].mxu1  ;;  %v1344_v10 = vpop.f32.mrb[4].mxu0  ;;  %1736 = vst [vmem:[%s6556_s21 + $0x8] sm:$0xff] %v4919_v4  ;;  %v1896_v17 = vpack.c.bf16 %v1866_v6, %v1864_v61 }
 0x1da   : > { %v4936_v50 = vpack.c.bf16 %v1460_v43, %v1458_v41  ;;  %v1464_v51 = vadd.f32 %v1463_v47, %v6517_v22  ;;  %v1345_v14 = vadd.f32 %v1344_v10, %v6537_v38  ;;  %v1346_v16 = vpop.f32.mrb[5].mxu0  ;;  %5033 = vmatprep.mubr.bf16.mxu1 %v1895_v7 }
 0x1db   : > { %v1753_v54 = vpack.c.bf16 %v1462_v46, %v1458_v41  ;;  %v1347_v20 = vadd.f32 %v1346_v16, %v6542_v40  ;;  %v1348_v36 = vpop.f32.mrb[6].mxu0  ;;  %5097 = vmatprep.mubr.bf16.mxu0 %v1896_v17 }
 0x1dc   : > { %1849 = vst [vmem:[%s6532_s22 + $0x10] sm:$0xff] %v4936_v50  ;;  %v1754_v58 = vpack.c.bf16 %v1464_v51, %v1460_v43  ;;  %v4937_v59 = vpack.c.bf16 %v1464_v51, %v1462_v46  ;;  %v6566_v15 = vmul.f32 0.088388346, %v1345_v14  ;;  %v1349_v23 = vadd.f32 %v1348_v36, %v6537_v38  ;;  %v1350_v24 = vpop.f32.mrb[7].mxu0 }
 0x1dd   : > { %5019 = vmatprep.subr.bf16.mxu1 %v1753_v54  ;;  %v4920_v27 = vpack.c.bf16 %v1347_v20, %v1345_v14  ;;  %v6570_v28 = vmul.f32 0.088388346, %v1347_v20  ;;  %v1351_v31 = vadd.f32 %v1350_v24, %v6542_v40 }
 0x1de   : > { %1850 = vst [vmem:[%s6532_s22 + $0x18] sm:$0xff] %v4937_v59  ;;  %v1467_v0 = vpop.f32.mrb[8].mxu1  ;;  %5020 = vmatpush3.bf16.xpose.msra.mxu1 %v1753_v54  ;;  %5083 = vmatprep.subr.bf16.mxu0 %v1754_v58  ;;  %v6572_v29 = vmul.f32 0.088388346, %v1349_v23 }
 0x1df   : > { %v1468_v1 = vadd.f32 %v1467_v0, %v6514_v21  ;;  %v1469_v2 = vpop.f32.mrb[9].mxu1  ;;  %5084 = vmatpush3.bf16.xpose.msra.mxu0 %v1754_v58  ;;  %1737 = vst [vmem:[%s6556_s21 + $0x10] sm:$0xff] %v4920_v27  ;;  %v4921_v39 = vpack.c.bf16 %v1351_v31, %v1349_v23  ;;  %v6580_v41 = vmul.f32 0.088388346, %v1351_v31 }
 0x1e0   : > { %v1470_v8 = vadd.f32 %v1469_v2, %v6517_v22  ;;  %v1471_v9 = vpop.f32.mrb[10].mxu1  ;;  %v1897_v37 = vpack.c.bf16 %v6572_v29, %v6566_v15 }
 0x1e1   : > { %v1472_v11 = vadd.f32 %v1471_v9, %v6514_v21  ;;  %v1473_v12 = vpop.f32.mrb[11].mxu1  ;;  %v1354_v44 = vpop.f32.mrb[8].mxu0  ;;  %1738 = vst [vmem:[%s6556_s21 + $0x18] sm:$0xff] %v4921_v39  ;;  %v1898_v47 = vpack.c.bf16 %v6580_v41, %v6570_v28 }
 0x1e2   : > { %v4938_v18 = vpack.c.bf16 %v1470_v8, %v1468_v1  ;;  %v1474_v19 = vadd.f32 %v1473_v12, %v6517_v22  ;;  %v1355_v48 = vadd.f32 %v1354_v44, %v6537_v38  ;;  %v1356_v49 = vpop.f32.mrb[9].mxu0 }
 0x1e3   : > { %v1755_v5 = vpack.c.bf16 %v1472_v11, %v1468_v1  ;;  %v1357_v52 = vadd.f32 %v1356_v49, %v6542_v40  ;;  %v1358_v53 = vpop.f32.mrb[10].mxu0 }
 0x1e4   : > { %1851 = vst [vmem:[%s6532_s22 + $0x20] sm:$0xff] %v4938_v18  ;;  %v1756_v25 = vpack.c.bf16 %v1474_v19, %v1470_v8  ;;  %v4939_v26 = vpack.c.bf16 %v1474_v19, %v1472_v11  ;;  %v6590_v55 = vmul.f32 0.088388346, %v1355_v48  ;;  %v1359_v56 = vadd.f32 %v1358_v53, %v6537_v38  ;;  %v1360_v57 = vpop.f32.mrb[11].mxu0 }
 0x1e5   : > { %5021 = vmatprep.subr.bf16.mxu1 %v1755_v5  ;;  %v4922_v60 = vpack.c.bf16 %v1357_v52, %v1355_v48  ;;  %v6594_v61 = vmul.f32 0.088388346, %v1357_v52  ;;  %v1361_v63 = vadd.f32 %v1360_v57, %v6542_v40 }
 0x1e6   : > { %1852 = vst [vmem:[%s6532_s22 + $0x28] sm:$0xff] %v4939_v26  ;;  %v1477_v32 = vpop.f32.mrb[12].mxu1  ;;  %5022 = vmatpush3.bf16.xpose.msra.mxu1 %v1755_v5  ;;  %5085 = vmatprep.subr.bf16.mxu0 %v1756_v25  ;;  %v6596_v62 = vmul.f32 0.088388346, %v1359_v56 }
 0x1e7   : > { %v1478_v34 = vadd.f32 %v1477_v32, %v6514_v21  ;;  %v1479_v35 = vpop.f32.mrb[13].mxu1  ;;  %5086 = vmatpush3.bf16.xpose.msra.mxu0 %v1756_v25  ;;  %1739 = vst [vmem:[%s6556_s21 + $0x20] sm:$0xff] %v4922_v60  ;;  %v4923_v4 = vpack.c.bf16 %v1361_v63, %v1359_v56  ;;  %v6602_v6 = vmul.f32 0.088388346, %v1361_v63 }
 0x1e8   : > { %v1480_v42 = vadd.f32 %v1479_v35, %v6517_v22  ;;  %v1481_v43 = vpop.f32.mrb[14].mxu1  ;;  %v1899_v7 = vpack.c.bf16 %v6596_v62, %v6590_v55 }
 0x1e9   : > { %v1482_v45 = vadd.f32 %v1481_v43, %v6514_v21  ;;  %v1483_v46 = vpop.f32.mrb[15].mxu1  ;;  %v1364_v10 = vpop.f32.mrb[12].mxu0  ;;  %1740 = vst [vmem:[%s6556_s21 + $0x28] sm:$0xff] %v4923_v4  ;;  %v1900_v17 = vpack.c.bf16 %v6602_v6, %v6594_v61 }
 0x1ea   : > { %v4940_v50 = vpack.c.bf16 %v1480_v42, %v1478_v34  ;;  %v1484_v51 = vadd.f32 %v1483_v46, %v6517_v22  ;;  %v1365_v14 = vadd.f32 %v1364_v10, %v6537_v38  ;;  %v1366_v16 = vpop.f32.mrb[13].mxu0 }
 0x1eb   : > { %v1757_v54 = vpack.c.bf16 %v1482_v45, %v1478_v34  ;;  %v1367_v20 = vadd.f32 %v1366_v16, %v6542_v40  ;;  %v1368_v36 = vpop.f32.mrb[14].mxu0 }
 0x1ec   : > { %1853 = vst [vmem:[%s6532_s22 + $0x30] sm:$0xff] %v4940_v50  ;;  %v1758_v58 = vpack.c.bf16 %v1484_v51, %v1480_v42  ;;  %v4941_v59 = vpack.c.bf16 %v1484_v51, %v1482_v45  ;;  %v6614_v23 = vmul.f32 0.088388346, %v1365_v14  ;;  %v1369_v24 = vadd.f32 %v1368_v36, %v6537_v38  ;;  %v1370_v25 = vpop.f32.mrb[15].mxu0 }
 0x1ed   : > { %5023 = vmatprep.subr.bf16.mxu1 %v1757_v54  ;;  %v4924_v31 = vpack.c.bf16 %v1367_v20, %v1365_v14  ;;  %v6618_v32 = vmul.f32 0.088388346, %v1367_v20  ;;  %v1371_v35 = vadd.f32 %v1370_v25, %v6542_v40 }
 0x1ee   : > { %1854 = vst [vmem:[%s6532_s22 + $0x38] sm:$0xff] %v4941_v59  ;;  %v1487_v0 = vpop.f32.mrb[16].mxu1  ;;  %5024 = vmatpush3.bf16.xpose.msra.mxu1 %v1757_v54  ;;  %5087 = vmatprep.subr.bf16.mxu0 %v1758_v58  ;;  %v6620_v34 = vmul.f32 0.088388346, %v1369_v24 }
 0x1ef   : > { %v1488_v1 = vadd.f32 %v1487_v0, %v6514_v21  ;;  %v1489_v2 = vpop.f32.mrb[17].mxu1  ;;  %5088 = vmatpush3.bf16.xpose.msra.mxu0 %v1758_v58  ;;  %1741 = vst [vmem:[%s6556_s21 + $0x30] sm:$0xff] %v4924_v31  ;;  %v4925_v44 = vpack.c.bf16 %v1371_v35, %v1369_v24  ;;  %v6626_v45 = vmul.f32 0.088388346, %v1371_v35 }
 0x1f0   : > { %v1490_v8 = vadd.f32 %v1489_v2, %v6517_v22  ;;  %v1491_v9 = vpop.f32.mrb[18].mxu1  ;;  %v1901_v46 = vpack.c.bf16 %v6620_v34, %v6614_v23 }
 0x1f1   : > { %v1492_v11 = vadd.f32 %v1491_v9, %v6514_v21  ;;  %v1493_v12 = vpop.f32.mrb[19].mxu1  ;;  %v1374_v50 = vpop.f32.mrb[16].mxu0  ;;  %1742 = vst [vmem:[%s6556_s21 + $0x38] sm:$0xff] %v4925_v44  ;;  %v1902_v56 = vpack.c.bf16 %v6626_v45, %v6618_v32 }
 0x1f2   : > { %v4942_v18 = vpack.c.bf16 %v1490_v8, %v1488_v1  ;;  %v1494_v19 = vadd.f32 %v1493_v12, %v6517_v22  ;;  %v1375_v53 = vadd.f32 %v1374_v50, %v6537_v38  ;;  %v1376_v54 = vpop.f32.mrb[17].mxu0 }
 0x1f3   : > { %v1759_v5 = vpack.c.bf16 %v1492_v11, %v1488_v1  ;;  %v1377_v59 = vadd.f32 %v1376_v54, %v6542_v40  ;;  %v1378_v60 = vpop.f32.mrb[18].mxu0 }
 0x1f4   : > { %1855 = vst [vmem:[%s6532_s22 + $0x40] sm:$0xff] %v4942_v18  ;;  %v1760_v26 = vpack.c.bf16 %v1494_v19, %v1490_v8  ;;  %v4943_v27 = vpack.c.bf16 %v1494_v19, %v1492_v11  ;;  %v6638_v0 = vmul.f32 0.088388346, %v1375_v53  ;;  %v1379_v1 = vadd.f32 %v1378_v60, %v6537_v38  ;;  %v1380_v2 = vpop.f32.mrb[19].mxu0 }
 0x1f5   : > { %5025 = vmatprep.subr.bf16.mxu1 %v1759_v5  ;;  %v4926_v9 = vpack.c.bf16 %v1377_v59, %v1375_v53  ;;  %v6642_v10 = vmul.f32 0.088388346, %v1377_v59  ;;  %v1381_v12 = vadd.f32 %v1380_v2, %v6542_v40 }
 0x1f6   : > { %1856 = vst [vmem:[%s6532_s22 + $0x48] sm:$0xff] %v4943_v27  ;;  %v1497_v39 = vpop.f32.mrb[20].mxu1  ;;  %5026 = vmatpush3.bf16.xpose.msra.mxu1 %v1759_v5  ;;  %5089 = vmatprep.subr.bf16.mxu0 %v1760_v26  ;;  %v6644_v11 = vmul.f32 0.088388346, %v1379_v1 }
 0x1f7   : > { %v1498_v42 = vadd.f32 %v1497_v39, %v6514_v21  ;;  %v1499_v43 = vpop.f32.mrb[21].mxu1  ;;  %5090 = vmatpush3.bf16.xpose.msra.mxu0 %v1760_v26  ;;  %1743 = vst [vmem:[%s6556_s21 + $0x40] sm:$0xff] %v4926_v9  ;;  %v4927_v19 = vpack.c.bf16 %v1381_v12, %v1379_v1  ;;  %v6650_v20 = vmul.f32 0.088388346, %v1381_v12 }
 0x1f8   : > { %v1500_v48 = vadd.f32 %v1499_v43, %v6517_v22  ;;  %v1501_v49 = vpop.f32.mrb[22].mxu1  ;;  %v1903_v36 = vpack.c.bf16 %v6644_v11, %v6638_v0 }
 0x1f9   : > { %v1502_v51 = vadd.f32 %v1501_v49, %v6514_v21  ;;  %v1503_v52 = vpop.f32.mrb[23].mxu1  ;;  %v1384_v25 = vpop.f32.mrb[20].mxu0  ;;  %1744 = vst [vmem:[%s6556_s21 + $0x48] sm:$0xff] %v4927_v19  ;;  %v1904_v39 = vpack.c.bf16 %v6650_v20, %v6642_v10 }
 0x1fa   : > { %v4944_v57 = vpack.c.bf16 %v1500_v48, %v1498_v42  ;;  %v1504_v58 = vadd.f32 %v1503_v52, %v6517_v22  ;;  %v1385_v31 = vadd.f32 %v1384_v25, %v6537_v38  ;;  %v1386_v35 = vpop.f32.mrb[21].mxu0 }
 0x1fb   : > { %v1761_v63 = vpack.c.bf16 %v1502_v51, %v1498_v42  ;;  %v1387_v44 = vadd.f32 %v1386_v35, %v6542_v40 }
 0x1fc   : > { %1857 = vst [vmem:[%s6532_s22 + $0x50] sm:$0xff] %v4944_v57  ;;  %v1762_v4 = vpack.c.bf16 %v1504_v58, %v1500_v48  ;;  %v4945_v8 = vpack.c.bf16 %v1504_v58, %v1502_v51  ;;  %v1388_v48 = vpop.f32.mrb[22].mxu0  ;;  %v6662_v50 = vmul.f32 0.088388346, %v1385_v31 }
 0x1fd   : > { %5027 = vmatprep.subr.bf16.mxu1 %v1761_v63  ;;  %v1389_v51 = vadd.f32 %v1388_v48, %v6537_v38  ;;  %v1390_v52 = vpop.f32.mrb[23].mxu0  ;;  %v4928_v57 = vpack.c.bf16 %v1387_v44, %v1385_v31  ;;  %v6666_v58 = vmul.f32 0.088388346, %v1387_v44 }
 0x1fe   : > { %1858 = vst [vmem:[%s6532_s22 + $0x58] sm:$0xff] %v4945_v8  ;;  %v1507_v14 = vpop.f32.mrb[24].mxu1  ;;  %5028 = vmatpush3.bf16.xpose.msra.mxu1 %v1761_v63  ;;  %5091 = vmatprep.subr.bf16.mxu0 %v1762_v4  ;;  %v1391_v60 = vadd.f32 %v1390_v52, %v6542_v40 }
 0x1ff   : > { %v1508_v16 = vadd.f32 %v1507_v14, %v6514_v21  ;;  %v1509_v18 = vpop.f32.mrb[25].mxu1  ;;  %5092 = vmatpush3.bf16.xpose.msra.mxu0 %v1762_v4  ;;  %v6668_v59 = vmul.f32 0.088388346, %v1389_v51  ;;  %1745 = vst [vmem:[%s6556_s21 + $0x50] sm:$0xff] %v4928_v57 }
 0x200   : > { %v1510_v5 = vadd.f32 %v1509_v18, %v6517_v22  ;;  %v1511_v24 = vpop.f32.mrb[26].mxu1  ;;  %v4929_v4 = vpack.c.bf16 %v1391_v60, %v1389_v51  ;;  %v6674_v8 = vmul.f32 0.088388346, %v1391_v60 }
 0x201   : > { %v1512_v26 = vadd.f32 %v1511_v24, %v6514_v21  ;;  %v1513_v27 = vpop.f32.mrb[27].mxu1  ;;  %v1905_v9 = vpack.c.bf16 %v6668_v59, %v6662_v50 }
 0x202   : > { %v4946_v42 = vpack.c.bf16 %v1510_v5, %v1508_v16  ;;  %v1514_v43 = vadd.f32 %v1513_v27, %v6517_v22  ;;  %1746 = vst [vmem:[%s6556_s21 + $0x58] sm:$0xff] %v4929_v4  ;;  %v1906_v25 = vpack.c.bf16 %v6674_v8, %v6666_v58 }
 0x203   : > { %v1763_v49 = vpack.c.bf16 %v1512_v26, %v1508_v16  ;;  %v1394_v16 = vpop.f32.mrb[24].mxu0 }
 0x204   : > { %1859 = vst [vmem:[%s6532_s22 + $0x60] sm:$0xff] %v4946_v42  ;;  %v1764_v53 = vpack.c.bf16 %v1514_v43, %v1510_v5  ;;  %v4947_v54 = vpack.c.bf16 %v1514_v43, %v1512_v26  ;;  %v1395_v5 = vadd.f32 %v1394_v16, %v6537_v38  ;;  %v1396_v24 = vpop.f32.mrb[25].mxu0 }
 0x205   : > { %5029 = vmatprep.subr.bf16.mxu1 %v1763_v49  ;;  %v1397_v31 = vadd.f32 %v1396_v24, %v6542_v40  ;;  %v1398_v35 = vpop.f32.mrb[26].mxu0 }
 0x206   : > { %1860 = vst [vmem:[%s6532_s22 + $0x68] sm:$0xff] %v4947_v54  ;;  %v1517_v63 = vpop.f32.mrb[28].mxu1  ;;  %5030 = vmatpush3.bf16.xpose.msra.mxu1 %v1763_v49  ;;  %5093 = vmatprep.subr.bf16.mxu0 %v1764_v53  ;;  %v6686_v43 = vmul.f32 0.088388346, %v1395_v5  ;;  %v1400_v44 = vpop.f32.mrb[27].mxu0 }
 0x207   : > { %v1518_v1 = vadd.f32 %v1517_v63, %v6514_v21  ;;  %v1519_v2 = vpop.f32.mrb[29].mxu1  ;;  %5094 = vmatpush3.bf16.xpose.msra.mxu0 %v1764_v53  ;;  %v4930_v51 = vpack.c.bf16 %v1397_v31, %v1395_v5  ;;  %v6690_v52 = vmul.f32 0.088388346, %v1397_v31 }
 0x208   : > { %v1520_v12 = vadd.f32 %v1519_v2, %v6517_v22  ;;  %v1521_v14 = vpop.f32.mrb[30].mxu1 }
 0x209   : > { %v1522_v18 = vadd.f32 %v1521_v14, %v6514_v21  ;;  %v1523_v19 = vpop.f32.mrb[31].mxu1  ;;  %v1399_v21 = vadd.f32 %v1398_v35, %v6537_v38  ;;  %1747 = vst [vmem:[%s6556_s21 + $0x60] sm:$0xff] %v4930_v51  ;;  %v1404_v63 = vpop.f32.mrb[28].mxu0 }
 0x20a   : > { %v4948_v26 = vpack.c.bf16 %v1520_v12, %v1518_v1  ;;  %v1524_v27 = vadd.f32 %v1523_v19, %v6517_v22  ;;  %v1401_v22 = vadd.f32 %v1400_v44, %v6542_v40  ;;  %v1406_v2 = vpop.f32.mrb[29].mxu0 }
 0x20b   : > { %v1765_v42 = vpack.c.bf16 %v1522_v18, %v1518_v1  ;;  %v6692_v53 = vmul.f32 0.088388346, %v1399_v21  ;;  %v1405_v1 = vadd.f32 %v1404_v63, %v6537_v38  ;;  %v1407_v14 = vadd.f32 %v1406_v2, %v6542_v40  ;;  %v1408_v16 = vpop.f32.mrb[30].mxu0 }
 0x20c   : > { %1861 = vst [vmem:[%s6532_s22 + $0x70] sm:$0xff] %v4948_v26  ;;  %v1766_v48 = vpack.c.bf16 %v1524_v27, %v1520_v12  ;;  %v4949_v49 = vpack.c.bf16 %v1524_v27, %v1522_v18  ;;  %v4931_v54 = vpack.c.bf16 %v1401_v22, %v1399_v21  ;;  %v1890_v57 = vmul.f32 0.088388346, %v1401_v22  ;;  %v1410_v24 = vpop.f32.mrb[31].mxu0 }
 0x20d   : > { %5031 = vmatprep.subr.bf16.mxu1 %v1765_v42  ;;  %v1907_v60 = vpack.c.bf16 %v6692_v53, %v6686_v43  ;;  %v808_v12 = vsub.s32 4, %v6504_v3  ;;  %v812_v18 = vsub.s32 5, %v6504_v3  ;;  %v1891_v19 = vmul.f32 0.088388346, %v1405_v1 }
 0x20e   : > { %1862 = vst [vmem:[%s6532_s22 + $0x78] sm:$0xff] %v4949_v49  ;;  %5032 = vmatpush3.bf16.xpose.msra.mxu1 %v1765_v42  ;;  %5095 = vmatprep.subr.bf16.mxu0 %v1766_v48  ;;  %1748 = vst [vmem:[%s6556_s21 + $0x68] sm:$0xff] %v4931_v54  ;;  %v1908_v4 = vpack.c.bf16 %v1890_v57, %v6690_v52  ;;  %v1409_v5 = vadd.f32 %v1408_v16, %v6537_v38  ;;  %v1892_v27 = vmul.f32 0.088388346, %v1407_v14 }
 0x20f   : > { %5096 = vmatpush3.bf16.xpose.msra.mxu0 %v1766_v48  ;;  %v4932_v26 = vpack.c.bf16 %v1407_v14, %v1405_v1  ;;  %v1411_v31 = vadd.f32 %v1410_v24, %v6542_v40  ;;  %v6711_v42 = vrot.slane %v6510_v13, %v808_v12  ;;  %v6721_v40 = vrot.slane %v6510_v13, %v812_v18 }
 0x210   : > { %v1893_v35 = vmul.f32 0.088388346, %v1409_v5 }
 0x211   : > { %1749 = vst [vmem:[%s6556_s21 + $0x70] sm:$0xff] %v4932_v26  ;;  %v4933_v3 = vpack.c.bf16 %v1411_v31, %v1409_v5  ;;  %v1894_v38 = vmul.f32 0.088388346, %v1411_v31 }
 0x212   : > { %v1909_v15 = vpack.c.bf16 %v1893_v35, %v1891_v19 }
 0x213   : > { %1750 = vst [vmem:[%s6556_s21 + $0x78] sm:$0xff] %v4933_v3  ;;  %v1910_v29 = vpack.c.bf16 %v1894_v38, %v1892_v27 }
 0x215   : > { %5034 = vmatmul.mubr.bf16.vlgmr.msra.gmra.mrb[32].mxu1 %v1897_v37  ;;  %v1560_v37 = vpop.f32.mrb[32].mxu0 }
 0x216   : > { %5037 = vmatprep.mubr.bf16.mxu1 %v1899_v7  ;;  %5098 = vmatmul.mubr.bf16.vlgmr.msra.gmra.mrb[64].mxu0 %v1898_v47  ;;  %v1561_v55 = vadd.f32 %v1560_v37, %v6711_v42  ;;  %v1562_v62 = vpop.f32.mrb[33].mxu0 }
 0x217   : > { %5101 = vmatprep.mubr.bf16.mxu0 %v1900_v17  ;;  %v1563_v28 = vadd.f32 %v1562_v62, %v6721_v40  ;;  %v1564_v41 = vpop.f32.mrb[34].mxu0 }
 0x218   : > { %v1565_v47 = vadd.f32 %v1564_v41, %v6711_v42  ;;  %v1566_v7 = vpop.f32.mrb[35].mxu0 }
 0x219   : > { %v1567_v13 = vadd.f32 %v1566_v7, %v6721_v40  ;;  %v1570_v17 = vpop.f32.mrb[36].mxu0 }
 0x21a   : > { %v1911_v61 = vpack.c.bf16 %v1565_v47, %v1561_v55  ;;  %v1571_v23 = vadd.f32 %v1570_v17, %v6711_v42  ;;  %v1572_v34 = vpop.f32.mrb[37].mxu0 }
 0x21b   : > { %v6740_v6 = vpack.c.bf16 %v1567_v13, %v1563_v28  ;;  %v1574_v0 = vpop.f32.mrb[38].mxu0 }
 0x21c   : > { %5049 = vmatprep.subr.bf16.mxu1 %v1911_v61  ;;  %v1575_v11 = vadd.f32 %v1574_v0, %v6711_v42 }
 0x21d   : > { %5038 = vmatmul.mubr.bf16.gmra.mrb[36].mxu1 %v1901_v46  ;;  %v1573_v46 = vadd.f32 %v1572_v34, %v6721_v40 }
 0x21e   : > { %5041 = vmatprep.mubr.bf16.mxu1 %v1903_v36  ;;  %5102 = vmatmul.mubr.bf16.gmra.mrb[68].mxu0 %v1902_v56  ;;  %v1576_v36 = vpop.f32.mrb[39].mxu0  ;;  %v1913_v45 = vpack.c.bf16 %v1575_v11, %v1571_v23 }
 0x21f   : > { %5105 = vmatprep.mubr.bf16.mxu0 %v1904_v39  ;;  %5050 = vmatpush3.bf16.msra.mxu1 %v1911_v61  ;;  %v1577_v32 = vadd.f32 %v1576_v36, %v6721_v40 }
 0x220   : > { %5051 = vmatprep.subr.bf16.mxu1 %v1913_v45 }
 0x221   : > { %v6755_v56 = vpack.c.bf16 %v1577_v32, %v1573_v46  ;;  %v1580_v10 = vpop.f32.mrb[40].mxu0 }
 0x222   : > { %v1581_v20 = vadd.f32 %v1580_v10, %v6711_v42  ;;  %v1582_v39 = vpop.f32.mrb[41].mxu0 }
 0x223   : > { %5052 = vmatpush3.bf16.msra.mxu1 %v1913_v45  ;;  %v1583_v43 = vadd.f32 %v1582_v39, %v6721_v40  ;;  %v1584_v21 = vpop.f32.mrb[42].mxu0 }
 0x224   : > { %v1585_v50 = vadd.f32 %v1584_v21, %v6711_v42  ;;  %v1586_v59 = vpop.f32.mrb[43].mxu0 }
 0x225   : > { %5042 = vmatmul.mubr.bf16.gmra.mrb[40].mxu1 %v1905_v9  ;;  %v1587_v9 = vadd.f32 %v1586_v59, %v6721_v40 }
 0x226   : > { %5045 = vmatprep.mubr.bf16.mxu1 %v1907_v60  ;;  %5106 = vmatmul.mubr.bf16.gmra.mrb[72].mxu0 %v1906_v25  ;;  %v1915_v58 = vpack.c.bf16 %v1585_v50, %v1581_v20 }
 0x227   : > { %5109 = vmatprep.mubr.bf16.mxu0 %v1908_v4  ;;  %v6761_v8 = vpack.c.bf16 %v1587_v9, %v1583_v43 }
 0x228   : > { %5053 = vmatprep.subr.bf16.mxu1 %v1915_v58 }
 0x229   : > { %v1590_v25 = vpop.f32.mrb[44].mxu0  ;;  %5054 = vmatpush3.bf16.msra.mxu1 %v1915_v58 }
 0x22a   : > { %v1591_v44 = vadd.f32 %v1590_v25, %v6711_v42  ;;  %v1592_v48 = vpop.f32.mrb[45].mxu0 }
 0x22b   : > { %v1593_v49 = vadd.f32 %v1592_v48, %v6721_v40  ;;  %v1594_v51 = vpop.f32.mrb[46].mxu0 }
 0x22c   : > { %v1595_v52 = vadd.f32 %v1594_v51, %v6711_v42  ;;  %v1596_v53 = vpop.f32.mrb[47].mxu0 }
 0x22d   : > { %5046 = vmatmul.mubr.bf16.gmra.mrb[44].mxu1 %v1909_v15  ;;  %v1597_v22 = vadd.f32 %v1596_v53, %v6721_v40 }
 0x22e   : > { %5110 = vmatmul.mubr.bf16.gmra.mrb[76].mxu0 %v1910_v29  ;;  %v1917_v54 = vpack.c.bf16 %v1595_v52, %v1591_v44 }
 0x22f   : > { %v6767_v57 = vpack.c.bf16 %v1597_v22, %v1593_v49 }
 0x230   : > { %5055 = vmatprep.subr.bf16.mxu1 %v1917_v54 }
 0x231   : > { %v1600_v60 = vpop.f32.mrb[48].mxu0  ;;  %5056 = vmatpush3.bf16.msra.mxu1 %v1917_v54 }
 0x232   : > { %v1601_v63 = vadd.f32 %v1600_v60, %v6711_v42  ;;  %v1602_v1 = vpop.f32.mrb[49].mxu0 }
 0x233   : > { %v1603_v2 = vadd.f32 %v1602_v1, %v6721_v40  ;;  %v1604_v4 = vpop.f32.mrb[50].mxu0 }
 0x234   : > { %v1605_v12 = vadd.f32 %v1604_v4, %v6711_v42  ;;  %v1606_v14 = vpop.f32.mrb[51].mxu0 }
 0x235   : > { %v1607_v16 = vadd.f32 %v1606_v14, %v6721_v40 }
 0x236   : > { %v1919_v18 = vpack.c.bf16 %v1605_v12, %v1601_v63 }
 0x237   : > { %v6773_v19 = vpack.c.bf16 %v1607_v16, %v1603_v2 }
 0x238   : > { %5057 = vmatprep.subr.bf16.mxu1 %v1919_v18 }
 0x239   : > { %v1610_v5 = vpop.f32.mrb[52].mxu0  ;;  %5058 = vmatpush3.bf16.msra.mxu1 %v1919_v18 }
 0x23a   : > { %v1611_v24 = vadd.f32 %v1610_v5, %v6711_v42  ;;  %v1612_v26 = vpop.f32.mrb[53].mxu0 }
 0x23b   : > { %v1613_v27 = vadd.f32 %v1612_v26, %v6721_v40  ;;  %v1614_v31 = vpop.f32.mrb[54].mxu0 }
 0x23c   : > { %v1615_v35 = vadd.f32 %v1614_v31, %v6711_v42  ;;  %v1616_v3 = vpop.f32.mrb[55].mxu0 }
 0x23d   : > { %v1617_v38 = vadd.f32 %v1616_v3, %v6721_v40 }
 0x23e   : > { %v1921_v15 = vpack.c.bf16 %v1615_v35, %v1611_v24 }
 0x23f   : > { %v6779_v29 = vpack.c.bf16 %v1617_v38, %v1613_v27 }
 0x240   : > { %5059 = vmatprep.subr.bf16.mxu1 %v1921_v15 }
 0x241   : > { %v1620_v37 = vpop.f32.mrb[56].mxu0  ;;  %5060 = vmatpush3.bf16.msra.mxu1 %v1921_v15 }
 0x242   : > { %v1621_v55 = vadd.f32 %v1620_v37, %v6711_v42  ;;  %v1622_v62 = vpop.f32.mrb[57].mxu0 }
 0x243   : > { %v1623_v28 = vadd.f32 %v1622_v62, %v6721_v40  ;;  %v1624_v41 = vpop.f32.mrb[58].mxu0 }
 0x244   : > { %v1625_v47 = vadd.f32 %v1624_v41, %v6711_v42  ;;  %v1626_v7 = vpop.f32.mrb[59].mxu0 }
 0x245   : > { %v1627_v13 = vadd.f32 %v1626_v7, %v6721_v40 }
 0x246   : > { %v1923_v61 = vpack.c.bf16 %v1625_v47, %v1621_v55 }
 0x247   : > { %v6785_v17 = vpack.c.bf16 %v1627_v13, %v1623_v28 }
 0x248   : > { %5061 = vmatprep.subr.bf16.mxu1 %v1923_v61 }
 0x249   : > { %v1630_v23 = vpop.f32.mrb[60].mxu0  ;;  %5062 = vmatpush3.bf16.msra.mxu1 %v1923_v61 }
 0x24a   : > { %v1631_v34 = vadd.f32 %v1630_v23, %v6711_v42  ;;  %v1632_v46 = vpop.f32.mrb[61].mxu0 }
 0x24b   : > { %v1633_v0 = vadd.f32 %v1632_v46, %v6721_v40  ;;  %v1634_v11 = vpop.f32.mrb[62].mxu0 }
 0x24c   : > { %v1635_v36 = vadd.f32 %v1634_v11, %v6711_v42  ;;  %v1636_v32 = vpop.f32.mrb[63].mxu0 }
 0x24d   : > { %v1637_v45 = vadd.f32 %v1636_v32, %v6721_v40 }
 0x24e   : > { %v1925_v10 = vpack.c.bf16 %v1635_v36, %v1631_v34 }
 0x24f   : > { %v6791_v20 = vpack.c.bf16 %v1637_v45, %v1633_v0 }
 0x250   : > { %5063 = vmatprep.subr.bf16.mxu1 %v1925_v10 }
 0x251   : > { %5064 = vmatpush3.bf16.msra.mxu1 %v1925_v10 }
 0x252   : > { %5113 = vmatprep.subr.bf16.mxu1 %v6740_v6 }
 0x2e8   : > { %v6794_v39 = vpop.f32.mrb[32].mxu1 }
 0x2e9   : > { %v6796_v43 = vpop.f32.mrb[64].mxu0  ;;  %2028 = vmax.xlane.f32.xlu1 %v6794_v39  ;;  %v6799_v21 = vpop.f32.mrb[33].mxu1 }
 0x2ea   : > { %v6801_v50 = vpop.f32.mrb[65].mxu0  ;;  %2024 = vmax.xlane.f32.xlu0 %v6799_v21  ;;  %v6804_v42 = vpop.f32.mrb[34].mxu1 }
 0x2eb   : > { %v6806_v40 = vpop.f32.mrb[35].mxu1  ;;  %v6808_v59 = vpop.f32.mrb[66].mxu0 }
 0x2ec   : > { %v6810_v9 = vpop.f32.mrb[67].mxu0 }
 0x2ed   : > { %2030 = vmax.xlane.f32.xlu1 %v6804_v42 }
 0x2ee   : > { %2026 = vmax.xlane.f32.xlu0 %v6806_v40 }
 0x2f0   : > { %v6814_v58 = vpop.f32.mrb[36].mxu1 }
 0x2f1   : > { %v6816_v25 = vpop.f32.mrb[37].mxu1  ;;  %v6818_v44 = vpop.f32.mrb[68].mxu0 }
 0x2f2   : > { %v6820_v48 = vpop.f32.mrb[69].mxu0  ;;  %2032 = vmax.xlane.f32.xlu0 %v6816_v25  ;;  %v6823_v49 = vpop.f32.mrb[38].mxu1 }
 0x2f3   : > { %v6825_v51 = vpop.f32.mrb[39].mxu1  ;;  %v6827_v52 = vpop.f32.mrb[70].mxu0 }
 0x2f4   : > { %v6829_v53 = vpop.f32.mrb[71].mxu0  ;;  %2034 = vmax.xlane.f32.xlu1 %v6825_v51 }
 0x2f6   : > { %2036 = vmax.xlane.f32.xlu0 %v6814_v58 }
 0x2f8   : > { %2038 = vmax.xlane.f32.xlu1 %v6823_v49  ;;  %v6834_v22 = vpop.f32.mrb[40].mxu1 }
 0x2f9   : > { %v6836_v54 = vpop.f32.mrb[41].mxu1  ;;  %v6838_v60 = vpop.f32.mrb[72].mxu0 }
 0x2fa   : > { %v6840_v63 = vpop.f32.mrb[73].mxu0  ;;  %2040 = vmax.xlane.f32.xlu0 %v6836_v54  ;;  %v6843_v1 = vpop.f32.mrb[42].mxu1 }
 0x2fb   : > { %v6845_v2 = vpop.f32.mrb[43].mxu1  ;;  %v6847_v4 = vpop.f32.mrb[74].mxu0 }
 0x2fc   : > { %v6849_v12 = vpop.f32.mrb[75].mxu0  ;;  %2042 = vmax.xlane.f32.xlu1 %v6845_v2 }
 0x2fe   : > { %2044 = vmax.xlane.f32.xlu0 %v6834_v22 }
 0x300   : > { %2046 = vmax.xlane.f32.xlu1 %v6843_v1  ;;  %v6854_v14 = vpop.f32.mrb[44].mxu1 }
 0x301   : > { %v6856_v16 = vpop.f32.mrb[45].mxu1  ;;  %v6858_v18 = vpop.f32.mrb[76].mxu0 }
 0x302   : > { %v6860_v5 = vpop.f32.mrb[77].mxu0  ;;  %2048 = vmax.xlane.f32.xlu0 %v6856_v16  ;;  %v6863_v24 = vpop.f32.mrb[46].mxu1 }
 0x303   : > { %v6865_v26 = vpop.f32.mrb[47].mxu1  ;;  %v6867_v27 = vpop.f32.mrb[78].mxu0 }
 0x304   : > { %v6869_v31 = vpop.f32.mrb[79].mxu0  ;;  %2050 = vmax.xlane.f32.xlu1 %v6865_v26 }
 0x306   : > { %2052 = vmax.xlane.f32.xlu0 %v6854_v14 }
 0x308   : > { %2054 = vmax.xlane.f32.xlu1 %v6863_v24 }
 0x30a   : > { %2370 = vmax.xlane.f32.xlu0 %v6801_v50 }
 0x30c   : > { %2372 = vmax.xlane.f32.xlu1 %v6810_v9 }
 0x30e   : > { %2374 = vmax.xlane.f32.xlu0 %v6796_v43 }
 0x310   : > { %2376 = vmax.xlane.f32.xlu1 %v6808_v59 }
 0x312   : > { %2378 = vmax.xlane.f32.xlu0 %v6820_v48 }
 0x314   : > { %2380 = vmax.xlane.f32.xlu1 %v6829_v53 }
 0x316   : > { %2382 = vmax.xlane.f32.xlu0 %v6818_v44 }
 0x318   : > { %2384 = vmax.xlane.f32.xlu1 %v6827_v52 }
 0x31a   : > { %2386 = vmax.xlane.f32.xlu0 %v6840_v63 }
 0x31c   : > { %2388 = vmax.xlane.f32.xlu1 %v6849_v12 }
 0x31e   : > { %2390 = vmax.xlane.f32.xlu0 %v6838_v60 }
 0x320   : > { %2392 = vmax.xlane.f32.xlu1 %v6847_v4 }
 0x322   : > { %2394 = vmax.xlane.f32.xlu0 %v6860_v5 }
 0x324   : > { %2396 = vmax.xlane.f32.xlu1 %v6869_v31 }
 0x326   : > { %2398 = vmax.xlane.f32.xlu0 %v6858_v18 }
 0x328   : > { %2400 = vmax.xlane.f32.xlu1 %v6867_v27 }
 0x376   : > { %v2029_v35 = vpop.xlane.xlu1 %2028 }
 0x377   : > { %v2058_v3 = vsub.f32 %v6794_v39, %v2029_v35  ;;  %v2025_v38 = vpop.xlane.xlu0 %2024 }
 0x378   : > { %v2056_v15 = vsub.f32 %v6799_v21, %v2025_v38 }
 0x379   : > { %v2076_v37 = vmul.f32 1.442695, %v2058_v3 }
 0x37a   : > { %v2072_v55 = vmul.f32 1.442695, %v2056_v15  ;;  %v2031_v62 = vpop.xlane.xlu1 %2030 }
 0x37b   : > { %v2059_v28 = vsub.f32 %v6804_v42, %v2031_v62  ;;  %v2027_v41 = vpop.xlane.xlu0 %2026  ;;  %5572 = vpow2.f32 %v2076_v37 }
 0x37c   : > { %v2057_v47 = vsub.f32 %v6806_v40, %v2027_v41  ;;  %5574 = vpow2.f32 %v2072_v55 }
 0x37d   : > { %v2078_v7 = vmul.f32 1.442695, %v2059_v28 }
 0x37e   : > { %v2074_v13 = vmul.f32 1.442695, %v2057_v47 }
 0x37f   : > { %5576 = vpow2.f32 %v2078_v7  ;;  %v2033_v61 = vpop.xlane.xlu0 %2032 }
 0x380   : > { %5578 = vpow2.f32 %v2074_v13  ;;  %v2060_v23 = vsub.f32 %v6816_v25, %v2033_v61 }
 0x381   : > { %v2035_v34 = vpop.xlane.xlu1 %2034 }
 0x382   : > { %v2080_v46 = vmul.f32 1.442695, %v2060_v23  ;;  %v2061_v0 = vsub.f32 %v6825_v51, %v2035_v34 }
 0x383   : > { %v2037_v11 = vpop.xlane.xlu0 %2036 }
 0x384   : > { %v2082_v36 = vmul.f32 1.442695, %v2061_v0  ;;  %v2062_v32 = vsub.f32 %v6814_v58, %v2037_v11  ;;  %5580 = vpow2.f32 %v2080_v46 }
 0x385   : > { %v2039_v45 = vpop.xlane.xlu1 %2038  ;;  %v6898_v21 = vpop.eup %5572 }
 0x386   : > { %5582 = vpow2.f32 %v2082_v36  ;;  %v2084_v10 = vmul.f32 1.442695, %v2062_v32  ;;  %v2063_v39 = vsub.f32 %v6823_v49, %v2039_v45  ;;  %v6900_v40 = vpop.eup %5574 }
 0x387   : > { %v2041_v42 = vpop.xlane.xlu0 %2040 }
 0x388   : > { %v2086_v25 = vmul.f32 1.442695, %v2063_v39  ;;  %v2064_v35 = vsub.f32 %v6836_v54, %v2041_v42  ;;  %5584 = vpow2.f32 %v2084_v10 }
 0x389   : > { %v6903_v3 = vpop.eup %5576  ;;  %v2043_v51 = vpop.xlane.xlu1 %2042 }
 0x38a   : > { %v6905_v38 = vpop.eup %5578  ;;  %5586 = vpow2.f32 %v2086_v25  ;;  %v2088_v58 = vmul.f32 1.442695, %v2064_v35  ;;  %v2065_v15 = vsub.f32 %v6845_v2, %v2043_v51  ;;  %v2137_v49 = vpack.c.bf16 %v6903_v3, %v6898_v21 }
 0x38b   : > { %v2045_v37 = vpop.xlane.xlu0 %2044  ;;  %v2136_v55 = vpack.c.bf16 %v6905_v38, %v6900_v40 }
 0x38c   : > { %v2090_v62 = vmul.f32 1.442695, %v2065_v15  ;;  %v2066_v54 = vsub.f32 %v6834_v22, %v2045_v37  ;;  %5588 = vpow2.f32 %v2088_v58 }
 0x38d   : > { %5065 = vmatprep.mubr.bf16.mxu1 %v2136_v55  ;;  %v2047_v28 = vpop.xlane.xlu1 %2046 }
 0x38e   : > { %5590 = vpow2.f32 %v2090_v62  ;;  %v2092_v41 = vmul.f32 1.442695, %v2066_v54  ;;  %v2067_v47 = vsub.f32 %v6843_v1, %v2047_v28  ;;  %5066 = vmatmul.mubr.bf16.vlgmr.msra.gmra.mrb[48].mxu1 %v2137_v49  ;;  %v6914_v7 = vpop.eup %5580 }
 0x38f   : > { %5114 = vmatpush3.bf16.msra.mxu1 %v6740_v6  ;;  %v2049_v2 = vpop.xlane.xlu0 %2048 }
 0x390   : > { %v6917_v13 = vpop.eup %5582  ;;  %v2094_v61 = vmul.f32 1.442695, %v2067_v47  ;;  %5115 = vmatprep.subr.bf16.mxu1 %v6755_v56  ;;  %v2068_v22 = vsub.f32 %v6856_v16, %v2049_v2  ;;  %5592 = vpow2.f32 %v2092_v41 }
 0x391   : > { %v2051_v23 = vpop.xlane.xlu1 %2050  ;;  %v2138_v34 = vpack.c.bf16 %v6917_v13, %v6914_v7 }
 0x392   : > { %5594 = vpow2.f32 %v2094_v61  ;;  %v2096_v1 = vmul.f32 1.442695, %v2068_v22  ;;  %v2069_v46 = vsub.f32 %v6865_v26, %v2051_v23  ;;  %v6924_v0 = vpop.eup %5584 }
 0x393   : > { %5116 = vmatpush3.bf16.msra.mxu1 %v6755_v56  ;;  %5069 = vmatprep.mubr.bf16.mxu1 %v2138_v34  ;;  %v2053_v6 = vpop.xlane.xlu0 %2052 }
 0x394   : > { %v6927_v11 = vpop.eup %5586  ;;  %v2098_v36 = vmul.f32 1.442695, %v2069_v46  ;;  %5117 = vmatprep.subr.bf16.mxu1 %v6761_v8  ;;  %v2070_v16 = vsub.f32 %v6854_v14, %v2053_v6  ;;  %5596 = vpow2.f32 %v2096_v1 }
 0x395   : > { %v2055_v32 = vpop.xlane.xlu1 %2054  ;;  %v2139_v45 = vpack.c.bf16 %v6927_v11, %v6924_v0 }
 0x396   : > { %5598 = vpow2.f32 %v2098_v36  ;;  %v2100_v26 = vmul.f32 1.442695, %v2070_v16  ;;  %v2071_v10 = vsub.f32 %v6863_v24, %v2055_v32  ;;  %v6934_v39 = vpop.eup %5588 }
 0x397   : > { %5118 = vmatpush3.bf16.msra.mxu1 %v6761_v8  ;;  %v2371_v56 = vpop.xlane.xlu0 %2370 }
 0x398   : > { %v6937_v42 = vpop.eup %5590  ;;  %v2102_v25 = vmul.f32 1.442695, %v2071_v10  ;;  %5070 = vmatmul.mubr.bf16.gmra.mrb[52].mxu1 %v2139_v45  ;;  %5119 = vmatprep.subr.bf16.mxu1 %v6767_v57  ;;  %v2402_v14 = vsub.f32 %v6801_v50, %v2371_v56  ;;  %5600 = vpow2.f32 %v2100_v26 }
 0x399   : > { %v2373_v35 = vpop.xlane.xlu1 %2372  ;;  %v2140_v51 = vpack.c.bf16 %v6937_v42, %v6934_v39 }
 0x39a   : > { %5602 = vpow2.f32 %v2102_v25  ;;  %v2418_v24 = vmul.f32 1.442695, %v2402_v14  ;;  %v2403_v58 = vsub.f32 %v6810_v9, %v2373_v35  ;;  %v6944_v15 = vpop.eup %5592 }
 0x39b   : > { %5120 = vmatpush3.bf16.msra.mxu1 %v6767_v57  ;;  %5073 = vmatprep.mubr.bf16.mxu1 %v2140_v51  ;;  %v2375_v8 = vpop.xlane.xlu0 %2374 }
 0x39c   : > { %v6947_v49 = vpop.eup %5594  ;;  %5604 = vpow2.f32 %v2418_v24  ;;  %v2420_v37 = vmul.f32 1.442695, %v2403_v58  ;;  %5121 = vmatprep.subr.bf16.mxu1 %v6773_v19  ;;  %v2404_v50 = vsub.f32 %v6796_v43, %v2375_v8 }
 0x39d   : > { %v2377_v55 = vpop.xlane.xlu1 %2376  ;;  %v2141_v62 = vpack.c.bf16 %v6947_v49, %v6944_v15 }
 0x39e   : > { %5606 = vpow2.f32 %v2420_v37  ;;  %v2422_v9 = vmul.f32 1.442695, %v2404_v50  ;;  %v2405_v54 = vsub.f32 %v6808_v59, %v2377_v55  ;;  %v6954_v28 = vpop.eup %5596 }
 0x39f   : > { %5122 = vmatpush3.bf16.msra.mxu1 %v6773_v19  ;;  %v2379_v57 = vpop.xlane.xlu0 %2378 }
 0x3a0   : > { %v6957_v41 = vpop.eup %5598  ;;  %v2424_v47 = vmul.f32 1.442695, %v2405_v54  ;;  %5074 = vmatmul.mubr.bf16.gmra.mrb[56].mxu1 %v2141_v62  ;;  %5123 = vmatprep.subr.bf16.mxu1 %v6779_v29  ;;  %v2406_v43 = vsub.f32 %v6820_v48, %v2379_v57  ;;  %5608 = vpow2.f32 %v2422_v9 }
 0x3a1   : > { %v2381_v2 = vpop.xlane.xlu1 %2380  ;;  %v2142_v61 = vpack.c.bf16 %v6957_v41, %v6954_v28 }
 0x3a2   : > { %5610 = vpow2.f32 %v2424_v47  ;;  %v2426_v59 = vmul.f32 1.442695, %v2406_v43  ;;  %v2407_v22 = vsub.f32 %v6829_v53, %v2381_v2  ;;  %v6964_v23 = vpop.eup %5600 }
 0x3a3   : > { %5124 = vmatpush3.bf16.msra.mxu1 %v6779_v29  ;;  %v2383_v19 = vpop.xlane.xlu0 %2382  ;;  %5077 = vmatprep.mubr.bf16.mxu1 %v2142_v61 }
 0x3a4   : > { %v6967_v34 = vpop.eup %5602  ;;  %v2428_v1 = vmul.f32 1.442695, %v2407_v22  ;;  %5125 = vmatprep.subr.bf16.mxu1 %v6785_v17  ;;  %v2408_v48 = vsub.f32 %v6818_v44, %v2383_v19  ;;  %5612 = vpow2.f32 %v2426_v59 }
 0x3a5   : > { %v2385_v46 = vpop.xlane.xlu1 %2384  ;;  %v2143_v6 = vpack.c.bf16 %v6967_v34, %v6964_v23 }
 0x3a6   : > { %v5605_v36 = vpop.eup %5604  ;;  %5614 = vpow2.f32 %v2428_v1  ;;  %v2430_v53 = vmul.f32 1.442695, %v2408_v48  ;;  %v2409_v16 = vsub.f32 %v6827_v52, %v2385_v46 }
 0x3a7   : > { %5126 = vmatpush3.bf16.msra.mxu1 %v6785_v17  ;;  %2450 = vadd.xlane.f32.xlu0 %v5605_v36  ;;  %v2387_v29 = vpop.xlane.xlu0 %2386 }
 0x3a8   : > { %v5607_v32 = vpop.eup %5606  ;;  %v2432_v45 = vmul.f32 1.442695, %v2409_v16  ;;  %5127 = vmatprep.subr.bf16.mxu1 %v6791_v20  ;;  %v2410_v44 = vsub.f32 %v6840_v63, %v2387_v29  ;;  %5078 = vmatmul.mubr.bf16.gmra.mrb[60].mxu1 %v2143_v6  ;;  %5616 = vpow2.f32 %v2430_v53  ;;  %v5433_v53 = vld [vmem:[#allocation7 + $0x14] ss:$8 sps:$4 sm:$0xff]   ;;  %v5431_v16 = vld [vmem:[#allocation7 + $0x10] ss:$8 sps:$4 sm:$0xff]  }
 0x3a9   : > { %2452 = vadd.xlane.f32.xlu1 %v5607_v32  ;;  %v2389_v26 = vpop.xlane.xlu1 %2388  ;;  %v2482_v10 = vpack.c.bf16 %v5607_v32, %v5605_v36  ;;  %v5437_v29 = vld [vmem:[#allocation7 + $0x30] ss:$8 sps:$4 sm:$0xff]   ;;  %v5440_v32 = vld [vmem:[#allocation7 + $0x40] ss:$8 sps:$4 sm:$0xff]  }
 0x3aa   : > { %5618 = vpow2.f32 %v2432_v45  ;;  %v2434_v56 = vmul.f32 1.442695, %v2410_v44  ;;  %v2411_v25 = vsub.f32 %v6849_v12, %v2389_v26  ;;  %v5609_v52 = vpop.eup %5608  ;;  %v5443_v45 = vld [vmem:[#allocation7 + $0x50] ss:$8 sps:$4 sm:$0xff]   ;;  %v5446_v44 = vld [vmem:[#allocation7 + $0x60] ss:$8 sps:$4 sm:$0xff]  }
 0x3ab   : > { %5128 = vmatpush3.bf16.msra.mxu1 %v6791_v20  ;;  %2104 = vadd.xlane.f32.xlu0 %v6900_v40  ;;  %v2391_v17 = vpop.xlane.xlu0 %2390  ;;  %v5449_v26 = vld [vmem:[#allocation7 + $0x70] ss:$8 sps:$4 sm:$0xff]  }
 0x3ac   : > { %v5611_v14 = vpop.eup %5610  ;;  %v2436_v35 = vmul.f32 1.442695, %v2411_v25  ;;  %v2412_v51 = vsub.f32 %v6838_v60, %v2391_v17  ;;  %5129 = vmatprep.mubr.bf16.mxu1 %v2482_v10  ;;  %5620 = vpow2.f32 %v2434_v56  ;;  %v5452_v10 = vld [vmem:[#allocation7 + $0x80] ss:$8 sps:$4 sm:$0xff]   ;;  %v5457_v56 = vld [vmem:[#allocation7 + $0x94] ss:$8 sps:$4 sm:$0xff]  }
 0x3ad   : > { %2106 = vadd.xlane.f32.xlu1 %v6905_v38  ;;  %v2393_v63 = vpop.xlane.xlu1 %2392  ;;  %v2483_v24 = vpack.c.bf16 %v5611_v14, %v5609_v52  ;;  %v5455_v25 = vld [vmem:[#allocation7 + $0x90] ss:$8 sps:$4 sm:$0xff]   ;;  %v5458_v17 = vld [vmem:[#allocation7 + $0xa0] ss:$8 sps:$4 sm:$0xff]  }
 0x3ae   : > { %5622 = vpow2.f32 %v2436_v35  ;;  %v2438_v58 = vmul.f32 1.442695, %v2412_v51  ;;  %v2413_v12 = vsub.f32 %v6847_v4, %v2393_v63  ;;  %v5613_v8 = vpop.eup %5612  ;;  %v5464_v35 = vld [vmem:[#allocation7 + $0xc0] ss:$8 sps:$4 sm:$0xff]   ;;  %v5469_v51 = vld [vmem:[#allocation7 + $0xd4] ss:$8 sps:$4 sm:$0xff]  }
 0x3af   : > { %2454 = vadd.xlane.f32.xlu0 %v5609_v52  ;;  %v2395_v20 = vpop.xlane.xlu0 %2394  ;;  %v5460_v52 = vld [vmem:[#allocation7 + $0xa4] ss:$8 sps:$4 sm:$0xff]   ;;  %v5467_v63 = vld [vmem:[#allocation7 + $0xd0] ss:$8 sps:$4 sm:$0xff]  }
 0x3b0   : > { %v5615_v37 = vpop.eup %5614  ;;  %v2440_v40 = vmul.f32 1.442695, %v2413_v12  ;;  %v2414_v50 = vsub.f32 %v6860_v5, %v2395_v20  ;;  %5130 = vmatmul.mubr.bf16.vlgmr.msra.gmra.mrb[64].mxu1 %v2483_v24  ;;  %5624 = vpow2.f32 %v2438_v58  ;;  %v5472_v24 = vld [vmem:[#allocation7 + $0xe4] ss:$8 sps:$4 sm:$0xff]   ;;  %v5470_v58 = vld [vmem:[#allocation7 + $0xe0] ss:$8 sps:$4 sm:$0xff]  }
 0x3b1   : > { %2456 = vadd.xlane.f32.xlu1 %v5611_v14  ;;  %v2397_v60 = vpop.xlane.xlu1 %2396  ;;  %v2484_v55 = vpack.c.bf16 %v5615_v37, %v5613_v8  ;;  %v5461_v14 = vld [vmem:[#allocation7 + $0xb0] ss:$8 sps:$4 sm:$0xff]   ;;  %v5475_v12 = vld [vmem:[#allocation7 + $0xf4] ss:$8 sps:$4 sm:$0xff]  }
 0x3b2   : > { %5626 = vpow2.f32 %v2440_v40  ;;  %v2442_v38 = vmul.f32 1.442695, %v2414_v50  ;;  %v2415_v62 = vsub.f32 %v6869_v31, %v2397_v60  ;;  %v5617_v9 = vpop.eup %5616 }
 0x3b3   : > { %2108 = vadd.xlane.f32.xlu0 %v6898_v21  ;;  %v2399_v4 = vpop.xlane.xlu0 %2398  ;;  %5133 = vmatprep.mubr.bf16.mxu1 %v2484_v55 }
 0x3b4   : > { %v5619_v54 = vpop.eup %5618  ;;  %v2444_v57 = vmul.f32 1.442695, %v2415_v62  ;;  %v2416_v47 = vsub.f32 %v6858_v18, %v2399_v4  ;;  %5628 = vpow2.f32 %v2442_v38 }
 0x3b5   : > { %2110 = vadd.xlane.f32.xlu1 %v6903_v3  ;;  %v2401_v5 = vpop.xlane.xlu1 %2400  ;;  %v2485_v43 = vpack.c.bf16 %v5619_v54, %v5617_v9 }
 0x3b6   : > { %5630 = vpow2.f32 %v2444_v57  ;;  %v2446_v2 = vmul.f32 1.442695, %v2416_v47  ;;  %v2417_v61 = vsub.f32 %v6867_v27, %v2401_v5  ;;  %v5621_v59 = vpop.eup %5620 }
 0x3b7   : > { %2458 = vadd.xlane.f32.xlu0 %v5613_v8  ;;  %v5473_v8 = vld [vmem:[#allocation7 + $0xf0] ss:$8 sps:$4 sm:$0xff]  }
 0x3b8   : > { %v5623_v31 = vpop.eup %5622  ;;  %v2448_v22 = vmul.f32 1.442695, %v2417_v61  ;;  %5134 = vmatmul.mubr.bf16.gmra.mrb[68].mxu1 %v2485_v43  ;;  %5632 = vpow2.f32 %v2446_v2 }
 0x3b9   : > { %2460 = vadd.xlane.f32.xlu1 %v5615_v37  ;;  %v2486_v21 = vpack.c.bf16 %v5623_v31, %v5621_v59 }
 0x3ba   : > { %5634 = vpow2.f32 %v2448_v22  ;;  %v5625_v19 = vpop.eup %5624 }
 0x3bb   : > { %2112 = vadd.xlane.f32.xlu0 %v6914_v7  ;;  %5137 = vmatprep.mubr.bf16.mxu1 %v2486_v21  ;;  %v5430_v7 = vld [vmem:[#allocation7 + $0x4] ss:$8 sps:$4 sm:$0xff]  }
 0x3bc   : > { %v5627_v18 = vpop.eup %5626  ;;  %2839 = vmatprep.subr.bf16.mxu0 %v5430_v7 }
 0x3bd   : > { %2114 = vadd.xlane.f32.xlu1 %v6917_v13  ;;  %v2487_v3 = vpack.c.bf16 %v5627_v18, %v5625_v19  ;;  %v5428_v13 = vld [vmem:[#allocation7] ss:$8 sps:$4 sm:$0xff]  }
 0x3be   : > { %v5629_v1 = vpop.eup %5628  ;;  %2840 = vmatpush1.bf16.msra.mxu0 %v5428_v13 }
 0x3bf   : > { %2462 = vadd.xlane.f32.xlu0 %v5617_v9  ;;  %2841 = vmatprep.subr.bf16.mxu0 %v5433_v53 }
 0x3c0   : > { %v5631_v27 = vpop.eup %5630  ;;  %5138 = vmatmul.mubr.bf16.gmra.mrb[72].mxu1 %v2487_v3 }
 0x3c1   : > { %2464 = vadd.xlane.f32.xlu1 %v5619_v54  ;;  %v2488_v48 = vpack.c.bf16 %v5631_v27, %v5629_v1 }
 0x3c2   : > { %v5633_v46 = vpop.eup %5632  ;;  %2842 = vmatpush1.bf16.msra.mxu0 %v5431_v16 }
 0x3c3   : > { %2116 = vadd.xlane.f32.xlu0 %v6924_v0  ;;  %5141 = vmatprep.mubr.bf16.mxu1 %v2488_v48  ;;  %v5436_v0 = vld [vmem:[#allocation7 + $0x24] ss:$8 sps:$4 sm:$0xff]  }
 0x3c4   : > { %v5635_v6 = vpop.eup %5634  ;;  %2843 = vmatprep.subr.bf16.mxu0 %v5436_v0 }
 0x3c5   : > { %2118 = vadd.xlane.f32.xlu1 %v6927_v11  ;;  %v2489_v36 = vpack.c.bf16 %v5635_v6, %v5633_v46  ;;  %v5434_v11 = vld [vmem:[#allocation7 + $0x20] ss:$8 sps:$4 sm:$0xff]  }
 0x3c6   : > { %2844 = vmatpush1.bf16.msra.mxu0 %v5434_v11 }
 0x3c7   : > { %2466 = vadd.xlane.f32.xlu0 %v5621_v59 }
 0x3c8   : > { %5142 = vmatmul.mubr.bf16.gmra.mrb[76].mxu1 %v2489_v36 }
 0x3c9   : > { %2468 = vadd.xlane.f32.xlu1 %v5623_v31 }
 0x3cb   : > { %2120 = vadd.xlane.f32.xlu0 %v6934_v39  ;;  %v5439_v39 = vld [vmem:[#allocation7 + $0x34] ss:$8 sps:$4 sm:$0xff]  }
 0x3cc   : > { %2845 = vmatprep.subr.bf16.mxu0 %v5439_v39 }
 0x3cd   : > { %2122 = vadd.xlane.f32.xlu1 %v6937_v42  ;;  %2846 = vmatpush1.bf16.msra.mxu0 %v5437_v29  ;;  %v5442_v42 = vld [vmem:[#allocation7 + $0x44] ss:$8 sps:$4 sm:$0xff]  }
 0x3ce   : > { %2847 = vmatprep.subr.bf16.mxu0 %v5442_v42 }
 0x3cf   : > { %2470 = vadd.xlane.f32.xlu0 %v5625_v19 }
 0x3d1   : > { %2472 = vadd.xlane.f32.xlu1 %v5627_v18  ;;  %2848 = vmatpush1.bf16.msra.mxu0 %v5440_v32 }
 0x3d3   : > { %2124 = vadd.xlane.f32.xlu0 %v6944_v15  ;;  %v5445_v15 = vld [vmem:[#allocation7 + $0x54] ss:$8 sps:$4 sm:$0xff]  }
 0x3d4   : > { %2849 = vmatprep.subr.bf16.mxu0 %v5445_v15 }
 0x3d5   : > { %2126 = vadd.xlane.f32.xlu1 %v6947_v49  ;;  %2850 = vmatpush1.bf16.msra.mxu0 %v5443_v45  ;;  %v5448_v49 = vld [vmem:[#allocation7 + $0x64] ss:$8 sps:$4 sm:$0xff]  }
 0x3d6   : > { %2851 = vmatprep.subr.bf16.mxu0 %v5448_v49 }
 0x3d7   : > { %2474 = vadd.xlane.f32.xlu0 %v5629_v1 }
 0x3d9   : > { %2476 = vadd.xlane.f32.xlu1 %v5631_v27  ;;  %2852 = vmatpush1.bf16.msra.mxu0 %v5446_v44 }
 0x3db   : > { %2128 = vadd.xlane.f32.xlu0 %v6954_v28  ;;  %v5451_v28 = vld [vmem:[#allocation7 + $0x74] ss:$8 sps:$4 sm:$0xff]  }
 0x3dc   : > { %2853 = vmatprep.subr.bf16.mxu0 %v5451_v28 }
 0x3dd   : > { %2130 = vadd.xlane.f32.xlu1 %v6957_v41  ;;  %2854 = vmatpush1.bf16.msra.mxu0 %v5449_v26  ;;  %v5454_v41 = vld [vmem:[#allocation7 + $0x84] ss:$8 sps:$4 sm:$0xff]  }
 0x3de   : > { %2855 = vmatprep.subr.bf16.mxu0 %v5454_v41 }
 0x3df   : > { %2478 = vadd.xlane.f32.xlu0 %v5633_v46 }
 0x3e1   : > { %2480 = vadd.xlane.f32.xlu1 %v5635_v6  ;;  %2856 = vmatpush1.bf16.msra.mxu0 %v5452_v10 }
 0x3e2   : > { %2857 = vmatprep.subr.bf16.mxu0 %v5457_v56 }
 0x3e3   : > { %2132 = vadd.xlane.f32.xlu0 %v6964_v23  ;;  %v5463_v23 = vld [vmem:[#allocation7 + $0xb4] ss:$8 sps:$4 sm:$0xff]  }
 0x3e5   : > { %2134 = vadd.xlane.f32.xlu1 %v6967_v34  ;;  %2858 = vmatpush1.bf16.msra.mxu0 %v5455_v25  ;;  %v5466_v34 = vld [vmem:[#allocation7 + $0xc4] ss:$8 sps:$4 sm:$0xff]  }
 0x3e6   : > { %2859 = vmatprep.subr.bf16.mxu0 %v5460_v52 }
 0x3e9   : > { %2860 = vmatpush1.bf16.msra.mxu0 %v5458_v17 }
 0x3ea   : > { %2861 = vmatprep.subr.bf16.mxu0 %v5463_v23 }
 0x3ed   : > { %2862 = vmatpush1.bf16.msra.mxu0 %v5461_v14 }
 0x3ee   : > { %2863 = vmatprep.subr.bf16.mxu0 %v5466_v34 }
 0x3f1   : > { %2864 = vmatpush1.bf16.msra.mxu0 %v5464_v35 }
 0x3f2   : > { %2865 = vmatprep.subr.bf16.mxu0 %v5469_v51 }
 0x3f5   : > { %2866 = vmatpush1.bf16.msra.mxu0 %v5467_v63 }
 0x3f6   : > { %2867 = vmatprep.subr.bf16.mxu0 %v5472_v24 }
 0x3f9   : > { %2868 = vmatpush1.bf16.msra.mxu0 %v5470_v58 }
 0x3fa   : > { %2869 = vmatprep.subr.bf16.mxu0 %v5475_v12 }
 0x3fd   : > { %2870 = vmatpush1.bf16.msra.mxu0 %v5473_v8 }
 0x434   : > { %v7001_v20 = vpop.xlane.xlu0 %2450 }
 0x436   : > { %v7003_v37 = vpop.xlane.xlu1 %2452 }
 0x438   : > { %v2105_v40 = vpop.xlane.xlu0 %2104 }
 0x439   : > { %5636 = vrcp.f32 %v2105_v40 }
 0x43a   : > { %v2107_v50 = vpop.xlane.xlu1 %2106 }
 0x43c   : > { %v7005_v60 = vpop.xlane.xlu0 %2454 }
 0x43e   : > { %v7007_v55 = vpop.xlane.xlu1 %2456 }
 0x440   : > { %v2109_v38 = vpop.xlane.xlu0 %2108 }
 0x441   : > { %5638 = vrcp.f32 %v2109_v38 }
 0x442   : > { %v2111_v62 = vpop.xlane.xlu1 %2110 }
 0x443   : > { %5640 = vrcp.f32 %v2111_v62  ;;  %v5637_v3 = vpop.eup %5636 }
 0x444   : > { %v7009_v9 = vpop.xlane.xlu0 %2458  ;;  %5642 = vrcp.f32 %v2107_v50 }
 0x446   : > { %v7011_v4 = vpop.xlane.xlu1 %2460 }
 0x448   : > { %v2113_v54 = vpop.xlane.xlu0 %2112 }
 0x449   : > { %5644 = vrcp.f32 %v2113_v54 }
 0x44a   : > { %v2115_v57 = vpop.xlane.xlu1 %2114 }
 0x44b   : > { %v5639_v27 = vpop.eup %5638 }
 0x44c   : > { %v7013_v47 = vpop.xlane.xlu0 %2462 }
 0x44d   : > { %v5641_v6 = vpop.eup %5640 }
 0x44e   : > { %v7015_v5 = vpop.xlane.xlu1 %2464  ;;  %v5643_v7 = vpop.eup %5642 }
 0x450   : > { %v2117_v43 = vpop.xlane.xlu0 %2116 }
 0x451   : > { %5646 = vrcp.f32 %v2117_v43 }
 0x452   : > { %v2119_v2 = vpop.xlane.xlu1 %2118 }
 0x453   : > { %5648 = vrcp.f32 %v2119_v2  ;;  %v5645_v49 = vpop.eup %5644 }
 0x454   : > { %v7017_v61 = vpop.xlane.xlu0 %2466  ;;  %5650 = vrcp.f32 %v2115_v57 }
 0x456   : > { %v7019_v59 = vpop.xlane.xlu1 %2468 }
 0x458   : > { %v2121_v31 = vpop.xlane.xlu0 %2120 }
 0x459   : > { %5652 = vrcp.f32 %v2121_v31 }
 0x45a   : > { %v2123_v22 = vpop.xlane.xlu1 %2122 }
 0x45b   : > { %v5647_v28 = vpop.eup %5646 }
 0x45c   : > { %v7021_v21 = vpop.xlane.xlu0 %2470 }
 0x45d   : > { %v5649_v10 = vpop.eup %5648 }
 0x45e   : > { %v7023_v19 = vpop.xlane.xlu1 %2472  ;;  %v5651_v25 = vpop.eup %5650 }
 0x460   : > { %v2125_v18 = vpop.xlane.xlu0 %2124 }
 0x461   : > { %v5067_v1 = vpop.f32.mrb[48].mxu1  ;;  %5654 = vrcp.f32 %v2125_v18 }
 0x462   : > { %v2127_v48 = vpop.xlane.xlu1 %2126  ;;  %v2178_v46 = vpop.f32.mrb[49].mxu1  ;;  %v7025_v13 = vmul.f32 %v5639_v27, %v5067_v1 }
 0x463   : > { %v5068_v36 = vpop.f32.mrb[50].mxu1  ;;  %v7031_v11 = vmul.f32 %v5637_v3, %v2178_v46  ;;  %5656 = vrcp.f32 %v2127_v48  ;;  %v5653_v12 = vpop.eup %5652 }
 0x464   : > { %v7027_v53 = vmul.f32 %v5641_v6, %v5068_v36  ;;  %v7029_v16 = vpop.xlane.xlu0 %2474  ;;  %v2181_v0 = vpop.f32.mrb[51].mxu1  ;;  %5658 = vrcp.f32 %v2123_v22 }
 0x465   : > { %v7033_v39 = vmul.f32 %v5643_v7, %v2181_v0 }
 0x466   : > { %v2621_v29 = vpack.c.bf16 %v7027_v53, %v7025_v13  ;;  %v7037_v42 = vpop.xlane.xlu1 %2476 }
 0x467   : > { %v2619_v32 = vpack.c.bf16 %v7033_v39, %v7031_v11 }
 0x468   : > { %v2129_v15 = vpop.xlane.xlu0 %2128 }
 0x46a   : > { %v2131_v45 = vpop.xlane.xlu1 %2130 }
 0x46b   : > { %v5071_v44 = vpop.f32.mrb[52].mxu1  ;;  %v5655_v40 = vpop.eup %5654 }
 0x46c   : > { %v2194_v26 = vpop.f32.mrb[53].mxu1  ;;  %v7041_v41 = vpop.xlane.xlu0 %2478  ;;  %v7043_v52 = vmul.f32 %v5647_v28, %v5071_v44 }
 0x46d   : > { %v5072_v56 = vpop.f32.mrb[54].mxu1  ;;  %v7049_v34 = vmul.f32 %v5645_v49, %v2194_v26  ;;  %v5657_v38 = vpop.eup %5656 }
 0x46e   : > { %v7045_v17 = vmul.f32 %v5649_v10, %v5072_v56  ;;  %v2197_v23 = vpop.f32.mrb[55].mxu1  ;;  %v7047_v14 = vpop.xlane.xlu1 %2480 }
 0x46f   : > { %v7051_v35 = vmul.f32 %v5651_v25, %v2197_v23  ;;  %v5659_v54 = vpop.eup %5658 }
 0x470   : > { %v2625_v51 = vpack.c.bf16 %v7045_v17, %v7043_v52  ;;  %v2133_v63 = vpop.xlane.xlu0 %2132  ;;  %v2667_v52 = vld [vmem:[%s8419_s4] sm:$0x3] }
 0x471   : > { %v2623_v24 = vpack.c.bf16 %v7051_v35, %v7049_v34  ;;  %5660 = vrcp.f32 %v2133_v63  ;;  %v7125_v17 = vrot.slane %v2667_v52, %v6524_v30  ;;  %v7128_v34 = vrot.slane %v2667_v52, %v6528_v33  ;;  %v5776_v52 = vld [vmem:[%s6393_s13 + $0x60] sm:$0xff] }
 0x472   : > { %5662 = vrcp.f32 %v2129_v15  ;;  %v2135_v58 = vpop.xlane.xlu1 %2134 }
 0x473   : > { %5664 = vrcp.f32 %v2135_v58  ;;  %v5075_v8 = vpop.f32.mrb[56].mxu1 }
 0x474   : > { %5666 = vrcp.f32 %v2131_v45  ;;  %v2210_v50 = vpop.f32.mrb[57].mxu1  ;;  %v7057_v57 = vmul.f32 %v5655_v40, %v5075_v8 }
 0x475   : > { %v5076_v62 = vpop.f32.mrb[58].mxu1  ;;  %v7061_v31 = vmul.f32 %v5653_v12, %v2210_v50  ;;  %5668 = vrcp.f32 %v7001_v20 }
 0x476   : > { %v7059_v43 = vmul.f32 %v5657_v38, %v5076_v62  ;;  %v2213_v2 = vpop.f32.mrb[59].mxu1  ;;  %5670 = vrcp.f32 %v7005_v60 }
 0x477   : > { %v7063_v22 = vmul.f32 %v5659_v54, %v2213_v2  ;;  %5672 = vrcp.f32 %v7007_v55 }
 0x478   : > { %v2629_v18 = vpack.c.bf16 %v7059_v43, %v7057_v57  ;;  %5674 = vrcp.f32 %v7003_v37 }
 0x479   : > { %v2627_v3 = vpack.c.bf16 %v7063_v22, %v7061_v31  ;;  %5676 = vrcp.f32 %v7009_v9  ;;  %v5764_v31 = vld [vmem:[%s6393_s13] sm:$0xff] }
 0x47a   : > { %5678 = vrcp.f32 %v7013_v47 }
 0x47b   : > { %v5661_v1 = vpop.eup %5660  ;;  %v5079_v27 = vpop.f32.mrb[60].mxu1  ;;  %5680 = vrcp.f32 %v7015_v5 }
 0x47c   : > { %v5663_v48 = vpop.eup %5662  ;;  %v2226_v46 = vpop.f32.mrb[61].mxu1  ;;  %v7073_v0 = vmul.f32 %v5661_v1, %v5079_v27  ;;  %5682 = vrcp.f32 %v7011_v4 }
 0x47d   : > { %v5665_v6 = vpop.eup %5664  ;;  %v5080_v36 = vpop.f32.mrb[62].mxu1  ;;  %v7077_v45 = vmul.f32 %v5663_v48, %v2226_v46  ;;  %5684 = vrcp.f32 %v7017_v61 }
 0x47e   : > { %v5667_v7 = vpop.eup %5666  ;;  %v7075_v15 = vmul.f32 %v5665_v6, %v5080_v36  ;;  %v2229_v20 = vpop.f32.mrb[63].mxu1  ;;  %5686 = vrcp.f32 %v7021_v21 }
 0x47f   : > { %v7079_v49 = vmul.f32 %v5667_v7, %v2229_v20  ;;  %v5669_v55 = vpop.eup %5668  ;;  %5688 = vrcp.f32 %v7023_v19 }
 0x480   : > { %v2633_v60 = vpack.c.bf16 %v7075_v15, %v7073_v0  ;;  %v5671_v28 = vpop.eup %5670  ;;  %5690 = vrcp.f32 %v7019_v59  ;;  %v5765_v0 = vld [vmem:[%s6393_s13 + $0x8] sm:$0xff] }
 0x481   : > { %v2631_v37 = vpack.c.bf16 %v7079_v49, %v7077_v45  ;;  %v5673_v10 = vpop.eup %5672  ;;  %5692 = vrcp.f32 %v7029_v16  ;;  %v5766_v49 = vld [vmem:[%s6393_s13 + $0x10] sm:$0xff] }
 0x482   : > { %v5675_v25 = vpop.eup %5674  ;;  %5694 = vrcp.f32 %v7041_v41 }
 0x483   : > { %v5131_v44 = vpop.f32.mrb[64].mxu1  ;;  %v5677_v5 = vpop.eup %5676  ;;  %5696 = vrcp.f32 %v7047_v14 }
 0x484   : > { %v2524_v26 = vpop.f32.mrb[65].mxu1  ;;  %v2605_v23 = vmul.f32 %v5671_v28, %v5131_v44  ;;  %v5679_v4 = vpop.eup %5678  ;;  %5698 = vrcp.f32 %v7037_v42 }
 0x485   : > { %v5132_v56 = vpop.f32.mrb[66].mxu1  ;;  %v2603_v9 = vmul.f32 %v5669_v55, %v2524_v26  ;;  %v5681_v38 = vpop.eup %5680 }
 0x486   : > { %v2606_v63 = vmul.f32 %v5673_v10, %v5132_v56  ;;  %v2527_v58 = vpop.f32.mrb[67].mxu1  ;;  %v5683_v61 = vpop.eup %5682 }
 0x487   : > { %v2604_v12 = vmul.f32 %v5675_v25, %v2527_v58  ;;  %v5685_v59 = vpop.eup %5684 }
 0x488   : > { %v2622_v8 = vpack.c.bf16 %v2606_v63, %v2605_v23  ;;  %v5687_v39 = vpop.eup %5686 }
 0x489   : > { %v2620_v47 = vpack.c.bf16 %v2604_v12, %v2603_v9  ;;  %v5689_v46 = vpop.eup %5688 }
 0x48a   : > { %v5691_v36 = vpop.eup %5690 }
 0x48b   : > { %v5135_v40 = vpop.f32.mrb[68].mxu1  ;;  %2871 = vmatprep.mubr.bf16.mxu0 %v2620_v47  ;;  %v5693_v28 = vpop.eup %5692 }
 0x48c   : > { %v2540_v50 = vpop.f32.mrb[69].mxu1  ;;  %2872 = vmatmul.mubr.bf16.vlgmr.msra.gmra.mrb[80].mxu0 %v2619_v32  ;;  %v2609_v54 = vmul.f32 %v5679_v4, %v5135_v40  ;;  %v5695_v10 = vpop.eup %5694 }
 0x48d   : > { %v5136_v62 = vpop.f32.mrb[70].mxu1  ;;  %2881 = vmatprep.mubr.bf16.mxu0 %v2622_v8  ;;  %v2607_v1 = vmul.f32 %v5677_v5, %v2540_v50  ;;  %v5697_v13 = vpop.eup %5696 }
 0x48e   : > { %v2610_v2 = vmul.f32 %v5681_v38, %v5136_v62  ;;  %v2543_v21 = vpop.f32.mrb[71].mxu1 }
 0x48f   : > { %v2608_v27 = vmul.f32 %v5683_v61, %v2543_v21  ;;  %v5768_v61 = vld [vmem:[%s6393_s13 + $0x20] sm:$0xff] }
 0x490   : > { %v2626_v19 = vpack.c.bf16 %v2610_v2, %v2609_v54 }
 0x491   : > { %v2624_v48 = vpack.c.bf16 %v2608_v27, %v2607_v1  ;;  %v5769_v1 = vld [vmem:[%s6393_s13 + $0x28] sm:$0xff] }
 0x493   : > { %v5139_v11 = vpop.f32.mrb[72].mxu1 }
 0x494   : > { %v2556_v32 = vpop.f32.mrb[73].mxu1  ;;  %2882 = vmatmul.mubr.bf16.gmra.mrb[84].mxu0 %v2621_v29  ;;  %v2613_v16 = vmul.f32 %v5687_v39, %v5139_v11  ;;  %v5699_v29 = vpop.eup %5698  ;;  %v5771_v11 = vld [vmem:[%s6393_s13 + $0x38] sm:$0xff] }
 0x495   : > { %v5140_v6 = vpop.f32.mrb[74].mxu1  ;;  %2891 = vmatprep.mubr.bf16.mxu0 %v2624_v48  ;;  %v2611_v41 = vmul.f32 %v5685_v59, %v2556_v32  ;;  %v5770_v48 = vld [vmem:[%s6393_s13 + $0x30] sm:$0xff] }
 0x496   : > { %v2614_v7 = vmul.f32 %v5689_v46, %v5140_v6  ;;  %v2559_v20 = vpop.f32.mrb[75].mxu1 }
 0x497   : > { %v2612_v55 = vmul.f32 %v5691_v36, %v2559_v20 }
 0x498   : > { %v2630_v44 = vpack.c.bf16 %v2614_v7, %v2613_v16 }
 0x499   : > { %v2628_v14 = vpack.c.bf16 %v2612_v55, %v2611_v41  ;;  %v5772_v41 = vld [vmem:[%s6393_s13 + $0x40] sm:$0xff] }
 0x49b   : > { %v5143_v26 = vpop.f32.mrb[76].mxu1 }
 0x49c   : > { %v2572_v42 = vpop.f32.mrb[77].mxu1  ;;  %2892 = vmatmul.mubr.bf16.gmra.mrb[88].mxu0 %v2623_v24  ;;  %v2617_v56 = vmul.f32 %v5695_v10, %v5143_v26 }
 0x49d   : > { %v5144_v53 = vpop.f32.mrb[78].mxu1  ;;  %2901 = vmatprep.mubr.bf16.mxu0 %v2626_v19  ;;  %v2615_v63 = vmul.f32 %v5693_v28, %v2572_v42  ;;  %v5773_v28 = vld [vmem:[%s6393_s13 + $0x48] sm:$0xff]  ;;  %v5774_v42 = vld [vmem:[%s6393_s13 + $0x50] sm:$0xff] }
 0x49e   : > { %v2618_v25 = vmul.f32 %v5697_v13, %v5144_v53  ;;  %v2575_v23 = vpop.f32.mrb[79].mxu1  ;;  %v5775_v53 = vld [vmem:[%s6393_s13 + $0x58] sm:$0xff] }
 0x49f   : > { %v2616_v58 = vmul.f32 %v5699_v29, %v2575_v23 }
 0x4a0   : > { %v2634_v9 = vpack.c.bf16 %v2618_v25, %v2617_v56 }
 0x4a1   : > { %v2632_v12 = vpack.c.bf16 %v2616_v58, %v2615_v63 }
 0x4a4   : > { %2902 = vmatmul.mubr.bf16.gmra.mrb[92].mxu0 %v2625_v51 }
 0x4a5   : > { %2911 = vmatprep.mubr.bf16.mxu0 %v2628_v14 }
 0x4ac   : > { %2912 = vmatmul.mubr.bf16.gmra.mrb[96].mxu0 %v2627_v3 }
 0x4ad   : > { %2921 = vmatprep.mubr.bf16.mxu0 %v2630_v44 }
 0x4b4   : > { %2922 = vmatmul.mubr.bf16.gmra.mrb[100].mxu0 %v2629_v18 }
 0x4b5   : > { %2931 = vmatprep.mubr.bf16.mxu0 %v2632_v12 }
 0x4bc   : > { %2932 = vmatmul.mubr.bf16.gmra.mrb[104].mxu0 %v2631_v37  ;;  %v5767_v37 = vld [vmem:[%s6393_s13 + $0x18] sm:$0xff] }
 0x4bd   : > { %2941 = vmatprep.mubr.bf16.mxu0 %v2634_v9 }
 0x4c4   : > { %2942 = vmatmul.mubr.bf16.gmra.mrb[108].mxu0 %v2633_v60 }
 0x55f   : > { %v2873_v35 = vpop.f32.mrb[80].mxu0 }
 0x560   : > { %v2874_v51 = vadd.f32 %v2873_v35, %v7125_v17  ;;  %v2875_v24 = vpop.f32.mrb[81].mxu0 }
 0x561   : > { %v2876_v57 = vadd.f32 %v2875_v24, %v7128_v34  ;;  %v2877_v43 = vpop.f32.mrb[82].mxu0 }
 0x562   : > { %v7133_v22 = vadd.f32 %v5764_v31, %v2874_v51  ;;  %v2878_v18 = vadd.f32 %v2877_v43, %v7125_v17  ;;  %v2879_v3 = vpop.f32.mrb[83].mxu0 }
 0x563   : > { %v7137_v15 = vadd.f32 %v5765_v0, %v2876_v57  ;;  %v2880_v45 = vadd.f32 %v2879_v3, %v7128_v34  ;;  %v5777_v57 = vld [vmem:[%s6393_s13 + $0x68] sm:$0xff]  ;;  %v5779_v0 = vld [vmem:[%s6393_s13 + $0x78] sm:$0xff] }
 0x564   : > { %v7141_v60 = vadd.f32 %v5766_v49, %v2878_v18  ;;  %v5778_v18 = vld [vmem:[%s6393_s13 + $0x70] sm:$0xff] }
 0x565   : > { %v7144_v8 = vadd.f32 %v5767_v37, %v2880_v45  ;;  %v2984_v47 = vadd.f32 %v7137_v15, %v7133_v22 }
 0x567   : > { %v2883_v5 = vpop.f32.mrb[84].mxu0  ;;  %2985 = vadd.xlane.f32.xlu0 %v2984_v47  ;;  %v2987_v40 = vadd.f32 %v7144_v8, %v7141_v60 }
 0x568   : > { %v2884_v4 = vadd.f32 %v2883_v5, %v7125_v17  ;;  %v2885_v50 = vpop.f32.mrb[85].mxu0 }
 0x569   : > { %v2886_v38 = vadd.f32 %v2885_v50, %v7128_v34  ;;  %v2887_v62 = vpop.f32.mrb[86].mxu0  ;;  %2988 = vadd.xlane.f32.xlu1 %v2987_v40 }
 0x56a   : > { %v7153_v54 = vadd.f32 %v5768_v61, %v2884_v4  ;;  %v2888_v2 = vadd.f32 %v2887_v62, %v7125_v17  ;;  %v2889_v21 = vpop.f32.mrb[87].mxu0 }
 0x56b   : > { %v7157_v27 = vadd.f32 %v5769_v1, %v2886_v38  ;;  %v2890_v19 = vadd.f32 %v2889_v21, %v7128_v34  ;;  %v5780_v38 = vld [vmem:[%s6393_s13 + $0x80] sm:$0xff]  ;;  %v5781_v21 = vld [vmem:[%s6393_s13 + $0x88] sm:$0xff] }
 0x56c   : > { %v7161_v59 = vadd.f32 %v5770_v48, %v2888_v2  ;;  %v5782_v48 = vld [vmem:[%s6393_s13 + $0x90] sm:$0xff] }
 0x56d   : > { %v7164_v39 = vadd.f32 %v5771_v11, %v2890_v19  ;;  %v2990_v32 = vadd.f32 %v7157_v27, %v7153_v54 }
 0x56f   : > { %2991 = vadd.xlane.f32.xlu0 %v2990_v32  ;;  %v2893_v46 = vpop.f32.mrb[88].mxu0  ;;  %v2993_v6 = vadd.f32 %v7164_v39, %v7161_v59  ;;  %v5783_v32 = vld [vmem:[%s6393_s13 + $0x98] sm:$0xff] }
 0x570   : > { %v2894_v36 = vadd.f32 %v2893_v46, %v7125_v17  ;;  %v2895_v16 = vpop.f32.mrb[89].mxu0 }
 0x571   : > { %v2896_v7 = vadd.f32 %v2895_v16, %v7128_v34  ;;  %2994 = vadd.xlane.f32.xlu1 %v2993_v6  ;;  %v2897_v20 = vpop.f32.mrb[90].mxu0 }
 0x572   : > { %v7173_v55 = vadd.f32 %v5772_v41, %v2894_v36  ;;  %v2898_v44 = vadd.f32 %v2897_v20, %v7125_v17  ;;  %v2899_v14 = vpop.f32.mrb[91].mxu0 }
 0x573   : > { %v7177_v26 = vadd.f32 %v5773_v28, %v2896_v7  ;;  %v2900_v10 = vadd.f32 %v2899_v14, %v7128_v34  ;;  %v5784_v14 = vld [vmem:[%s6393_s13 + $0xa0] sm:$0xff] }
 0x574   : > { %v7181_v13 = vadd.f32 %v5774_v42, %v2898_v44 }
 0x575   : > { %v7184_v29 = vadd.f32 %v5775_v53, %v2900_v10  ;;  %v2996_v56 = vadd.f32 %v7177_v26, %v7173_v55  ;;  %v5785_v53 = vld [vmem:[%s6393_s13 + $0xa8] sm:$0xff] }
 0x577   : > { %v2903_v25 = vpop.f32.mrb[92].mxu0  ;;  %2997 = vadd.xlane.f32.xlu0 %v2996_v56  ;;  %v2999_v23 = vadd.f32 %v7184_v29, %v7181_v13 }
 0x578   : > { %v2904_v63 = vadd.f32 %v2903_v25, %v7125_v17  ;;  %v2905_v58 = vpop.f32.mrb[93].mxu0 }
 0x579   : > { %v2906_v9 = vadd.f32 %v2905_v58, %v7128_v34  ;;  %v2907_v12 = vpop.f32.mrb[94].mxu0  ;;  %3000 = vadd.xlane.f32.xlu1 %v2999_v23  ;;  %v5786_v23 = vld [vmem:[%s6393_s13 + $0xb0] sm:$0xff]  ;;  %v5787_v58 = vld [vmem:[%s6393_s13 + $0xb8] sm:$0xff] }
 0x57a   : > { %v7193_v35 = vadd.f32 %v5776_v52, %v2904_v63  ;;  %v2908_v51 = vadd.f32 %v2907_v12, %v7125_v17  ;;  %v2909_v24 = vpop.f32.mrb[95].mxu0 }
 0x57b   : > { %v7197_v43 = vadd.f32 %v5777_v57, %v2906_v9  ;;  %v2910_v31 = vadd.f32 %v2909_v24, %v7128_v34 }
 0x57c   : > { %v7201_v3 = vadd.f32 %v5778_v18, %v2908_v51 }
 0x57d   : > { %v7204_v45 = vadd.f32 %v5779_v0, %v2910_v31  ;;  %v3002_v49 = vadd.f32 %v7197_v43, %v7193_v35  ;;  %v5788_v0 = vld [vmem:[%s6393_s13 + $0xc0] sm:$0xff] }
 0x57f   : > { %3003 = vadd.xlane.f32.xlu0 %v3002_v49  ;;  %v2913_v37 = vpop.f32.mrb[96].mxu0  ;;  %v3005_v47 = vadd.f32 %v7204_v45, %v7201_v3 }
 0x580   : > { %v2914_v5 = vadd.f32 %v2913_v37, %v7125_v17  ;;  %v2915_v40 = vpop.f32.mrb[97].mxu0 }
 0x581   : > { %v2916_v4 = vadd.f32 %v2915_v40, %v7128_v34  ;;  %3006 = vadd.xlane.f32.xlu1 %v3005_v47  ;;  %v2917_v50 = vpop.f32.mrb[98].mxu0 }
 0x582   : > { %v7213_v62 = vadd.f32 %v5780_v38, %v2914_v5  ;;  %v2918_v61 = vadd.f32 %v2917_v50, %v7125_v17  ;;  %v2919_v2 = vpop.f32.mrb[99].mxu0  ;;  %v5789_v5 = vld [vmem:[%s6393_s13 + $0xc8] sm:$0xff]  ;;  %v5790_v50 = vld [vmem:[%s6393_s13 + $0xd0] sm:$0xff] }
 0x583   : > { %v7217_v1 = vadd.f32 %v5781_v21, %v2916_v4  ;;  %v2920_v19 = vadd.f32 %v2919_v2, %v7128_v34 }
 0x584   : > { %v7221_v11 = vadd.f32 %v5782_v48, %v2918_v61  ;;  %v5791_v61 = vld [vmem:[%s6393_s13 + $0xd8] sm:$0xff] }
 0x585   : > { %v7224_v46 = vadd.f32 %v5783_v32, %v2920_v19  ;;  %v3008_v6 = vadd.f32 %v7217_v1, %v7213_v62 }
 0x587   : > { %v2923_v36 = vpop.f32.mrb[100].mxu0  ;;  %3009 = vadd.xlane.f32.xlu0 %v3008_v6  ;;  %v3011_v16 = vadd.f32 %v7224_v46, %v7221_v11 }
 0x588   : > { %v2924_v7 = vadd.f32 %v2923_v36, %v7125_v17  ;;  %v2925_v20 = vpop.f32.mrb[101].mxu0 }
 0x589   : > { %v2926_v41 = vadd.f32 %v2925_v20, %v7128_v34  ;;  %v2927_v44 = vpop.f32.mrb[102].mxu0  ;;  %3012 = vadd.xlane.f32.xlu1 %v3011_v16 }
 0x58a   : > { %v7233_v28 = vadd.f32 %v5784_v14, %v2924_v7  ;;  %v2928_v10 = vadd.f32 %v2927_v44, %v7125_v17  ;;  %v2929_v42 = vpop.f32.mrb[103].mxu0  ;;  %v5792_v7 = vld [vmem:[%s6393_s13 + $0xe0] sm:$0xff]  ;;  %v5793_v14 = vld [vmem:[%s6393_s13 + $0xe8] sm:$0xff] }
 0x58b   : > { %v7237_v56 = vadd.f32 %v5785_v53, %v2926_v41  ;;  %v2930_v25 = vadd.f32 %v2929_v42, %v7128_v34  ;;  %v5794_v53 = vld [vmem:[%s6393_s13 + $0xf0] sm:$0xff] }
 0x58c   : > { %v7241_v63 = vadd.f32 %v5786_v23, %v2928_v10  ;;  %v5795_v23 = vld [vmem:[%s6393_s13 + $0xf8] sm:$0xff]  ;;  %s4475_s13 = sshll.u32 %s6556_s21, 4  ;;  %s8148_s13 = int_to_ptr.vmem [resolvable:$true] %s4475_s13 }
 0x58d   : > { %v7244_v9 = vadd.f32 %v5787_v58, %v2930_v25  ;;  %v3014_v12 = vadd.f32 %v7237_v56, %v7233_v28  ;;  %s5938_s0 = scalar_lea.vmem %s8148_s13, 2048 }
 0x58e   : > { %p5939_p8 = scmp.ne.s32.totalorder %s8148_s13, %s5938_s0 }
 0x58f   : > { %3015 = vadd.xlane.f32.xlu0 %v3014_v12  ;;  %v2933_v52 = vpop.f32.mrb[104].mxu0  ;;  %v3017_v51 = vadd.f32 %v7244_v9, %v7241_v63 }
 0x590   : > { %v2934_v24 = vadd.f32 %v2933_v52, %v7125_v17  ;;  %v2935_v57 = vpop.f32.mrb[105].mxu0  ;;  %p5940_p10 = pnand %p5939_p8, %p6335_p6 }
 0x591   : > { %v2936_v31 = vadd.f32 %v2935_v57, %v7128_v34  ;;  %3018 = vadd.xlane.f32.xlu1 %v3017_v51  ;;  %v2937_v18 = vpop.f32.mrb[106].mxu0  ;;  %v5478_v51 = vld [vmem:[#allocation8 + $0x4] ss:$8 sps:$4 sm:$0xff]  }
 0x592   : > { %v7253_v49 = vadd.f32 %v5788_v0, %v2934_v24  ;;  %v2938_v37 = vadd.f32 %v2937_v18, %v7125_v17  ;;  %v2939_v47 = vpop.f32.mrb[107].mxu0  ;;  %v5481_v24 = vld [vmem:[#allocation8 + $0x14] ss:$8 sps:$4 sm:$0xff]   ;;  %3549 = vmatprep.subr.bf16.mxu1 %v5478_v51  ;;  %v5484_v57 = vld [vmem:[#allocation8 + $0x24] ss:$8 sps:$4 sm:$0xff]   ;;  %p5941_p12 = pneg %p5940_p10 }
 0x593   : > { %v7257_v40 = vadd.f32 %v5789_v5, %v2936_v31  ;;  %v2940_v4 = vadd.f32 %v2939_v47, %v7128_v34  ;;  %v5482_v31 = vld [vmem:[#allocation8 + $0x20] ss:$8 sps:$4 sm:$0xff]   ;;  %v5487_v18 = vld [vmem:[#allocation8 + $0x34] ss:$8 sps:$4 sm:$0xff]   ;;  %v5485_v0 = vld [vmem:[#allocation8 + $0x30] ss:$8 sps:$4 sm:$0xff]  }
 0x594   : > { %v7261_v38 = vadd.f32 %v5790_v50, %v2938_v37  ;;  %v5490_v37 = vld [vmem:[#allocation8 + $0x44] ss:$8 sps:$4 sm:$0xff]   ;;  %v5488_v47 = vld [vmem:[#allocation8 + $0x40] ss:$8 sps:$4 sm:$0xff]   ;;  %v5493_v5 = vld [vmem:[#allocation8 + $0x54] ss:$8 sps:$4 sm:$0xff]  }
 0x595   : > { %v7264_v2 = vadd.f32 %v5791_v61, %v2940_v4  ;;  %v3020_v21 = vadd.f32 %v7257_v40, %v7253_v49  ;;  %v5491_v4 = vld [vmem:[#allocation8 + $0x50] ss:$8 sps:$4 sm:$0xff]   ;;  %v5496_v50 = vld [vmem:[#allocation8 + $0x64] ss:$8 sps:$4 sm:$0xff]   ;;  %v5494_v61 = vld [vmem:[#allocation8 + $0x60] ss:$8 sps:$4 sm:$0xff]  }
 0x597   : > { %v2943_v19 = vpop.f32.mrb[108].mxu0  ;;  %3021 = vadd.xlane.f32.xlu0 %v3020_v21  ;;  %v3023_v48 = vadd.f32 %v7264_v2, %v7261_v38  ;;  %v5499_v21 = vld [vmem:[#allocation8 + $0x74] ss:$8 sps:$4 sm:$0xff]  }
 0x598   : > { %v2944_v32 = vadd.f32 %v2943_v19, %v7125_v17  ;;  %v2945_v6 = vpop.f32.mrb[109].mxu0  ;;  %v5497_v19 = vld [vmem:[#allocation8 + $0x70] ss:$8 sps:$4 sm:$0xff]  }
 0x599   : > { %v2946_v36 = vadd.f32 %v2945_v6, %v7128_v34  ;;  %v2947_v16 = vpop.f32.mrb[110].mxu0  ;;  %3024 = vadd.xlane.f32.xlu1 %v3023_v48  ;;  %v5502_v48 = vld [vmem:[#allocation8 + $0x84] ss:$8 sps:$4 sm:$0xff]   ;;  %v5505_v6 = vld [vmem:[#allocation8 + $0x94] ss:$8 sps:$4 sm:$0xff]  }
 0x59a   : > { %v7273_v20 = vadd.f32 %v5792_v7, %v2944_v32  ;;  %v2948_v41 = vadd.f32 %v2947_v16, %v7125_v17  ;;  %v2949_v44 = vpop.f32.mrb[111].mxu0  ;;  %v5476_v17 = vld [vmem:[#allocation8] ss:$8 sps:$4 sm:$0xff]  }
 0x59b   : > { %v7277_v10 = vadd.f32 %v5793_v14, %v2946_v36  ;;  %v2950_v42 = vadd.f32 %v2949_v44, %v7128_v34  ;;  %3550 = vmatpush1.bf16.msra.mxu1 %v5476_v17  ;;  %v5479_v34 = vld [vmem:[#allocation8 + $0x10] ss:$8 sps:$4 sm:$0xff]   ;;  %v5500_v32 = vld [vmem:[#allocation8 + $0x80] ss:$8 sps:$4 sm:$0xff]  }
 0x59c   : > { %v7281_v25 = vadd.f32 %v5794_v53, %v2948_v41  ;;  %3551 = vmatprep.subr.bf16.mxu1 %v5481_v24  ;;  %v5503_v36 = vld [vmem:[#allocation8 + $0x90] ss:$8 sps:$4 sm:$0xff]  }
 0x59d   : > { %v7284_v58 = vadd.f32 %v5795_v23, %v2950_v42  ;;  %v3026_v12 = vadd.f32 %v7277_v10, %v7273_v20 }
 0x59f   : > { %3027 = vadd.xlane.f32.xlu0 %v3026_v12  ;;  %v3029_v52 = vadd.f32 %v7284_v58, %v7281_v25  ;;  %3552 = vmatpush1.bf16.msra.mxu1 %v5479_v34 }
 0x5a0   : > { %3553 = vmatprep.subr.bf16.mxu1 %v5484_v57 }
 0x5a1   : > { %3030 = vadd.xlane.f32.xlu1 %v3029_v52 }
 0x5a3   : > { %3554 = vmatpush1.bf16.msra.mxu1 %v5482_v31 }
 0x5a4   : > { %3555 = vmatprep.subr.bf16.mxu1 %v5487_v18 }
 0x5a7   : > { %3556 = vmatpush1.bf16.msra.mxu1 %v5485_v0 }
 0x5a8   : > { %3557 = vmatprep.subr.bf16.mxu1 %v5490_v37 }
 0x5ab   : > { %3558 = vmatpush1.bf16.msra.mxu1 %v5488_v47 }
 0x5ac   : > { %3559 = vmatprep.subr.bf16.mxu1 %v5493_v5 }
 0x5af   : > { %3560 = vmatpush1.bf16.msra.mxu1 %v5491_v4 }
 0x5b0   : > { %3561 = vmatprep.subr.bf16.mxu1 %v5496_v50 }
 0x5b3   : > { %3562 = vmatpush1.bf16.msra.mxu1 %v5494_v61 }
 0x5b4   : > { %3563 = vmatprep.subr.bf16.mxu1 %v5499_v21 }
 0x5b7   : > { %3564 = vmatpush1.bf16.msra.mxu1 %v5497_v19 }
 0x5b8   : > { %3565 = vmatprep.subr.bf16.mxu1 %v5502_v48 }
 0x5bb   : > { %3566 = vmatpush1.bf16.msra.mxu1 %v5500_v32 }
 0x5bc   : > { %3567 = vmatprep.subr.bf16.mxu1 %v5505_v6 }
 0x5bf   : > { %3568 = vmatpush1.bf16.msra.mxu1 %v5503_v36 }
 0x5f4   : > { %v2986_v16 = vpop.xlane.xlu0 %2985 }
 0x5f5   : > { %v3033_v7 = vmul.f32 0.00390625, %v2986_v16 }
 0x5f6   : > { %v2989_v41 = vpop.xlane.xlu1 %2988 }
 0x5f7   : > { %v7291_v44 = vsub.f32 %v7133_v22, %v3033_v7  ;;  %v7294_v14 = vsub.f32 %v7137_v15, %v3033_v7  ;;  %v3034_v42 = vmul.f32 0.00390625, %v2989_v41  ;;  %v5508_v7 = vld [vmem:[#allocation8 + $0xa4] ss:$8 sps:$4 sm:$0xff]  }
 0x5f8   : > { %3569 = vmatprep.subr.bf16.mxu1 %v5508_v7 }
 0x5f9   : > { %v7297_v53 = vsub.f32 %v7141_v60, %v3034_v42  ;;  %v7300_v23 = vsub.f32 %v7144_v8, %v3034_v42  ;;  %v3081_v12 = vmul.f32 %v7291_v44, %v7291_v44  ;;  %v3082_v52 = vmul.f32 %v7294_v14, %v7294_v14 }
 0x5fb   : > { %v3113_v17 = vadd.f32 %v3082_v52, %v3081_v12  ;;  %v3083_v22 = vmul.f32 %v7297_v53, %v7297_v53  ;;  %v3084_v15 = vmul.f32 %v7300_v23, %v7300_v23 }
 0x5fc   : > { %v2992_v51 = vpop.xlane.xlu0 %2991 }
 0x5fd   : > { %v3035_v24 = vmul.f32 0.00390625, %v2992_v51  ;;  %3114 = vadd.xlane.f32.xlu0 %v3113_v17  ;;  %v3116_v60 = vadd.f32 %v3084_v15, %v3083_v22  ;;  %v5511_v15 = vld [vmem:[#allocation8 + $0xb4] ss:$8 sps:$4 sm:$0xff]   ;;  %v5509_v51 = vld [vmem:[#allocation8 + $0xb0] ss:$8 sps:$4 sm:$0xff]  }
 0x5fe   : > { %v2995_v34 = vpop.xlane.xlu1 %2994 }
 0x5ff   : > { %v7311_v8 = vsub.f32 %v7153_v54, %v3035_v24  ;;  %v7314_v57 = vsub.f32 %v7157_v27, %v3035_v24  ;;  %v3036_v31 = vmul.f32 0.00390625, %v2995_v34  ;;  %3117 = vadd.xlane.f32.xlu1 %v3116_v60 }
 0x601   : > { %v7317_v18 = vsub.f32 %v7161_v59, %v3036_v31  ;;  %v7320_v0 = vsub.f32 %v7164_v39, %v3036_v31  ;;  %v3085_v37 = vmul.f32 %v7311_v8, %v7311_v8  ;;  %v3086_v47 = vmul.f32 %v7314_v57, %v7314_v57 }
 0x603   : > { %v3119_v5 = vadd.f32 %v3086_v47, %v3085_v37  ;;  %v3087_v54 = vmul.f32 %v7317_v18, %v7317_v18  ;;  %v3088_v27 = vmul.f32 %v7320_v0, %v7320_v0 }
 0x604   : > { %v2998_v4 = vpop.xlane.xlu0 %2997 }
 0x605   : > { %v3037_v50 = vmul.f32 0.00390625, %v2998_v4  ;;  %3120 = vadd.xlane.f32.xlu0 %v3119_v5  ;;  %v3122_v59 = vadd.f32 %v3088_v27, %v3087_v54  ;;  %v5512_v5 = vld [vmem:[#allocation8 + $0xc0] ss:$8 sps:$4 sm:$0xff]  }
 0x606   : > { %v3001_v61 = vpop.xlane.xlu1 %3000 }
 0x607   : > { %v7331_v39 = vsub.f32 %v7173_v55, %v3037_v50  ;;  %v7334_v21 = vsub.f32 %v7177_v26, %v3037_v50  ;;  %v3038_v19 = vmul.f32 0.00390625, %v3001_v61  ;;  %3123 = vadd.xlane.f32.xlu1 %v3122_v59  ;;  %v5517_v61 = vld [vmem:[#allocation8 + $0xd4] ss:$8 sps:$4 sm:$0xff]  }
 0x609   : > { %v7337_v48 = vsub.f32 %v7181_v13, %v3038_v19  ;;  %v7340_v32 = vsub.f32 %v7184_v29, %v3038_v19  ;;  %v3089_v6 = vmul.f32 %v7331_v39, %v7331_v39  ;;  %v3090_v36 = vmul.f32 %v7334_v21, %v7334_v21  ;;  %v5506_v13 = vld [vmem:[#allocation8 + $0xa0] ss:$8 sps:$4 sm:$0xff]   ;;  %v5515_v19 = vld [vmem:[#allocation8 + $0xd0] ss:$8 sps:$4 sm:$0xff]  }
 0x60a   : > { %3570 = vmatpush1.bf16.msra.mxu1 %v5506_v13 }
 0x60b   : > { %v3125_v16 = vadd.f32 %v3090_v36, %v3089_v6  ;;  %v3091_v55 = vmul.f32 %v7337_v48, %v7337_v48  ;;  %v3092_v26 = vmul.f32 %v7340_v32, %v7340_v32  ;;  %3571 = vmatprep.subr.bf16.mxu1 %v5511_v15  ;;  %v5523_v15 = vld [vmem:[#allocation8 + $0xf4] ss:$8 sps:$4 sm:$0xff]  }
 0x60c   : > { %v3004_v41 = vpop.xlane.xlu0 %3003 }
 0x60d   : > { %v3039_v42 = vmul.f32 0.00390625, %v3004_v41  ;;  %3126 = vadd.xlane.f32.xlu0 %v3125_v16  ;;  %v3128_v29 = vadd.f32 %v3092_v26, %v3091_v55  ;;  %v5518_v41 = vld [vmem:[#allocation8 + $0xe0] ss:$8 sps:$4 sm:$0xff]  }
 0x60e   : > { %v3007_v12 = vpop.xlane.xlu1 %3006  ;;  %3572 = vmatpush1.bf16.msra.mxu1 %v5509_v51  ;;  %v5521_v51 = vld [vmem:[#allocation8 + $0xf0] ss:$8 sps:$4 sm:$0xff]  }
 0x60f   : > { %v7351_v52 = vsub.f32 %v7193_v35, %v3039_v42  ;;  %v7354_v17 = vsub.f32 %v7197_v43, %v3039_v42  ;;  %v3040_v22 = vmul.f32 0.00390625, %v3007_v12  ;;  %3129 = vadd.xlane.f32.xlu1 %v3128_v29 }
 0x611   : > { %v7357_v24 = vsub.f32 %v7201_v3, %v3040_v22  ;;  %v7360_v60 = vsub.f32 %v7204_v45, %v3040_v22  ;;  %v3093_v34 = vmul.f32 %v7351_v52, %v7351_v52  ;;  %v3094_v35 = vmul.f32 %v7354_v17, %v7354_v17  ;;  %v5514_v3 = vld [vmem:[#allocation8 + $0xc4] ss:$8 sps:$4 sm:$0xff]  }
 0x612   : > { %3573 = vmatprep.subr.bf16.mxu1 %v5514_v3 }
 0x613   : > { %v3131_v43 = vadd.f32 %v3094_v35, %v3093_v34  ;;  %v3095_v31 = vmul.f32 %v7357_v24, %v7357_v24  ;;  %v3096_v37 = vmul.f32 %v7360_v60, %v7360_v60  ;;  %3574 = vmatpush1.bf16.msra.mxu1 %v5512_v5 }
 0x614   : > { %v3010_v47 = vpop.xlane.xlu0 %3009  ;;  %3575 = vmatprep.subr.bf16.mxu1 %v5517_v61 }
 0x615   : > { %v3041_v45 = vmul.f32 0.00390625, %v3010_v47  ;;  %3132 = vadd.xlane.f32.xlu0 %v3131_v43  ;;  %v3134_v54 = vadd.f32 %v3096_v37, %v3095_v31 }
 0x616   : > { %v3013_v27 = vpop.xlane.xlu1 %3012 }
 0x617   : > { %v7371_v4 = vsub.f32 %v7213_v62, %v3041_v45  ;;  %v7374_v50 = vsub.f32 %v7217_v1, %v3041_v45  ;;  %v3042_v59 = vmul.f32 0.00390625, %v3013_v27  ;;  %3135 = vadd.xlane.f32.xlu1 %v3134_v54  ;;  %3576 = vmatpush1.bf16.msra.mxu1 %v5515_v19 }
 0x619   : > { %v7377_v6 = vsub.f32 %v7221_v11, %v3042_v59  ;;  %v7380_v36 = vsub.f32 %v7224_v46, %v3042_v59  ;;  %v3097_v16 = vmul.f32 %v7371_v4, %v7371_v4  ;;  %v3098_v62 = vmul.f32 %v7374_v50, %v7374_v50  ;;  %v5520_v11 = vld [vmem:[#allocation8 + $0xe4] ss:$8 sps:$4 sm:$0xff]  }
 0x61a   : > { %3577 = vmatprep.subr.bf16.mxu1 %v5520_v11 }
 0x61b   : > { %v3137_v1 = vadd.f32 %v3098_v62, %v3097_v16  ;;  %v3099_v55 = vmul.f32 %v7377_v6, %v7377_v6  ;;  %v3100_v26 = vmul.f32 %v7380_v36, %v7380_v36  ;;  %3578 = vmatpush1.bf16.msra.mxu1 %v5518_v41 }
 0x61c   : > { %v3016_v7 = vpop.xlane.xlu0 %3015  ;;  %3579 = vmatprep.subr.bf16.mxu1 %v5523_v15  ;;  %v7452_v15 = vld [vmem:[#allocation10 + $0x14] ss:$8 sps:$4 sm:$0xff]  }
 0x61d   : > { %v3043_v46 = vmul.f32 0.00390625, %v3016_v7  ;;  %3138 = vadd.xlane.f32.xlu0 %v3137_v1  ;;  %v3140_v13 = vadd.f32 %v3100_v26, %v3099_v55 }
 0x61e   : > { %v3019_v42 = vpop.xlane.xlu1 %3018 }
 0x61f   : > { %v7391_v29 = vsub.f32 %v7233_v28, %v3043_v46  ;;  %v7394_v12 = vsub.f32 %v7237_v56, %v3043_v46  ;;  %v3044_v22 = vmul.f32 0.00390625, %v3019_v42  ;;  %3141 = vadd.xlane.f32.xlu1 %v3140_v13  ;;  %3580 = vmatpush1.bf16.msra.mxu1 %v5521_v51  ;;  %v7455_v51 = vld [vmem:[#allocation10 + $0x10] ss:$8 sps:$4 sm:$0xff]  }
 0x621   : > { %v7397_v34 = vsub.f32 %v7241_v63, %v3044_v22  ;;  %v7400_v35 = vsub.f32 %v7244_v9, %v3044_v22  ;;  %v3101_v43 = vmul.f32 %v7391_v29, %v7391_v29  ;;  %v3102_v28 = vmul.f32 %v7394_v12, %v7394_v12 }
 0x623   : > { %v3143_v56 = vadd.f32 %v3102_v28, %v3101_v43  ;;  %v3103_v31 = vmul.f32 %v7397_v34, %v7397_v34  ;;  %v3104_v37 = vmul.f32 %v7400_v35, %v7400_v35  ;;  %v7458_v43 = vld [vmem:[#allocation10 + $0x24] ss:$8 sps:$4 sm:$0xff]   ;;  %v7461_v28 = vld [vmem:[#allocation10 + $0x20] ss:$8 sps:$4 sm:$0xff]  }
 0x624   : > { %v3022_v63 = vpop.xlane.xlu0 %3021 }
 0x625   : > { %v3045_v3 = vmul.f32 0.00390625, %v3022_v63  ;;  %3144 = vadd.xlane.f32.xlu0 %v3143_v56  ;;  %v3146_v9 = vadd.f32 %v3104_v37, %v3103_v31  ;;  %v7464_v56 = vld [vmem:[#allocation10 + $0x34] ss:$8 sps:$4 sm:$0xff]   ;;  %v7467_v31 = vld [vmem:[#allocation10 + $0x30] ss:$8 sps:$4 sm:$0xff]  }
 0x626   : > { %v3025_v47 = vpop.xlane.xlu1 %3024  ;;  %v7470_v37 = vld [vmem:[#allocation10 + $0x44] ss:$8 sps:$4 sm:$0xff]   ;;  %v7473_v63 = vld [vmem:[#allocation10 + $0x40] ss:$8 sps:$4 sm:$0xff]  }
 0x627   : > { %v7411_v5 = vsub.f32 %v7253_v49, %v3045_v3  ;;  %v7414_v45 = vsub.f32 %v7257_v40, %v3045_v3  ;;  %v3046_v54 = vmul.f32 0.00390625, %v3025_v47  ;;  %3147 = vadd.xlane.f32.xlu1 %v3146_v9  ;;  %v7476_v3 = vld [vmem:[#allocation10 + $0x54] ss:$8 sps:$4 sm:$0xff]   ;;  %v7479_v9 = vld [vmem:[#allocation10 + $0x50] ss:$8 sps:$4 sm:$0xff]  }
 0x628   : > { %v7482_v47 = vld [vmem:[#allocation10 + $0x64] ss:$8 sps:$4 sm:$0xff]  }
 0x629   : > { %v7417_v27 = vsub.f32 %v7261_v38, %v3046_v54  ;;  %v7420_v59 = vsub.f32 %v7264_v2, %v3046_v54  ;;  %v3105_v61 = vmul.f32 %v7411_v5, %v7411_v5  ;;  %v3106_v19 = vmul.f32 %v7414_v45, %v7414_v45  ;;  %v7485_v54 = vld [vmem:[#allocation10 + $0x60] ss:$8 sps:$4 sm:$0xff]  }
 0x62b   : > { %8493 = vst [vmem:[#allocation22_spill] sm:$0xff] %v7417_v27  ;;  %8494 = vst [vmem:[#allocation23_spill] sm:$0xff] %v7420_v59  ;;  %v3149_v16 = vadd.f32 %v3106_v19, %v3105_v61  ;;  %v3107_v49 = vmul.f32 %v7417_v27, %v7417_v27  ;;  %v3108_v40 = vmul.f32 %v7420_v59, %v7420_v59  ;;  %v7488_v61 = vld [vmem:[#allocation10 + $0x74] ss:$8 sps:$4 sm:$0xff]   ;;  %v7491_v19 = vld [vmem:[#allocation10 + $0x70] ss:$8 sps:$4 sm:$0xff]  }
 0x62c   : > { %v3028_v62 = vpop.xlane.xlu0 %3027 }
 0x62d   : > { %v3047_v1 = vmul.f32 0.00390625, %v3028_v62  ;;  %3150 = vadd.xlane.f32.xlu0 %v3149_v16  ;;  %v3152_v38 = vadd.f32 %v3108_v40, %v3107_v49  ;;  %v7494_v16 = vld [vmem:[#allocation10 + $0x84] ss:$8 sps:$4 sm:$0xff]   ;;  %v7497_v49 = vld [vmem:[#allocation10 + $0x80] ss:$8 sps:$4 sm:$0xff]  }
 0x62e   : > { %v3031_v55 = vpop.xlane.xlu1 %3030  ;;  %v7500_v40 = vld [vmem:[#allocation10 + $0x94] ss:$8 sps:$4 sm:$0xff]   ;;  %v7503_v62 = vld [vmem:[#allocation10 + $0x90] ss:$8 sps:$4 sm:$0xff]  }
 0x62f   : > { %v7431_v2 = vsub.f32 %v7273_v20, %v3047_v1  ;;  %v7434_v26 = vsub.f32 %v7277_v10, %v3047_v1  ;;  %v3048_v11 = vmul.f32 0.00390625, %v3031_v55  ;;  %3153 = vadd.xlane.f32.xlu1 %v3152_v38  ;;  %v7506_v1 = vld [vmem:[#allocation10 + $0xa4] ss:$8 sps:$4 sm:$0xff]   ;;  %v7509_v38 = vld [vmem:[#allocation10 + $0xa0] ss:$8 sps:$4 sm:$0xff]  }
 0x630   : > { %8499 = vst [vmem:[#allocation28_spill] sm:$0xff] %v7506_v1  ;;  %8500 = vst [vmem:[#allocation29_spill] sm:$0xff] %v7509_v38  ;;  %v7512_v55 = vld [vmem:[#allocation10 + $0xb4] ss:$8 sps:$4 sm:$0xff]  }
 0x631   : > { %8495 = vst [vmem:[#allocation24_spill] sm:$0xff] %v7431_v2  ;;  %8496 = vst [vmem:[#allocation25_spill] sm:$0xff] %v7434_v26  ;;  %v7437_v7 = vsub.f32 %v7281_v25, %v3048_v11  ;;  %v7440_v41 = vsub.f32 %v7284_v58, %v3048_v11  ;;  %v3109_v46 = vmul.f32 %v7431_v2, %v7431_v2  ;;  %v7450_v25 = vld [vmem:[#allocation10] ss:$8 sps:$4 sm:$0xff]   ;;  %v5526_v58 = vld [vmem:[#allocation10 + $0x4] ss:$8 sps:$4 sm:$0xff]  }
 0x632   : > { %v3110_v13 = vmul.f32 %v7434_v26, %v7434_v26  ;;  %3914 = vmatprep.subr.bf16.mxu0 %v5526_v58  ;;  %5145 = vmatprep.subr.bf16.mxu1 %v5526_v58  ;;  %8501 = vst [vmem:[#allocation30_spill] sm:$0xff] %v7512_v55  ;;  %v7515_v11 = vld [vmem:[#allocation10 + $0xb0] ss:$8 sps:$4 sm:$0xff]  }
 0x633   : > { %8497 = vst [vmem:[#allocation26_spill] sm:$0xff] %v7437_v7  ;;  %8498 = vst [vmem:[#allocation27_spill] sm:$0xff] %v7440_v41  ;;  %v3111_v20 = vmul.f32 %v7437_v7, %v7437_v7  ;;  %v3112_v10 = vmul.f32 %v7440_v41, %v7440_v41  ;;  %3915 = vmatpush1.bf16.msra.mxu0 %v7450_v25  ;;  %v7524_v7 = vld [vmem:[#allocation10 + $0xd4] ss:$8 sps:$4 sm:$0xff]   ;;  %v7527_v2 = vld [vmem:[#allocation10 + $0xd0] ss:$8 sps:$4 sm:$0xff]  }
 0x634   : > { %v3155_v42 = vadd.f32 %v3110_v13, %v3109_v46  ;;  %3916 = vmatprep.subr.bf16.mxu0 %v7452_v15  ;;  %8502 = vst [vmem:[#allocation31_spill] sm:$0xff] %v7515_v11  ;;  %v7518_v46 = vld [vmem:[#allocation10 + $0xc4] ss:$8 sps:$4 sm:$0xff]   ;;  %8505 = vst [vmem:[#allocation34_spill] sm:$0xff] %v7524_v7 }
 0x635   : > { %v3158_v22 = vadd.f32 %v3112_v10, %v3111_v20  ;;  %8503 = vst [vmem:[#allocation32_spill] sm:$0xff] %v7518_v46  ;;  %v7521_v10 = vld [vmem:[#allocation10 + $0xc0] ss:$8 sps:$4 sm:$0xff]   ;;  %8506 = vst [vmem:[#allocation35_spill] sm:$0xff] %v7527_v2 }
 0x636   : > { %3156 = vadd.xlane.f32.xlu0 %v3155_v42  ;;  %8504 = vst [vmem:[#allocation33_spill] sm:$0xff] %v7521_v10 }
 0x637   : > { %3159 = vadd.xlane.f32.xlu1 %v3158_v22  ;;  %3917 = vmatpush1.bf16.msra.mxu0 %v7455_v51 }
 0x638   : > { %3918 = vmatprep.subr.bf16.mxu0 %v7458_v43 }
 0x63b   : > { %3919 = vmatpush1.bf16.msra.mxu0 %v7461_v28 }
 0x63c   : > { %3920 = vmatprep.subr.bf16.mxu0 %v7464_v56 }
 0x63f   : > { %3921 = vmatpush1.bf16.msra.mxu0 %v7467_v31 }
 0x640   : > { %3922 = vmatprep.subr.bf16.mxu0 %v7470_v37 }
 0x643   : > { %3923 = vmatpush1.bf16.msra.mxu0 %v7473_v63 }
 0x644   : > { %3924 = vmatprep.subr.bf16.mxu0 %v7476_v3 }
 0x647   : > { %3925 = vmatpush1.bf16.msra.mxu0 %v7479_v9 }
 0x648   : > { %3926 = vmatprep.subr.bf16.mxu0 %v7482_v47 }
 0x64b   : > { %3927 = vmatpush1.bf16.msra.mxu0 %v7485_v54 }
 0x64c   : > { %3928 = vmatprep.subr.bf16.mxu0 %v7488_v61 }
 0x64f   : > { %3929 = vmatpush1.bf16.msra.mxu0 %v7491_v19 }
 0x650   : > { %3930 = vmatprep.subr.bf16.mxu0 %v7494_v16 }
 0x653   : > { %3931 = vmatpush1.bf16.msra.mxu0 %v7497_v49 }
 0x654   : > { %3932 = vmatprep.subr.bf16.mxu0 %v7500_v40 }
 0x657   : > { %3933 = vmatpush1.bf16.msra.mxu0 %v7503_v62 }
 0x658   : > { %3934 = vmatprep.subr.bf16.mxu0 %v7506_v1 }
 0x65b   : > { %3935 = vmatpush1.bf16.msra.mxu0 %v7509_v38 }
 0x65c   : > { %3936 = vmatprep.subr.bf16.mxu0 %v7512_v55 }
 0x65f   : > { %3937 = vmatpush1.bf16.msra.mxu0 %v7515_v11 }
 0x660   : > { %3938 = vmatprep.subr.bf16.mxu0 %v7518_v46 }
 0x663   : > { %3939 = vmatpush1.bf16.msra.mxu0 %v7521_v10 }
 0x664   : > { %3940 = vmatprep.subr.bf16.mxu0 %v7524_v7 }
 0x667   : > { %3941 = vmatpush1.bf16.msra.mxu0 %v7527_v2 }
 0x68a   : > { %v3115_v13 = vpop.xlane.xlu0 %3114 }
 0x68b   : > { %v3161_v42 = vmul.f32 0.00390625, %v3115_v13 }
 0x68c   : > { %v3118_v20 = vpop.xlane.xlu1 %3117 }
 0x68d   : > { %v3177_v22 = vadd.f32 1e-05, %v3161_v42  ;;  %v3162_v58 = vmul.f32 0.00390625, %v3118_v20  ;;  %v3241_v42 = vld [vmem:[%s8424_s9] sm:$0x3] }
 0x68f   : > { %5700 = vrsqrt.f32 %v3177_v22  ;;  %v3178_v41 = vadd.f32 1e-05, %v3162_v58  ;;  %v7535_v58 = vrot.slane %v3241_v42, %v6524_v30 }
 0x691   : > { %5702 = vrsqrt.f32 %v3178_v41  ;;  %v7538_v41 = vrot.slane %v3241_v42, %v6528_v33 }
 0x692   : > { %v3121_v13 = vpop.xlane.xlu0 %3120 }
 0x693   : > { %v3163_v26 = vmul.f32 0.00390625, %v3121_v13  ;;  %v3285_v13 = vld [vmem:[%s8425_s10] sm:$0x3] }
 0x694   : > { %v3124_v11 = vpop.xlane.xlu1 %3123  ;;  %v7549_v55 = vrot.slane %v3285_v13, %v6528_v33 }
 0x695   : > { %v3179_v20 = vadd.f32 1e-05, %v3163_v26  ;;  %v3164_v46 = vmul.f32 0.00390625, %v3124_v11 }
 0x697   : > { %5704 = vrsqrt.f32 %v3179_v20  ;;  %v3180_v22 = vadd.f32 1e-05, %v3164_v46  ;;  %v7546_v46 = vrot.slane %v3285_v13, %v6524_v30 }
 0x699   : > { %v5701_v7 = vpop.eup %5700  ;;  %5706 = vrsqrt.f32 %v3180_v22 }
 0x69a   : > { %v3209_v2 = vmul.f32 %v5701_v7, %v7291_v44  ;;  %v3127_v10 = vpop.xlane.xlu0 %3126  ;;  %v3210_v26 = vmul.f32 %v5701_v7, %v7294_v14 }
 0x69b   : > { %v5703_v11 = vpop.eup %5702  ;;  %v3165_v20 = vmul.f32 0.00390625, %v3127_v10 }
 0x69c   : > { %v3253_v42 = vmul.f32 %v7535_v58, %v3209_v2  ;;  %v3211_v38 = vmul.f32 %v5703_v11, %v7297_v53  ;;  %v3130_v27 = vpop.xlane.xlu1 %3129  ;;  %v3212_v22 = vmul.f32 %v5703_v11, %v7300_v23  ;;  %v3254_v44 = vmul.f32 %v7538_v41, %v3210_v26 }
 0x69d   : > { %v3181_v59 = vadd.f32 1e-05, %v3165_v20  ;;  %v3166_v1 = vmul.f32 0.00390625, %v3130_v27 }
 0x69e   : > { %v3255_v14 = vmul.f32 %v7535_v58, %v3211_v38  ;;  %v3256_v7 = vmul.f32 %v7538_v41, %v3212_v22  ;;  %v7558_v13 = vadd.f32 %v7549_v55, %v3254_v44  ;;  %v7564_v53 = vadd.f32 %v7546_v46, %v3253_v42 }
 0x69f   : > { %5708 = vrsqrt.f32 %v3181_v59  ;;  %v3182_v10 = vadd.f32 1e-05, %v3166_v1 }
 0x6a0   : > { %8507 = vst [vmem:[#allocation36_spill] sm:$0xff] %v7558_v13  ;;  %v7561_v2 = vadd.f32 %v7549_v55, %v3256_v7  ;;  %v7567_v23 = vadd.f32 %v7546_v46, %v3255_v14 }
 0x6a1   : > { %v5705_v26 = vpop.eup %5704  ;;  %5710 = vrsqrt.f32 %v3182_v10 }
 0x6a2   : > { %8508 = vst [vmem:[#allocation37_spill] sm:$0xff] %v7561_v2  ;;  %8509 = vst [vmem:[#allocation38_spill] sm:$0xff] %v7567_v23  ;;  %v3133_v27 = vpop.xlane.xlu0 %3132  ;;  %v3330_v38 = vpack.c.bf16 %v7561_v2, %v7558_v13  ;;  %v3329_v59 = vpack.c.bf16 %v7567_v23, %v7564_v53  ;;  %v3214_v1 = vmul.f32 %v5705_v26, %v7314_v57 }
 0x6a3   : > { %v3213_v11 = vmul.f32 %v5705_v26, %v7311_v8  ;;  %v5707_v20 = vpop.eup %5706  ;;  %v3167_v22 = vmul.f32 0.00390625, %v3133_v27 }
 0x6a4   : > { %v3136_v42 = vpop.xlane.xlu1 %3135  ;;  %3581 = vmatprep.mubr.bf16.mxu1 %v3330_v38  ;;  %v3216_v44 = vmul.f32 %v5707_v20, %v7320_v0  ;;  %v3258_v14 = vmul.f32 %v7538_v41, %v3214_v1  ;;  %v3215_v7 = vmul.f32 %v5707_v20, %v7317_v18 }
 0x6a5   : > { %v3257_v10 = vmul.f32 %v7535_v58, %v3213_v11  ;;  %v3183_v2 = vadd.f32 1e-05, %v3167_v22  ;;  %v3168_v13 = vmul.f32 0.00390625, %v3136_v42  ;;  %3582 = vmatmul.mubr.bf16.vlgmr.msra.gmra.mrb[80].mxu1 %v3329_v59 }
 0x6a6   : > { %v3260_v23 = vmul.f32 %v7538_v41, %v3216_v44  ;;  %v3259_v57 = vmul.f32 %v7535_v58, %v3215_v7  ;;  %5161 = vmatpush1.bf16.msra.mxu1 %v7450_v25  ;;  %v7584_v0 = vadd.f32 %v7549_v55, %v3258_v14 }
 0x6a7   : > { %5712 = vrsqrt.f32 %v3183_v2  ;;  %v3184_v8 = vadd.f32 1e-05, %v3168_v13  ;;  %5146 = vmatprep.subr.bf16.mxu1 %v7452_v15  ;;  %v7590_v26 = vadd.f32 %v7546_v46, %v3257_v10 }
 0x6a8   : > { %v7587_v18 = vadd.f32 %v7549_v55, %v3260_v23  ;;  %v7593_v27 = vadd.f32 %v7546_v46, %v3259_v57 }
 0x6a9   : > { %v5709_v38 = vpop.eup %5708  ;;  %5714 = vrsqrt.f32 %v3184_v8 }
 0x6aa   : > { %v3139_v59 = vpop.xlane.xlu0 %3138  ;;  %v3332_v25 = vpack.c.bf16 %v7587_v18, %v7584_v0  ;;  %v3331_v15 = vpack.c.bf16 %v7593_v27, %v7590_v26  ;;  %v3218_v13 = vmul.f32 %v5709_v38, %v7334_v21  ;;  %v3217_v2 = vmul.f32 %v5709_v38, %v7331_v39  ;;  %5162 = vmatpush1.bf16.msra.mxu1 %v7455_v51 }
 0x6ab   : > { %v5711_v23 = vpop.eup %5710  ;;  %v3169_v1 = vmul.f32 0.00390625, %v3139_v59  ;;  %5147 = vmatprep.subr.bf16.mxu1 %v7458_v43 }
 0x6ac   : > { %v3142_v11 = vpop.xlane.xlu1 %3141  ;;  %3591 = vmatprep.mubr.bf16.mxu1 %v3332_v25  ;;  %v3220_v20 = vmul.f32 %v5711_v23, %v7340_v32  ;;  %v3262_v22 = vmul.f32 %v7538_v41, %v3218_v13  ;;  %v3219_v42 = vmul.f32 %v5711_v23, %v7337_v48  ;;  %v3261_v44 = vmul.f32 %v7535_v58, %v3217_v2 }
 0x6ad   : > { %v3185_v14 = vadd.f32 1e-05, %v3169_v1  ;;  %v3170_v21 = vmul.f32 0.00390625, %v3142_v11  ;;  %3592 = vmatmul.mubr.bf16.gmra.mrb[84].mxu1 %v3331_v15 }
 0x6ae   : > { %v3264_v39 = vmul.f32 %v7538_v41, %v3220_v20  ;;  %v3263_v51 = vmul.f32 %v7535_v58, %v3219_v42  ;;  %5163 = vmatpush1.bf16.msra.mxu1 %v7461_v28  ;;  %v7612_v32 = vadd.f32 %v7549_v55, %v3262_v22  ;;  %v7618_v7 = vadd.f32 %v7546_v46, %v3261_v44 }
 0x6af   : > { %5716 = vrsqrt.f32 %v3185_v14  ;;  %v3186_v43 = vadd.f32 1e-05, %v3170_v21  ;;  %5148 = vmatprep.subr.bf16.mxu1 %v7464_v56 }
 0x6b0   : > { %v7615_v48 = vadd.f32 %v7549_v55, %v3264_v39  ;;  %v7621_v10 = vadd.f32 %v7546_v46, %v3263_v51 }
 0x6b1   : > { %v5713_v57 = vpop.eup %5712  ;;  %5718 = vrsqrt.f32 %v3186_v43 }
 0x6b2   : > { %v3145_v8 = vpop.xlane.xlu0 %3144  ;;  %v3334_v28 = vpack.c.bf16 %v7615_v48, %v7612_v32  ;;  %v3333_v56 = vpack.c.bf16 %v7621_v10, %v7618_v7  ;;  %v3222_v38 = vmul.f32 %v5713_v57, %v7354_v17  ;;  %v3221_v59 = vmul.f32 %v5713_v57, %v7351_v52  ;;  %5164 = vmatpush1.bf16.msra.mxu1 %v7467_v31 }
 0x6b3   : > { %v5715_v25 = vpop.eup %5714  ;;  %v3171_v15 = vmul.f32 0.00390625, %v3145_v8  ;;  %5149 = vmatprep.subr.bf16.mxu1 %v7470_v37 }
 0x6b4   : > { %v3148_v13 = vpop.xlane.xlu1 %3147  ;;  %3601 = vmatprep.mubr.bf16.mxu1 %v3334_v28  ;;  %v3224_v2 = vmul.f32 %v5715_v25, %v7360_v60  ;;  %v3266_v23 = vmul.f32 %v7538_v41, %v3222_v38  ;;  %v3223_v1 = vmul.f32 %v5715_v25, %v7357_v24  ;;  %v3265_v11 = vmul.f32 %v7535_v58, %v3221_v59 }
 0x6b5   : > { %v3187_v20 = vadd.f32 1e-05, %v3171_v15  ;;  %v3172_v17 = vmul.f32 0.00390625, %v3148_v13  ;;  %3602 = vmatmul.mubr.bf16.gmra.mrb[88].mxu1 %v3333_v56 }
 0x6b6   : > { %v3268_v52 = vmul.f32 %v7538_v41, %v3224_v2  ;;  %v3267_v31 = vmul.f32 %v7535_v58, %v3223_v1  ;;  %5165 = vmatpush1.bf16.msra.mxu1 %v7473_v63  ;;  %v7640_v60 = vadd.f32 %v7549_v55, %v3266_v23  ;;  %v7646_v22 = vadd.f32 %v7546_v46, %v3265_v11 }
 0x6b7   : > { %5720 = vrsqrt.f32 %v3187_v20  ;;  %v3188_v37 = vadd.f32 1e-05, %v3172_v17  ;;  %5150 = vmatprep.subr.bf16.mxu1 %v7476_v3 }
 0x6b8   : > { %v7643_v24 = vadd.f32 %v7549_v55, %v3268_v52  ;;  %v7649_v42 = vadd.f32 %v7546_v46, %v3267_v31 }
 0x6b9   : > { %v5717_v44 = vpop.eup %5716  ;;  %5722 = vrsqrt.f32 %v3188_v37 }
 0x6ba   : > { %v3151_v14 = vpop.xlane.xlu0 %3150  ;;  %v3336_v63 = vpack.c.bf16 %v7643_v24, %v7640_v60  ;;  %v3335_v3 = vpack.c.bf16 %v7649_v42, %v7646_v22  ;;  %v3226_v21 = vmul.f32 %v5717_v44, %v7374_v50  ;;  %v3225_v39 = vmul.f32 %v5717_v44, %v7371_v4  ;;  %5166 = vmatpush1.bf16.msra.mxu1 %v7479_v9 }
 0x6bb   : > { %v5719_v51 = vpop.eup %5718  ;;  %v3173_v43 = vmul.f32 0.00390625, %v3151_v14  ;;  %5151 = vmatprep.subr.bf16.mxu1 %v7482_v47 }
 0x6bc   : > { %v3154_v57 = vpop.xlane.xlu1 %3153  ;;  %3611 = vmatprep.mubr.bf16.mxu1 %v3336_v63  ;;  %v3228_v8 = vmul.f32 %v5719_v51, %v7380_v36  ;;  %v3270_v28 = vmul.f32 %v7538_v41, %v3226_v21  ;;  %v3227_v56 = vmul.f32 %v5719_v51, %v7377_v6  ;;  %v3269_v38 = vmul.f32 %v7535_v58, %v3225_v39 }
 0x6bd   : > { %v3189_v59 = vadd.f32 1e-05, %v3173_v43  ;;  %v3174_v50 = vmul.f32 0.00390625, %v3154_v57  ;;  %3612 = vmatmul.mubr.bf16.gmra.mrb[92].mxu1 %v3335_v3  ;;  %v8510_v57 = vld [vmem:[#allocation28_spill] sm:$0xff] }
 0x6be   : > { %v3272_v4 = vmul.f32 %v7538_v41, %v3228_v8  ;;  %v3271_v9 = vmul.f32 %v7535_v58, %v3227_v56  ;;  %5167 = vmatpush1.bf16.msra.mxu1 %v7485_v54  ;;  %v7668_v36 = vadd.f32 %v7549_v55, %v3270_v28  ;;  %v7674_v25 = vadd.f32 %v7546_v46, %v3269_v38  ;;  %v8511_v8 = vld [vmem:[#allocation23_spill] sm:$0xff]  ;;  %v8512_v38 = vld [vmem:[#allocation22_spill] sm:$0xff] }
 0x6bf   : > { %5724 = vrsqrt.f32 %v3189_v59  ;;  %v3190_v47 = vadd.f32 1e-05, %v3174_v50  ;;  %5152 = vmatprep.subr.bf16.mxu1 %v7488_v61 }
 0x6c0   : > { %v7671_v6 = vadd.f32 %v7549_v55, %v3272_v4  ;;  %v7677_v15 = vadd.f32 %v7546_v46, %v3271_v9 }
 0x6c1   : > { %v5721_v13 = vpop.eup %5720  ;;  %5726 = vrsqrt.f32 %v3190_v47 }
 0x6c2   : > { %v3338_v54 = vpack.c.bf16 %v7671_v6, %v7668_v36  ;;  %v3337_v61 = vpack.c.bf16 %v7677_v15, %v7674_v25  ;;  %v3230_v23 = vmul.f32 %v5721_v13, %v7394_v12  ;;  %v3229_v1 = vmul.f32 %v5721_v13, %v7391_v29  ;;  %5168 = vmatpush1.bf16.msra.mxu1 %v7491_v19 }
 0x6c3   : > { %v3157_v2 = vpop.xlane.xlu0 %3156  ;;  %v5723_v11 = vpop.eup %5722  ;;  %5153 = vmatprep.subr.bf16.mxu1 %v7494_v16 }
 0x6c4   : > { %v3175_v20 = vmul.f32 0.00390625, %v3157_v2  ;;  %v3160_v17 = vpop.xlane.xlu1 %3159  ;;  %3621 = vmatprep.mubr.bf16.mxu1 %v3338_v54  ;;  %v3232_v52 = vmul.f32 %v5723_v11, %v7400_v35  ;;  %v3274_v31 = vmul.f32 %v7538_v41, %v3230_v23  ;;  %v3231_v37 = vmul.f32 %v5723_v11, %v7397_v34 }
 0x6c5   : > { %v3273_v44 = vmul.f32 %v7535_v58, %v3229_v1  ;;  %v3176_v12 = vmul.f32 0.00390625, %v3160_v17  ;;  %3622 = vmatmul.mubr.bf16.gmra.mrb[96].mxu1 %v3337_v61  ;;  %v8515_v1 = vld [vmem:[#allocation25_spill] sm:$0xff] }
 0x6c6   : > { %v3191_v14 = vadd.f32 1e-05, %v3175_v20  ;;  %v3276_v29 = vmul.f32 %v7538_v41, %v3232_v52  ;;  %v3275_v19 = vmul.f32 %v7535_v58, %v3231_v37  ;;  %5169 = vmatpush1.bf16.msra.mxu1 %v7497_v49  ;;  %v7696_v35 = vadd.f32 %v7549_v55, %v3274_v31  ;;  %v8516_v20 = vld [vmem:[#allocation24_spill] sm:$0xff]  ;;  %v8517_v52 = vld [vmem:[#allocation31_spill] sm:$0xff] }
 0x6c7   : > { %v3192_v16 = vadd.f32 1e-05, %v3176_v12  ;;  %5154 = vmatprep.subr.bf16.mxu1 %v7500_v40  ;;  %v7702_v63 = vadd.f32 %v7546_v46, %v3273_v44  ;;  %v8518_v37 = vld [vmem:[#allocation32_spill] sm:$0xff]  ;;  %v8519_v44 = vld [vmem:[#allocation27_spill] sm:$0xff] }
 0x6c8   : > { %5728 = vrsqrt.f32 %v3191_v14  ;;  %v7699_v34 = vadd.f32 %v7549_v55, %v3276_v29  ;;  %v7705_v3 = vadd.f32 %v7546_v46, %v3275_v19  ;;  %v8520_v29 = vld [vmem:[#allocation26_spill] sm:$0xff] }
 0x6c9   : > { %v5725_v21 = vpop.eup %5724  ;;  %5730 = vrsqrt.f32 %v3192_v16 }
 0x6ca   : > { %v3340_v49 = vpack.c.bf16 %v7699_v34, %v7696_v35  ;;  %v3339_v40 = vpack.c.bf16 %v7705_v3, %v7702_v63  ;;  %v3234_v39 = vmul.f32 %v5725_v21, %v7414_v45  ;;  %v3233_v51 = vmul.f32 %v5725_v21, %v7411_v5  ;;  %5170 = vmatpush1.bf16.msra.mxu1 %v7503_v62  ;;  %v8513_v5 = vld [vmem:[#allocation29_spill] sm:$0xff]  ;;  %v8514_v62 = vld [vmem:[#allocation30_spill] sm:$0xff] }
 0x6cb   : > { %v5727_v43 = vpop.eup %5726  ;;  %5155 = vmatprep.subr.bf16.mxu1 %v8510_v57 }
 0x6cc   : > { %3631 = vmatprep.mubr.bf16.mxu1 %v3340_v49  ;;  %v3236_v28 = vmul.f32 %v5727_v43, %v8511_v8  ;;  %v3278_v56 = vmul.f32 %v7538_v41, %v3234_v39  ;;  %v3235_v59 = vmul.f32 %v5727_v43, %v8512_v38  ;;  %v3277_v50 = vmul.f32 %v7535_v58, %v3233_v51  ;;  %v8522_v39 = vld [vmem:[#allocation34_spill] sm:$0xff] }
 0x6cd   : > { %3632 = vmatmul.mubr.bf16.gmra.mrb[100].mxu1 %v3339_v40  ;;  %v8521_v40 = vld [vmem:[#allocation33_spill] sm:$0xff]  ;;  %v5566_v38 = vld [vmem:[#allocation10 + $0xe0] ss:$8 sps:$4 sm:$0xff]  }
 0x6ce   : > { %v3280_v4 = vmul.f32 %v7538_v41, %v3236_v28  ;;  %v3279_v45 = vmul.f32 %v7535_v58, %v3235_v59  ;;  %5171 = vmatpush1.bf16.msra.mxu1 %v8513_v5  ;;  %v7724_v9 = vadd.f32 %v7549_v55, %v3278_v56  ;;  %v7730_v13 = vadd.f32 %v7546_v46, %v3277_v50  ;;  %v8523_v28 = vld [vmem:[#allocation35_spill] sm:$0xff]  ;;  %v5569_v59 = vld [vmem:[#allocation10 + $0xf0] ss:$8 sps:$4 sm:$0xff]  }
 0x6cf   : > { %5156 = vmatprep.subr.bf16.mxu1 %v8514_v62  ;;  %v5568_v56 = vld [vmem:[#allocation10 + $0xe4] ss:$8 sps:$4 sm:$0xff]  }
 0x6d0   : > { %v7727_v47 = vadd.f32 %v7549_v55, %v3280_v4  ;;  %v7733_v2 = vadd.f32 %v7546_v46, %v3279_v45  ;;  %3942 = vmatprep.subr.bf16.mxu0 %v5568_v56 }
 0x6d1   : > { %3943 = vmatpush1.bf16.msra.mxu0 %v5566_v38 }
 0x6d2   : > { %v5729_v54 = vpop.eup %5728  ;;  %v3342_v61 = vpack.c.bf16 %v7727_v47, %v7724_v9  ;;  %v3341_v23 = vpack.c.bf16 %v7733_v2, %v7730_v13  ;;  %5172 = vmatpush1.bf16.msra.mxu1 %v8517_v52 }
 0x6d3   : > { %v3238_v11 = vmul.f32 %v5729_v54, %v8515_v1  ;;  %v3237_v17 = vmul.f32 %v5729_v54, %v8516_v20  ;;  %v5731_v31 = vpop.eup %5730  ;;  %5157 = vmatprep.subr.bf16.mxu1 %v8518_v37 }
 0x6d4   : > { %3641 = vmatprep.mubr.bf16.mxu1 %v3342_v61  ;;  %v3240_v14 = vmul.f32 %v5731_v31, %v8519_v44  ;;  %v3239_v19 = vmul.f32 %v5731_v31, %v8520_v29 }
 0x6d5   : > { %v3282_v12 = vmul.f32 %v7538_v41, %v3238_v11  ;;  %v3281_v16 = vmul.f32 %v7535_v58, %v3237_v17  ;;  %3642 = vmatmul.mubr.bf16.gmra.mrb[104].mxu1 %v3341_v23 }
 0x6d6   : > { %v3284_v21 = vmul.f32 %v7538_v41, %v3240_v14  ;;  %v3283_v49 = vmul.f32 %v7535_v58, %v3239_v19  ;;  %5173 = vmatpush1.bf16.msra.mxu1 %v8521_v40 }
 0x6d7   : > { %5158 = vmatprep.subr.bf16.mxu1 %v8522_v39  ;;  %v7752_v51 = vadd.f32 %v7549_v55, %v3282_v12  ;;  %v7758_v57 = vadd.f32 %v7546_v46, %v3281_v16 }
 0x6d8   : > { %v7755_v43 = vadd.f32 %v7549_v55, %v3284_v21  ;;  %v7761_v8 = vadd.f32 %v7546_v46, %v3283_v49  ;;  %v5571_v55 = vld [vmem:[#allocation10 + $0xf4] ss:$8 sps:$4 sm:$0xff]   ;;  %v3377_v46 = vld [vmem:[%s8524_s28] sm:$0x3]  ;;  %s8150_s28 = scalar_lea.sflag [#allocation13], %s4440_s8 }
 0x6d9   : > { %3944 = vmatprep.subr.bf16.mxu0 %v5571_v55  ;;  %v7772_v50 = vrot.slane %v3377_v46, %v6524_v30  ;;  %v7775_v4 = vrot.slane %v3377_v46, %v6528_v33 }
 0x6da   : > { %v3344_v41 = vpack.c.bf16 %v7755_v43, %v7752_v51  ;;  %v3343_v58 = vpack.c.bf16 %v7761_v8, %v7758_v57  ;;  %5174 = vmatpush1.bf16.msra.mxu1 %v8523_v28  ;;  %3945 = vmatpush1.bf16.msra.mxu0 %v5569_v59 }
 0x6db   : > { %5159 = vmatprep.subr.bf16.mxu1 %v5568_v56 }
 0x6dc   : > { %3651 = vmatprep.mubr.bf16.mxu1 %v3344_v41 }
 0x6dd   : > { %3652 = vmatmul.mubr.bf16.gmra.mrb[108].mxu1 %v3343_v58 }
 0x6de   : > { %5175 = vmatpush1.bf16.msra.mxu1 %v5566_v38 }
 0x6df   : > { %5160 = vmatprep.subr.bf16.mxu1 %v5571_v55 }
 0x6e2   : > { %5176 = vmatpush1.bf16.msra.mxu1 %v5569_v59 }
 0x778   : > { %v3583_v45 = vpop.f32.mrb[80].mxu1 }
 0x779   : > { %v3584_v5 = vadd.f32 %v3583_v45, %v7772_v50  ;;  %v3585_v62 = vpop.f32.mrb[81].mxu1 }
 0x77a   : > { %v3586_v54 = vadd.f32 %v3585_v62, %v7775_v4  ;;  %v3587_v61 = vpop.f32.mrb[82].mxu1 }
 0x77b   : > { %v3588_v23 = vadd.f32 %v3587_v61, %v7772_v50  ;;  %v3589_v1 = vpop.f32.mrb[83].mxu1  ;;  %v3662_v20 = vmax.f32 %v3584_v5, 0.0 }
 0x77c   : > { %v3590_v11 = vadd.f32 %v3589_v1, %v7775_v4  ;;  %v3663_v52 = vmax.f32 %v3586_v54, 0.0 }
 0x77d   : > { %v3664_v17 = vmax.f32 %v3588_v23, 0.0 }
 0x77e   : > { %v3665_v31 = vmax.f32 %v3590_v11, 0.0 }
 0x77f   : > { %v3694_v37 = vpack.c.bf16 %v3664_v17, %v3662_v20 }
 0x780   : > { %v3695_v44 = vpack.c.bf16 %v3665_v31, %v3663_v52  ;;  %v3593_v14 = vpop.f32.mrb[84].mxu1 }
 0x781   : > { %v3594_v12 = vadd.f32 %v3593_v14, %v7772_v50  ;;  %v3595_v29 = vpop.f32.mrb[85].mxu1 }
 0x782   : > { %v3596_v19 = vadd.f32 %v3595_v29, %v7775_v4  ;;  %v3597_v16 = vpop.f32.mrb[86].mxu1  ;;  %3946 = vmatprep.mubr.bf16.mxu0 %v3695_v44 }
 0x783   : > { %v3598_v21 = vadd.f32 %v3597_v16, %v7772_v50  ;;  %v3599_v49 = vpop.f32.mrb[87].mxu1  ;;  %3947 = vmatmul.mubr.bf16.vlgmr.msra.gmra.mrb[112].mxu0 %v3694_v37  ;;  %v3666_v39 = vmax.f32 %v3594_v12, 0.0 }
 0x784   : > { %v3600_v40 = vadd.f32 %v3599_v49, %v7775_v4  ;;  %v3667_v58 = vmax.f32 %v3596_v19, 0.0 }
 0x785   : > { %v3668_v41 = vmax.f32 %v3598_v21, 0.0 }
 0x786   : > { %v3669_v28 = vmax.f32 %v3600_v40, 0.0 }
 0x787   : > { %v3696_v56 = vpack.c.bf16 %v3668_v41, %v3666_v39 }
 0x788   : > { %v3697_v38 = vpack.c.bf16 %v3669_v28, %v3667_v58  ;;  %v3603_v55 = vpop.f32.mrb[88].mxu1 }
 0x789   : > { %v3604_v59 = vadd.f32 %v3603_v55, %v7772_v50  ;;  %v3605_v46 = vpop.f32.mrb[89].mxu1 }
 0x78a   : > { %v3606_v45 = vadd.f32 %v3605_v46, %v7775_v4  ;;  %v3607_v5 = vpop.f32.mrb[90].mxu1  ;;  %3956 = vmatprep.mubr.bf16.mxu0 %v3697_v38 }
 0x78b   : > { %v3608_v62 = vadd.f32 %v3607_v5, %v7772_v50  ;;  %v3609_v54 = vpop.f32.mrb[91].mxu1  ;;  %3957 = vmatmul.mubr.bf16.gmra.mrb[116].mxu0 %v3696_v56  ;;  %v3670_v23 = vmax.f32 %v3604_v59, 0.0 }
 0x78c   : > { %v3610_v61 = vadd.f32 %v3609_v54, %v7775_v4  ;;  %v3671_v11 = vmax.f32 %v3606_v45, 0.0 }
 0x78d   : > { %v3672_v1 = vmax.f32 %v3608_v62, 0.0 }
 0x78e   : > { %v3673_v20 = vmax.f32 %v3610_v61, 0.0 }
 0x78f   : > { %v3698_v17 = vpack.c.bf16 %v3672_v1, %v3670_v23 }
 0x790   : > { %v3699_v52 = vpack.c.bf16 %v3673_v20, %v3671_v11  ;;  %v3613_v31 = vpop.f32.mrb[92].mxu1 }
 0x791   : > { %v3614_v37 = vadd.f32 %v3613_v31, %v7772_v50  ;;  %v3615_v44 = vpop.f32.mrb[93].mxu1 }
 0x792   : > { %v3616_v14 = vadd.f32 %v3615_v44, %v7775_v4  ;;  %v3617_v12 = vpop.f32.mrb[94].mxu1  ;;  %3966 = vmatprep.mubr.bf16.mxu0 %v3699_v52 }
 0x793   : > { %v3618_v29 = vadd.f32 %v3617_v12, %v7772_v50  ;;  %v3619_v19 = vpop.f32.mrb[95].mxu1  ;;  %3967 = vmatmul.mubr.bf16.gmra.mrb[120].mxu0 %v3698_v17  ;;  %v3674_v21 = vmax.f32 %v3614_v37, 0.0 }
 0x794   : > { %v3620_v16 = vadd.f32 %v3619_v19, %v7775_v4  ;;  %v3675_v40 = vmax.f32 %v3616_v14, 0.0 }
 0x795   : > { %v3676_v49 = vmax.f32 %v3618_v29, 0.0 }
 0x796   : > { %v3677_v39 = vmax.f32 %v3620_v16, 0.0 }
 0x797   : > { %v3700_v41 = vpack.c.bf16 %v3676_v49, %v3674_v21 }
 0x798   : > { %v3701_v58 = vpack.c.bf16 %v3677_v39, %v3675_v40  ;;  %v3623_v28 = vpop.f32.mrb[96].mxu1 }
 0x799   : > { %v3624_v56 = vadd.f32 %v3623_v28, %v7772_v50  ;;  %v3625_v38 = vpop.f32.mrb[97].mxu1 }
 0x79a   : > { %v3626_v55 = vadd.f32 %v3625_v38, %v7775_v4  ;;  %v3627_v59 = vpop.f32.mrb[98].mxu1  ;;  %3976 = vmatprep.mubr.bf16.mxu0 %v3701_v58 }
 0x79b   : > { %v3628_v46 = vadd.f32 %v3627_v59, %v7772_v50  ;;  %v3629_v45 = vpop.f32.mrb[99].mxu1  ;;  %3977 = vmatmul.mubr.bf16.gmra.mrb[124].mxu0 %v3700_v41  ;;  %v3678_v62 = vmax.f32 %v3624_v56, 0.0 }
 0x79c   : > { %v3630_v5 = vadd.f32 %v3629_v45, %v7775_v4  ;;  %v3679_v61 = vmax.f32 %v3626_v55, 0.0 }
 0x79d   : > { %v3680_v54 = vmax.f32 %v3628_v46, 0.0 }
 0x79e   : > { %v3681_v23 = vmax.f32 %v3630_v5, 0.0 }
 0x79f   : > { %v3702_v1 = vpack.c.bf16 %v3680_v54, %v3678_v62 }
 0x7a0   : > { %v3703_v11 = vpack.c.bf16 %v3681_v23, %v3679_v61  ;;  %v3633_v20 = vpop.f32.mrb[100].mxu1 }
 0x7a1   : > { %v3634_v17 = vadd.f32 %v3633_v20, %v7772_v50  ;;  %v3635_v52 = vpop.f32.mrb[101].mxu1 }
 0x7a2   : > { %v3636_v31 = vadd.f32 %v3635_v52, %v7775_v4  ;;  %v3637_v37 = vpop.f32.mrb[102].mxu1  ;;  %3986 = vmatprep.mubr.bf16.mxu1 %v3703_v11 }
 0x7a3   : > { %v3638_v44 = vadd.f32 %v3637_v37, %v7772_v50  ;;  %v3639_v14 = vpop.f32.mrb[103].mxu1  ;;  %3987 = vmatmul.mubr.bf16.vlgmr.msra.gmra.mrb[112].mxu1 %v3702_v1  ;;  %v3682_v29 = vmax.f32 %v3634_v17, 0.0 }
 0x7a4   : > { %v3640_v12 = vadd.f32 %v3639_v14, %v7775_v4  ;;  %v3683_v16 = vmax.f32 %v3636_v31, 0.0 }
 0x7a5   : > { %v3684_v19 = vmax.f32 %v3638_v44, 0.0 }
 0x7a6   : > { %v3685_v21 = vmax.f32 %v3640_v12, 0.0 }
 0x7a7   : > { %v3704_v49 = vpack.c.bf16 %v3684_v19, %v3682_v29 }
 0x7a8   : > { %v3705_v40 = vpack.c.bf16 %v3685_v21, %v3683_v16  ;;  %v3643_v39 = vpop.f32.mrb[104].mxu1  ;;  %v3742_v21 = vld [vmem:[%s8525_s1] sm:$0x3]  ;;  %s5942_s1 = sshll.u32 %s6085_s15, 4  ;;  %s5943_s1 = int_to_ptr.vmem [resolvable:$false] %s5942_s1 }
 0x7a9   : > { %v3644_v41 = vadd.f32 %v3643_v39, %v7772_v50  ;;  %v3645_v58 = vpop.f32.mrb[105].mxu1  ;;  %s5944_s11 = scalar_lea.vmem %s5943_s1, 4096  ;;  %p5945_p3 = scmp.lt.s32.totalorder %s8148_s13, %s5943_s1 }
 0x7aa   : > { %v3646_v28 = vadd.f32 %v3645_v58, %v7775_v4  ;;  %v3647_v56 = vpop.f32.mrb[106].mxu1  ;;  %3996 = vmatprep.mubr.bf16.mxu1 %v3705_v40  ;;  %p5946_p7 = scmp.lt.s32.totalorder %s5944_s11, %s5938_s0 }
 0x7ab   : > { %v3648_v38 = vadd.f32 %v3647_v56, %v7772_v50  ;;  %v3649_v55 = vpop.f32.mrb[107].mxu1  ;;  %3997 = vmatmul.mubr.bf16.gmra.mrb[116].mxu1 %v3704_v49  ;;  %v3686_v46 = vmax.f32 %v3644_v41, 0.0  ;;  %v7813_v49 = vrot.slane %v3742_v21, %v6524_v30 }
 0x7ac   : > { %v3650_v59 = vadd.f32 %v3649_v55, %v7775_v4  ;;  %v3687_v5 = vmax.f32 %v3646_v28, 0.0  ;;  %v8526_v55 = vld [vmem:[#allocation36_spill] sm:$0xff]  ;;  %p5947_p9 = por %p5946_p7, %p5945_p3 }
 0x7ad   : > { %v3688_v45 = vmax.f32 %v3648_v38, 0.0 }
 0x7ae   : > { %v3689_v62 = vmax.f32 %v3650_v59, 0.0  ;;  %p5948_p13 = pnand %p5947_p9, %p5941_p12 }
 0x7af   : > { %v3706_v54 = vpack.c.bf16 %v3688_v45, %v3686_v46  ;;  %v8527_v45 = vld [vmem:[#allocation38_spill] sm:$0xff] }
 0x7b0   : > { %v3707_v61 = vpack.c.bf16 %v3689_v62, %v3687_v5  ;;  %v3653_v23 = vpop.f32.mrb[108].mxu1  ;;  %v8528_v62 = vld [vmem:[#allocation37_spill] sm:$0xff] }
 0x7b1   : > { %v3654_v1 = vadd.f32 %v3653_v23, %v7772_v50  ;;  %v3655_v11 = vpop.f32.mrb[109].mxu1 }
 0x7b2   : > { %v3656_v20 = vadd.f32 %v3655_v11, %v7775_v4  ;;  %v3657_v17 = vpop.f32.mrb[110].mxu1  ;;  %4006 = vmatprep.mubr.bf16.mxu1 %v3707_v61 }
 0x7b3   : > { %v3658_v52 = vadd.f32 %v3657_v17, %v7772_v50  ;;  %v3659_v31 = vpop.f32.mrb[111].mxu1  ;;  %4007 = vmatmul.mubr.bf16.gmra.mrb[120].mxu1 %v3706_v54  ;;  %v3690_v44 = vmax.f32 %v3654_v1, 0.0  ;;  %v7816_v50 = vrot.slane %v3742_v21, %v6528_v33 }
 0x7b4   : > { %v3660_v37 = vadd.f32 %v3659_v31, %v7775_v4  ;;  %v3691_v12 = vmax.f32 %v3656_v20, 0.0 }
 0x7b5   : > { %v3692_v14 = vmax.f32 %v3658_v52, 0.0 }
 0x7b6   : > { %v3693_v29 = vmax.f32 %v3660_v37, 0.0 }
 0x7b7   : > { %v3708_v19 = vpack.c.bf16 %v3692_v14, %v3690_v44 }
 0x7b8   : > { %v3709_v16 = vpack.c.bf16 %v3693_v29, %v3691_v12 }
 0x7ba   : > { %4016 = vmatprep.mubr.bf16.mxu1 %v3709_v16 }
 0x7bb   : > { %4017 = vmatmul.mubr.bf16.gmra.mrb[124].mxu1 %v3708_v19 }
 0x856   : > { %v3948_v40 = vpop.f32.mrb[112].mxu0 }
 0x857   : > { %v3949_v4 = vadd.f32 %v3948_v40, %v7813_v49  ;;  %v3950_v39 = vpop.f32.mrb[113].mxu0 }
 0x858   : > { %v3951_v41 = vadd.f32 %v3950_v39, %v7816_v50  ;;  %v3952_v58 = vpop.f32.mrb[114].mxu0 }
 0x859   : > { %v7821_v28 = vadd.f32 %v3949_v4, %v7564_v53  ;;  %v3953_v56 = vadd.f32 %v3952_v58, %v7813_v49  ;;  %v3954_v38 = vpop.f32.mrb[115].mxu0 }
 0x85a   : > { %v7825_v59 = vadd.f32 %v3951_v41, %v8526_v55  ;;  %v3955_v46 = vadd.f32 %v3954_v38, %v7816_v50 }
 0x85b   : > { %v7829_v5 = vadd.f32 %v3953_v56, %v8527_v45 }
 0x85c   : > { %v7832_v54 = vadd.f32 %v3955_v46, %v8528_v62  ;;  %v4059_v61 = vadd.f32 %v7825_v59, %v7821_v28 }
 0x85e   : > { %4060 = vadd.xlane.f32.xlu0 %v4059_v61  ;;  %v3958_v53 = vpop.f32.mrb[116].mxu0  ;;  %v4062_v23 = vadd.f32 %v7832_v54, %v7829_v5 }
 0x85f   : > { %v3959_v1 = vadd.f32 %v3958_v53, %v7813_v49  ;;  %v3960_v11 = vpop.f32.mrb[117].mxu0 }
 0x860   : > { %v3961_v20 = vadd.f32 %v3960_v11, %v7816_v50  ;;  %4063 = vadd.xlane.f32.xlu1 %v4062_v23  ;;  %v3962_v17 = vpop.f32.mrb[118].mxu0 }
 0x861   : > { %v7841_v52 = vadd.f32 %v3959_v1, %v7590_v26  ;;  %v3963_v31 = vadd.f32 %v3962_v17, %v7813_v49  ;;  %v3964_v37 = vpop.f32.mrb[119].mxu0 }
 0x862   : > { %v7845_v44 = vadd.f32 %v3961_v20, %v7584_v0  ;;  %v3965_v14 = vadd.f32 %v3964_v37, %v7816_v50 }
 0x863   : > { %v7849_v12 = vadd.f32 %v3963_v31, %v7593_v27 }
 0x864   : > { %v7852_v29 = vadd.f32 %v3965_v14, %v7587_v18  ;;  %v4065_v19 = vadd.f32 %v7845_v44, %v7841_v52 }
 0x866   : > { %4066 = vadd.xlane.f32.xlu0 %v4065_v19  ;;  %v3968_v26 = vpop.f32.mrb[120].mxu0  ;;  %v4068_v16 = vadd.f32 %v7852_v29, %v7849_v12 }
 0x867   : > { %v3969_v21 = vadd.f32 %v3968_v26, %v7813_v49  ;;  %v3970_v0 = vpop.f32.mrb[121].mxu0 }
 0x868   : > { %v3971_v40 = vadd.f32 %v3970_v0, %v7816_v50  ;;  %4069 = vadd.xlane.f32.xlu1 %v4068_v16  ;;  %v3972_v4 = vpop.f32.mrb[122].mxu0 }
 0x869   : > { %v7861_v27 = vadd.f32 %v3969_v21, %v7618_v7  ;;  %v3973_v18 = vadd.f32 %v3972_v4, %v7813_v49  ;;  %v3974_v39 = vpop.f32.mrb[123].mxu0 }
 0x86a   : > { %v7865_v41 = vadd.f32 %v3971_v40, %v7612_v32  ;;  %v3975_v58 = vadd.f32 %v3974_v39, %v7816_v50 }
 0x86b   : > { %v7869_v56 = vadd.f32 %v3973_v18, %v7621_v10 }
 0x86c   : > { %v7872_v38 = vadd.f32 %v3975_v58, %v7615_v48  ;;  %v4071_v55 = vadd.f32 %v7865_v41, %v7861_v27 }
 0x86e   : > { %4072 = vadd.xlane.f32.xlu0 %v4071_v55  ;;  %v3978_v7 = vpop.f32.mrb[124].mxu0  ;;  %v4074_v46 = vadd.f32 %v7872_v38, %v7869_v56 }
 0x86f   : > { %v3979_v45 = vadd.f32 %v3978_v7, %v7813_v49  ;;  %v3980_v32 = vpop.f32.mrb[125].mxu0 }
 0x870   : > { %v3981_v62 = vadd.f32 %v3980_v32, %v7816_v50  ;;  %4075 = vadd.xlane.f32.xlu1 %v4074_v46  ;;  %v3982_v61 = vpop.f32.mrb[126].mxu0 }
 0x871   : > { %v7881_v10 = vadd.f32 %v3979_v45, %v7646_v22  ;;  %v3983_v48 = vadd.f32 %v3982_v61, %v7813_v49  ;;  %v3984_v53 = vpop.f32.mrb[127].mxu0 }
 0x872   : > { %v7885_v23 = vadd.f32 %v3981_v62, %v7640_v60  ;;  %v3985_v1 = vadd.f32 %v3984_v53, %v7816_v50 }
 0x873   : > { %v7889_v11 = vadd.f32 %v3983_v48, %v7649_v42 }
 0x874   : > { %v7892_v20 = vadd.f32 %v3985_v1, %v7643_v24  ;;  %v4077_v17 = vadd.f32 %v7885_v23, %v7881_v10 }
 0x876   : > { %4078 = vadd.xlane.f32.xlu0 %v4077_v17  ;;  %v3988_v22 = vpop.f32.mrb[112].mxu1  ;;  %v4080_v31 = vadd.f32 %v7892_v20, %v7889_v11 }
 0x877   : > { %v3989_v37 = vadd.f32 %v3988_v22, %v7813_v49  ;;  %v3990_v60 = vpop.f32.mrb[113].mxu1 }
 0x878   : > { %v3991_v14 = vadd.f32 %v3990_v60, %v7816_v50  ;;  %4081 = vadd.xlane.f32.xlu1 %v4080_v31  ;;  %v3992_v19 = vpop.f32.mrb[114].mxu1 }
 0x879   : > { %v7901_v42 = vadd.f32 %v3989_v37, %v7674_v25  ;;  %v3993_v24 = vadd.f32 %v3992_v19, %v7813_v49  ;;  %v3994_v26 = vpop.f32.mrb[115].mxu1 }
 0x87a   : > { %v7905_v16 = vadd.f32 %v3991_v14, %v7668_v36  ;;  %v3995_v21 = vadd.f32 %v3994_v26, %v7816_v50 }
 0x87b   : > { %v7909_v0 = vadd.f32 %v3993_v24, %v7677_v15 }
 0x87c   : > { %v7912_v40 = vadd.f32 %v3995_v21, %v7671_v6  ;;  %v4083_v4 = vadd.f32 %v7905_v16, %v7901_v42 }
 0x87e   : > { %v3998_v18 = vpop.f32.mrb[116].mxu1  ;;  %4084 = vadd.xlane.f32.xlu0 %v4083_v4  ;;  %v4086_v25 = vadd.f32 %v7912_v40, %v7909_v0 }
 0x87f   : > { %v3999_v39 = vadd.f32 %v3998_v18, %v7813_v49  ;;  %v4000_v36 = vpop.f32.mrb[117].mxu1 }
 0x880   : > { %v4001_v58 = vadd.f32 %v4000_v36, %v7816_v50  ;;  %v4002_v55 = vpop.f32.mrb[118].mxu1  ;;  %4087 = vadd.xlane.f32.xlu1 %v4086_v25 }
 0x881   : > { %v7921_v15 = vadd.f32 %v3999_v39, %v7702_v63  ;;  %v4003_v6 = vadd.f32 %v4002_v55, %v7813_v49  ;;  %v4004_v7 = vpop.f32.mrb[119].mxu1 }
 0x882   : > { %v7925_v46 = vadd.f32 %v4001_v58, %v7696_v35  ;;  %v4005_v45 = vadd.f32 %v4004_v7, %v7816_v50 }
 0x883   : > { %v7929_v32 = vadd.f32 %v4003_v6, %v7705_v3 }
 0x884   : > { %v7932_v62 = vadd.f32 %v4005_v45, %v7699_v34  ;;  %v4089_v61 = vadd.f32 %v7925_v46, %v7921_v15 }
 0x886   : > { %v4008_v48 = vpop.f32.mrb[120].mxu1  ;;  %4090 = vadd.xlane.f32.xlu0 %v4089_v61  ;;  %v4092_v63 = vadd.f32 %v7932_v62, %v7929_v32 }
 0x887   : > { %v4009_v53 = vadd.f32 %v4008_v48, %v7813_v49  ;;  %v4010_v35 = vpop.f32.mrb[121].mxu1 }
 0x888   : > { %v4011_v1 = vadd.f32 %v4010_v35, %v7816_v50  ;;  %v4012_v17 = vpop.f32.mrb[122].mxu1  ;;  %4093 = vadd.xlane.f32.xlu1 %v4092_v63 }
 0x889   : > { %v7941_v3 = vadd.f32 %v4009_v53, %v7730_v13  ;;  %v4013_v34 = vadd.f32 %v4012_v17, %v7813_v49  ;;  %v4014_v22 = vpop.f32.mrb[123].mxu1 }
 0x88a   : > { %v7945_v31 = vadd.f32 %v4011_v1, %v7724_v9  ;;  %v4015_v37 = vadd.f32 %v4014_v22, %v7816_v50 }
 0x88b   : > { %v7949_v60 = vadd.f32 %v4013_v34, %v7733_v2 }
 0x88c   : > { %v7952_v14 = vadd.f32 %v4015_v37, %v7727_v47  ;;  %v4095_v19 = vadd.f32 %v7945_v31, %v7941_v3 }
 0x88e   : > { %4096 = vadd.xlane.f32.xlu0 %v4095_v19  ;;  %v4018_v13 = vpop.f32.mrb[124].mxu1  ;;  %v4098_v24 = vadd.f32 %v7952_v14, %v7949_v60 }
 0x88f   : > { %v4019_v26 = vadd.f32 %v4018_v13, %v7813_v49  ;;  %v4020_v9 = vpop.f32.mrb[125].mxu1 }
 0x890   : > { %v4021_v21 = vadd.f32 %v4020_v9, %v7816_v50  ;;  %4099 = vadd.xlane.f32.xlu1 %v4098_v24  ;;  %v4022_v4 = vpop.f32.mrb[126].mxu1 }
 0x891   : > { %v7961_v2 = vadd.f32 %v4019_v26, %v7758_v57  ;;  %v4023_v47 = vadd.f32 %v4022_v4, %v7813_v49  ;;  %v4024_v18 = vpop.f32.mrb[127].mxu1 }
 0x892   : > { %v7965_v25 = vadd.f32 %v4021_v21, %v7752_v51  ;;  %v4025_v39 = vadd.f32 %v4024_v18, %v7816_v50 }
 0x893   : > { %v7969_v36 = vadd.f32 %v4023_v47, %v7761_v8 }
 0x894   : > { %v7972_v58 = vadd.f32 %v4025_v39, %v7755_v43  ;;  %v4101_v55 = vadd.f32 %v7965_v25, %v7961_v2 }
 0x896   : > { %4102 = vadd.xlane.f32.xlu0 %v4101_v55  ;;  %v4104_v57 = vadd.f32 %v7972_v58, %v7969_v36 }
 0x898   : > { %4105 = vadd.xlane.f32.xlu1 %v4104_v57 }
 0x8eb   : > { %v4061_v49 = vpop.xlane.xlu0 %4060 }
 0x8ec   : > { %v4107_v6 = vmul.f32 0.00390625, %v4061_v49 }
 0x8ed   : > { %v4064_v51 = vpop.xlane.xlu1 %4063 }
 0x8ee   : > { %v7979_v7 = vsub.f32 %v7821_v28, %v4107_v6  ;;  %v7982_v8 = vsub.f32 %v7825_v59, %v4107_v6  ;;  %v4108_v50 = vmul.f32 0.00390625, %v4064_v51 }
 0x8f0   : > { %v4155_v43 = vmul.f32 %v7979_v7, %v7979_v7  ;;  %v4156_v45 = vmul.f32 %v7982_v8, %v7982_v8  ;;  %v7989_v61 = vsub.f32 %v7829_v5, %v4108_v50  ;;  %v7992_v48 = vsub.f32 %v7832_v54, %v4108_v50 }
 0x8f2   : > { %v4157_v28 = vmul.f32 %v7989_v61, %v7989_v61  ;;  %v4158_v59 = vmul.f32 %v7992_v48, %v7992_v48  ;;  %v4187_v63 = vadd.f32 %v4156_v45, %v4155_v43 }
 0x8f3   : > { %v4067_v53 = vpop.xlane.xlu0 %4066 }
 0x8f4   : > { %v4109_v35 = vmul.f32 0.00390625, %v4067_v53  ;;  %4188 = vadd.xlane.f32.xlu0 %v4187_v63  ;;  %v4190_v1 = vadd.f32 %v4158_v59, %v4157_v28 }
 0x8f5   : > { %v4070_v17 = vpop.xlane.xlu1 %4069 }
 0x8f6   : > { %v7999_v34 = vsub.f32 %v7841_v52, %v4109_v35  ;;  %v8002_v5 = vsub.f32 %v7845_v44, %v4109_v35  ;;  %v4110_v54 = vmul.f32 0.00390625, %v4070_v17  ;;  %4191 = vadd.xlane.f32.xlu1 %v4190_v1 }
 0x8f8   : > { %v4159_v22 = vmul.f32 %v7999_v34, %v7999_v34  ;;  %v4160_v37 = vmul.f32 %v8002_v5, %v8002_v5  ;;  %v8009_v19 = vsub.f32 %v7849_v12, %v4110_v54  ;;  %v8012_v13 = vsub.f32 %v7852_v29, %v4110_v54 }
 0x8fa   : > { %v4161_v52 = vmul.f32 %v8009_v19, %v8009_v19  ;;  %v4162_v44 = vmul.f32 %v8012_v13, %v8012_v13  ;;  %v4193_v24 = vadd.f32 %v4160_v37, %v4159_v22 }
 0x8fb   : > { %v4073_v26 = vpop.xlane.xlu0 %4072 }
 0x8fc   : > { %v4111_v9 = vmul.f32 0.00390625, %v4073_v26  ;;  %4194 = vadd.xlane.f32.xlu0 %v4193_v24  ;;  %v4196_v21 = vadd.f32 %v4162_v44, %v4161_v52 }
 0x8fd   : > { %v4076_v4 = vpop.xlane.xlu1 %4075 }
 0x8fe   : > { %v8019_v47 = vsub.f32 %v7861_v27, %v4111_v9  ;;  %v8022_v12 = vsub.f32 %v7865_v41, %v4111_v9  ;;  %v4112_v29 = vmul.f32 0.00390625, %v4076_v4  ;;  %4197 = vadd.xlane.f32.xlu1 %v4196_v21 }
 0x900   : > { %v4163_v18 = vmul.f32 %v8019_v47, %v8019_v47  ;;  %v4164_v39 = vmul.f32 %v8022_v12, %v8022_v12  ;;  %v8029_v55 = vsub.f32 %v7869_v56, %v4112_v29  ;;  %v8032_v57 = vsub.f32 %v7872_v38, %v4112_v29 }
 0x902   : > { %v4165_v27 = vmul.f32 %v8029_v55, %v8029_v55  ;;  %v4166_v41 = vmul.f32 %v8032_v57, %v8032_v57  ;;  %v4199_v49 = vadd.f32 %v4164_v39, %v4163_v18 }
 0x903   : > { %v4079_v6 = vpop.xlane.xlu0 %4078 }
 0x904   : > { %v4113_v51 = vmul.f32 0.00390625, %v4079_v6  ;;  %4200 = vadd.xlane.f32.xlu0 %v4199_v49  ;;  %v4202_v50 = vadd.f32 %v4166_v41, %v4165_v27 }
 0x905   : > { %v4082_v43 = vpop.xlane.xlu1 %4081 }
 0x906   : > { %v8039_v45 = vsub.f32 %v7881_v10, %v4113_v51  ;;  %v8042_v56 = vsub.f32 %v7885_v23, %v4113_v51  ;;  %v4114_v38 = vmul.f32 0.00390625, %v4082_v43  ;;  %4203 = vadd.xlane.f32.xlu1 %v4202_v50 }
 0x908   : > { %v4167_v28 = vmul.f32 %v8039_v45, %v8039_v45  ;;  %v4168_v59 = vmul.f32 %v8042_v56, %v8042_v56  ;;  %v8049_v63 = vsub.f32 %v7889_v11, %v4114_v38  ;;  %v8052_v53 = vsub.f32 %v7892_v20, %v4114_v38 }
 0x90a   : > { %v4169_v10 = vmul.f32 %v8049_v63, %v8049_v63  ;;  %v4170_v23 = vmul.f32 %v8052_v53, %v8052_v53  ;;  %v4205_v35 = vadd.f32 %v4168_v59, %v4167_v28 }
 0x90b   : > { %v4085_v1 = vpop.xlane.xlu0 %4084 }
 0x90c   : > { %v4115_v17 = vmul.f32 0.00390625, %v4085_v1  ;;  %4206 = vadd.xlane.f32.xlu0 %v4205_v35  ;;  %v4208_v54 = vadd.f32 %v4170_v23, %v4169_v10 }
 0x90d   : > { %v4088_v22 = vpop.xlane.xlu1 %4087 }
 0x90e   : > { %v8059_v37 = vsub.f32 %v7901_v42, %v4115_v17  ;;  %v8062_v11 = vsub.f32 %v7905_v16, %v4115_v17  ;;  %v4116_v20 = vmul.f32 0.00390625, %v4088_v22  ;;  %4209 = vadd.xlane.f32.xlu1 %v4208_v54 }
 0x910   : > { %v4171_v52 = vmul.f32 %v8059_v37, %v8059_v37  ;;  %v4172_v44 = vmul.f32 %v8062_v11, %v8062_v11  ;;  %v8069_v24 = vsub.f32 %v7909_v0, %v4116_v20  ;;  %v8072_v26 = vsub.f32 %v7912_v40, %v4116_v20 }
 0x912   : > { %v4173_v42 = vmul.f32 %v8069_v24, %v8069_v24  ;;  %v4174_v16 = vmul.f32 %v8072_v26, %v8072_v26  ;;  %v4211_v9 = vadd.f32 %v4172_v44, %v4171_v52 }
 0x913   : > { %v4091_v21 = vpop.xlane.xlu0 %4090 }
 0x914   : > { %v4117_v4 = vmul.f32 0.00390625, %v4091_v21  ;;  %4212 = vadd.xlane.f32.xlu0 %v4211_v9  ;;  %v4214_v29 = vadd.f32 %v4174_v16, %v4173_v42 }
 0x915   : > { %v4094_v18 = vpop.xlane.xlu1 %4093 }
 0x916   : > { %v8079_v39 = vsub.f32 %v7921_v15, %v4117_v4  ;;  %v8082_v0 = vsub.f32 %v7925_v46, %v4117_v4  ;;  %v4118_v40 = vmul.f32 0.00390625, %v4094_v18  ;;  %4215 = vadd.xlane.f32.xlu1 %v4214_v29 }
 0x918   : > { %v4175_v27 = vmul.f32 %v8079_v39, %v8079_v39  ;;  %v4176_v41 = vmul.f32 %v8082_v0, %v8082_v0  ;;  %v8089_v49 = vsub.f32 %v7929_v32, %v4118_v40  ;;  %v8092_v6 = vsub.f32 %v7932_v62, %v4118_v40 }
 0x91a   : > { %v4177_v15 = vmul.f32 %v8089_v49, %v8089_v49  ;;  %v4178_v46 = vmul.f32 %v8092_v6, %v8092_v6  ;;  %v4217_v51 = vadd.f32 %v4176_v41, %v4175_v27 }
 0x91b   : > { %v4097_v50 = vpop.xlane.xlu0 %4096 }
 0x91c   : > { %v4119_v43 = vmul.f32 0.00390625, %v4097_v50  ;;  %4218 = vadd.xlane.f32.xlu0 %v4217_v51  ;;  %v4220_v38 = vadd.f32 %v4178_v46, %v4177_v15 }
 0x91d   : > { %v4100_v28 = vpop.xlane.xlu1 %4099 }
 0x91e   : > { %v8099_v59 = vsub.f32 %v7941_v3, %v4119_v43  ;;  %v8102_v32 = vsub.f32 %v7945_v31, %v4119_v43  ;;  %v4120_v62 = vmul.f32 0.00390625, %v4100_v28  ;;  %4221 = vadd.xlane.f32.xlu1 %v4220_v38 }
 0x920   : > { %v4179_v10 = vmul.f32 %v8099_v59, %v8099_v59  ;;  %v4180_v23 = vmul.f32 %v8102_v32, %v8102_v32  ;;  %v8109_v35 = vsub.f32 %v7949_v60, %v4120_v62  ;;  %v8112_v1 = vsub.f32 %v7952_v14, %v4120_v62 }
 0x922   : > { %v4181_v3 = vmul.f32 %v8109_v35, %v8109_v35  ;;  %v4182_v31 = vmul.f32 %v8112_v1, %v8112_v1  ;;  %v4223_v17 = vadd.f32 %v4180_v23, %v4179_v10 }
 0x923   : > { %v4103_v54 = vpop.xlane.xlu0 %4102 }
 0x924   : > { %v4121_v22 = vmul.f32 0.00390625, %v4103_v54  ;;  %4224 = vadd.xlane.f32.xlu0 %v4223_v17  ;;  %v4226_v20 = vadd.f32 %v4182_v31, %v4181_v3 }
 0x925   : > { %v4106_v52 = vpop.xlane.xlu1 %4105 }
 0x926   : > { %v8119_v60 = vsub.f32 %v7961_v2, %v4121_v22  ;;  %v8122_v14 = vsub.f32 %v7965_v25, %v4121_v22  ;;  %v4122_v44 = vmul.f32 0.00390625, %v4106_v52  ;;  %4227 = vadd.xlane.f32.xlu1 %v4226_v20 }
 0x928   : > { %v4183_v42 = vmul.f32 %v8119_v60, %v8119_v60  ;;  %v4184_v16 = vmul.f32 %v8122_v14, %v8122_v14  ;;  %v8129_v9 = vsub.f32 %v7969_v36, %v4122_v44  ;;  %v8132_v2 = vsub.f32 %v7972_v58, %v4122_v44 }
 0x92a   : > { %v4185_v25 = vmul.f32 %v8129_v9, %v8129_v9  ;;  %v4186_v21 = vmul.f32 %v8132_v2, %v8132_v2  ;;  %v4229_v4 = vadd.f32 %v4184_v16, %v4183_v42 }
 0x92c   : > { %4230 = vadd.xlane.f32.xlu0 %v4229_v4  ;;  %v4232_v29 = vadd.f32 %v4186_v21, %v4185_v25 }
 0x92e   : > { %4233 = vadd.xlane.f32.xlu1 %v4232_v29 }
 0x92f   : > { %5951 = shalt.err (!%p5948_p13)
}
 0x930   : > { %s5952_s21 = scalar_lea.hbm %s8145_s16, 2048  ;;  %s5956_s20 = scalar_lea.hbm %s8529_s18, 4096 }
 0x931   : > { %p5953_p0 = scmp.ne.s32.totalorder %s8145_s16, %s5952_s21  ;;  %p5957_p1 = scmp.lt.u32.totalorder %s8145_s16, %s8529_s18 }
 0x932   : > { %p5958_p2 = scmp.lt.u32.totalorder %s5956_s20, %s5952_s21  ;;  %p5960_p8 = scmp.lt.u32.totalorder %s5952_s21, %s8145_s16 }
 0x933   : > { %p5954_p5 = pnand %p5953_p0, %p6335_p6 }
 0x934   : > { %p5959_p4 = por %p5958_p2, %p5957_p1 }
 0x935   : > { %p5955_p11 = pneg %p5954_p5 }
 0x936   : > { %p5961_p10 = por %p5960_p8, %p5959_p4 }
 0x938   : > { %p5962_p12 = pnand %p5961_p10, %p5955_p11 }
 0x93a   : > { %5965 = shalt.err (!%p5962_p12)
}
 0x93b   : > { %s6086_s11 = smov 128   ;;  %s6087_s0 = smov 8  }
 0x93c   : > { %5196 = dma.vmem_to_hbm [thread:$0]  (%p6335_p6), %s8148_s13, 2048, %s8145_s16, %s8150_s28, %s6086_s11, %s6086_s11, %s6087_s0  }
 0x93d   : > { %s8530_s19 = sld [smem:[#allocation49_spill]]  ;;  %s4491_s15 = sshll.u32 %s6532_s22, 4  ;;  %s8185_s15 = int_to_ptr.vmem [resolvable:$true] %s4491_s15 }
 0x93e   : > { %s5966_s1 = scalar_lea.vmem %s8185_s15, 2048  ;;  %s6088_s2 = smov [#allocation14]  }
 0x93f   : > { %p5967_p3 = scmp.ne.s32.totalorder %s8185_s15, %s5966_s1  ;;  %s5970_s3 = sshll.u32 %s6088_s2, 4  ;;  %s5971_s3 = int_to_ptr.vmem [resolvable:$false] %s5970_s3 }
 0x940   : > { %s5972_s16 = scalar_lea.vmem %s5971_s3, 4096  ;;  %p5973_p13 = scmp.lt.s32.totalorder %s8185_s15, %s5971_s3 }
 0x941   : > { %p5968_p7 = pnand %p5967_p3, %p6335_p6  ;;  %p5974_p0 = scmp.lt.s32.totalorder %s5972_s16, %s5966_s1 }
 0x943   : > { %s8182_s20 = scalar_lea.hbm %s8530_s19, %s4951_s27  ;;  %p5969_p9 = pneg %p5968_p7 }
 0x944   : > { %p5975_p5 = por %p5974_p0, %p5973_p13 }
 0x946   : > { %p5976_p11 = pnand %p5975_p5, %p5969_p9 }
 0x948   : > { %5979 = shalt.err (!%p5976_p11)
}
 0x949   : > { %s5980_s22 = scalar_lea.hbm %s8182_s20, 2048  ;;  %s5984_s2 = scalar_lea.hbm %s8530_s19, 4096 }
 0x94a   : > { %p5981_p1 = scmp.ne.s32.totalorder %s8182_s20, %s5980_s22  ;;  %p5985_p8 = scmp.lt.u32.totalorder %s8182_s20, %s8530_s19 }
 0x94b   : > { %p5986_p10 = scmp.lt.u32.totalorder %s5984_s2, %s5980_s22  ;;  %p5988_p3 = scmp.lt.u32.totalorder %s5980_s22, %s8182_s20 }
 0x94c   : > { %p5982_p2 = pnand %p5981_p1, %p6335_p6 }
 0x94d   : > { %p5987_p12 = por %p5986_p10, %p5985_p8 }
 0x94e   : > { %p5983_p4 = pneg %p5982_p2 }
 0x94f   : > { %p5989_p7 = por %p5988_p3, %p5987_p12 }
 0x951   : > { %p5990_p9 = pnand %p5989_p7, %p5983_p4 }
 0x953   : > { %5993 = shalt.err (!%p5990_p9)
}
 0x954   : > { %5197 = dma.vmem_to_hbm [thread:$0]  (%p6335_p6), %s8185_s15, 2048, %s8182_s20, %s8150_s28, %s6086_s11, %s6086_s11, %s6087_s0  }
 0x955   : > { %s8531_s16 = sld [smem:[#allocation45_spill]]  ;;  %s8532_s28 = sld [smem:[#allocation46_spill]] }
 0x956   : > { %s8533_s11 = sshll.u32 %s6387_s29, 8  ;;  %s4950_s20 = sshll.u32 %s6203_s26, 12 }
 0x957   : > { %s8242_s0 = scalar_lea.vmem [#allocation11], %s8533_s11  ;;  %s8534_s8 = sld [smem:[#allocation47_spill]] }
 0x958   : > { %s4459_s15 = sshll.u32 %s8242_s0, 4  ;;  %s4436_s26 = scalar_lea.sflag [#allocation4], %s6387_s29  ;;  %s8363_s15 = int_to_ptr.vmem [resolvable:$true] %s4459_s15 }
 0x959   : > { %s5994_s21 = scalar_lea.vmem %s8363_s15, 4096  ;;  %s6089_s1 = smov [#allocation11]  }
 0x95a   : > { %p5995_p13 = scmp.ne.s32.totalorder %s8363_s15, %s5994_s21 }
 0x95b   : > { %v4315_v50 = vld [vmem:[%s8531_s16] sm:$0x3]  ;;  %s5998_s16 = sshll.u32 %s6089_s1, 4  ;;  %s5999_s16 = int_to_ptr.vmem [resolvable:$false] %s5998_s16 }
 0x95c   : > { %v4359_v28 = vld [vmem:[%s8532_s28] sm:$0x3]  ;;  %v8219_v10 = vrot.slane %v4315_v50, %v6524_v30  ;;  %v8222_v23 = vrot.slane %v4315_v50, %v6528_v33  ;;  %p5996_p0 = pnand %p5995_p13, %p6335_p6  ;;  %s6000_s22 = scalar_lea.vmem %s5999_s16, 8192 }
 0x95d   : > { %v8225_v31 = vrot.slane %v4359_v28, %v6524_v30  ;;  %v8228_v17 = vrot.slane %v4359_v28, %v6528_v33  ;;  %s8361_s3 = scalar_lea.hbm %s8534_s8, %s4950_s20  ;;  %p6001_p11 = scmp.lt.s32.totalorder %s8363_s15, %s5999_s16 }
 0x95e   : > { %p5997_p5 = pneg %p5996_p0  ;;  %p6002_p1 = scmp.lt.s32.totalorder %s6000_s22, %s5994_s21 }
 0x960   : > { %p6003_p2 = por %p6002_p1, %p6001_p11 }
 0x962   : > { %p6004_p4 = pnand %p6003_p2, %p5997_p5 }
 0x981   : > { %v4189_v36 = vpop.xlane.xlu0 %4188 }
 0x982   : > { %v4235_v58 = vmul.f32 0.00390625, %v4189_v36 }
 0x983   : > { %v4192_v18 = vpop.xlane.xlu1 %4191 }
 0x984   : > { %v4251_v40 = vadd.f32 1e-05, %v4235_v58  ;;  %v4236_v27 = vmul.f32 0.00390625, %v4192_v18 }
 0x986   : > { %5732 = vrsqrt.f32 %v4251_v40  ;;  %v4252_v41 = vadd.f32 1e-05, %v4236_v27 }
 0x988   : > { %5734 = vrsqrt.f32 %v4252_v41 }
 0x989   : > { %v4195_v15 = vpop.xlane.xlu0 %4194 }
 0x98a   : > { %v4237_v46 = vmul.f32 0.00390625, %v4195_v15 }
 0x98b   : > { %v4198_v51 = vpop.xlane.xlu1 %4197 }
 0x98c   : > { %v4253_v43 = vadd.f32 1e-05, %v4237_v46  ;;  %v4238_v38 = vmul.f32 0.00390625, %v4198_v51 }
 0x98e   : > { %5736 = vrsqrt.f32 %v4253_v43  ;;  %v4254_v62 = vadd.f32 1e-05, %v4238_v38 }
 0x990   : > { %v5733_v3 = vpop.eup %5732  ;;  %5738 = vrsqrt.f32 %v4254_v62 }
 0x991   : > { %v4283_v54 = vmul.f32 %v5733_v3, %v7979_v7  ;;  %v4284_v22 = vmul.f32 %v5733_v3, %v7982_v8  ;;  %v4201_v20 = vpop.xlane.xlu0 %4200 }
 0x992   : > { %v5735_v52 = vpop.eup %5734  ;;  %v4239_v44 = vmul.f32 0.00390625, %v4201_v20 }
 0x993   : > { %v4327_v42 = vmul.f32 %v8219_v10, %v4283_v54  ;;  %v4328_v16 = vmul.f32 %v8222_v23, %v4284_v22  ;;  %v4285_v25 = vmul.f32 %v5735_v52, %v7989_v61  ;;  %v4286_v30 = vmul.f32 %v5735_v52, %v7992_v48  ;;  %v4204_v21 = vpop.xlane.xlu1 %4203 }
 0x994   : > { %v4255_v4 = vadd.f32 1e-05, %v4239_v44  ;;  %v4240_v33 = vmul.f32 0.00390625, %v4204_v21 }
 0x995   : > { %v4371_v29 = vadd.f32 %v8225_v31, %v4327_v42  ;;  %v4372_v7 = vadd.f32 %v8228_v17, %v4328_v16  ;;  %v4329_v8 = vmul.f32 %v8219_v10, %v4285_v25  ;;  %v4330_v36 = vmul.f32 %v8222_v23, %v4286_v30 }
 0x996   : > { %5740 = vrsqrt.f32 %v4255_v4  ;;  %v4256_v58 = vadd.f32 1e-05, %v4240_v33 }
 0x997   : > { %4403 = vst [vmem:[%s8242_s0] sm:$0xff] %v4371_v29  ;;  %4404 = vst [vmem:[%s8242_s0 + $0x8] sm:$0xff] %v4372_v7  ;;  %v4373_v61 = vadd.f32 %v8225_v31, %v4329_v8  ;;  %v4374_v48 = vadd.f32 %v8228_v17, %v4330_v36 }
 0x998   : > { %v5737_v18 = vpop.eup %5736  ;;  %5742 = vrsqrt.f32 %v4256_v58 }
 0x999   : > { %4405 = vst [vmem:[%s8242_s0 + $0x10] sm:$0xff] %v4373_v61  ;;  %4406 = vst [vmem:[%s8242_s0 + $0x18] sm:$0xff] %v4374_v48  ;;  %v4287_v40 = vmul.f32 %v5737_v18, %v7999_v34  ;;  %v4288_v27 = vmul.f32 %v5737_v18, %v8002_v5  ;;  %v4207_v41 = vpop.xlane.xlu0 %4206 }
 0x99a   : > { %v5739_v15 = vpop.eup %5738  ;;  %v4241_v46 = vmul.f32 0.00390625, %v4207_v41 }
 0x99b   : > { %v4331_v51 = vmul.f32 %v8219_v10, %v4287_v40  ;;  %v4332_v50 = vmul.f32 %v8222_v23, %v4288_v27  ;;  %v4289_v43 = vmul.f32 %v5739_v15, %v8009_v19  ;;  %v4290_v38 = vmul.f32 %v5739_v15, %v8012_v13  ;;  %v4210_v28 = vpop.xlane.xlu1 %4209 }
 0x99c   : > { %v4257_v62 = vadd.f32 1e-05, %v4241_v46  ;;  %v4242_v34 = vmul.f32 0.00390625, %v4210_v28 }
 0x99d   : > { %v4375_v5 = vadd.f32 %v8225_v31, %v4331_v51  ;;  %v4376_v3 = vadd.f32 %v8228_v17, %v4332_v50  ;;  %v4333_v54 = vmul.f32 %v8219_v10, %v4289_v43  ;;  %v4334_v22 = vmul.f32 %v8222_v23, %v4290_v38 }
 0x99e   : > { %5744 = vrsqrt.f32 %v4257_v62  ;;  %v4258_v20 = vadd.f32 1e-05, %v4242_v34 }
 0x99f   : > { %4407 = vst [vmem:[%s8242_s0 + $0x20] sm:$0xff] %v4375_v5  ;;  %4408 = vst [vmem:[%s8242_s0 + $0x28] sm:$0xff] %v4376_v3  ;;  %v4377_v19 = vadd.f32 %v8225_v31, %v4333_v54  ;;  %v4378_v13 = vadd.f32 %v8228_v17, %v4334_v22 }
 0x9a0   : > { %v5741_v52 = vpop.eup %5740  ;;  %5746 = vrsqrt.f32 %v4258_v20 }
 0x9a1   : > { %4409 = vst [vmem:[%s8242_s0 + $0x30] sm:$0xff] %v4377_v19  ;;  %4410 = vst [vmem:[%s8242_s0 + $0x38] sm:$0xff] %v4378_v13  ;;  %v4291_v44 = vmul.f32 %v5741_v52, %v8019_v47  ;;  %v4292_v42 = vmul.f32 %v5741_v52, %v8022_v12  ;;  %v4213_v16 = vpop.xlane.xlu0 %4212 }
 0x9a2   : > { %v5743_v25 = vpop.eup %5742  ;;  %v4243_v30 = vmul.f32 0.00390625, %v4213_v16 }
 0x9a3   : > { %v4335_v21 = vmul.f32 %v8219_v10, %v4291_v44  ;;  %v4336_v4 = vmul.f32 %v8222_v23, %v4292_v42  ;;  %v4293_v33 = vmul.f32 %v5743_v25, %v8029_v55  ;;  %v4294_v29 = vmul.f32 %v5743_v25, %v8032_v57  ;;  %v4216_v7 = vpop.xlane.xlu1 %4215 }
 0x9a4   : > { %v4259_v8 = vadd.f32 1e-05, %v4243_v30  ;;  %v4244_v47 = vmul.f32 0.00390625, %v4216_v7 }
 0x9a5   : > { %v4379_v12 = vadd.f32 %v8225_v31, %v4335_v21  ;;  %v4380_v36 = vadd.f32 %v8228_v17, %v4336_v4  ;;  %v4337_v58 = vmul.f32 %v8219_v10, %v4293_v33  ;;  %v4338_v61 = vmul.f32 %v8222_v23, %v4294_v29 }
 0x9a6   : > { %5748 = vrsqrt.f32 %v4259_v8  ;;  %v4260_v48 = vadd.f32 1e-05, %v4244_v47 }
 0x9a7   : > { %4411 = vst [vmem:[%s8242_s0 + $0x40] sm:$0xff] %v4379_v12  ;;  %4412 = vst [vmem:[%s8242_s0 + $0x48] sm:$0xff] %v4380_v36  ;;  %v4381_v55 = vadd.f32 %v8225_v31, %v4337_v58  ;;  %v4382_v57 = vadd.f32 %v8228_v17, %v4338_v61 }
 0x9a8   : > { %v5745_v18 = vpop.eup %5744  ;;  %5750 = vrsqrt.f32 %v4260_v48 }
 0x9a9   : > { %4413 = vst [vmem:[%s8242_s0 + $0x50] sm:$0xff] %v4381_v55  ;;  %4414 = vst [vmem:[%s8242_s0 + $0x58] sm:$0xff] %v4382_v57  ;;  %v4295_v40 = vmul.f32 %v5745_v18, %v8039_v45  ;;  %v4296_v27 = vmul.f32 %v5745_v18, %v8042_v56  ;;  %v4219_v41 = vpop.xlane.xlu0 %4218 }
 0x9aa   : > { %v5747_v15 = vpop.eup %5746  ;;  %v4245_v46 = vmul.f32 0.00390625, %v4219_v41 }
 0x9ab   : > { %v4339_v51 = vmul.f32 %v8219_v10, %v4295_v40  ;;  %v4340_v50 = vmul.f32 %v8222_v23, %v4296_v27  ;;  %v4297_v43 = vmul.f32 %v5747_v15, %v8049_v63  ;;  %v4298_v38 = vmul.f32 %v5747_v15, %v8052_v53  ;;  %v4222_v28 = vpop.xlane.xlu1 %4221 }
 0x9ac   : > { %v4261_v62 = vadd.f32 1e-05, %v4245_v46  ;;  %v4246_v45 = vmul.f32 0.00390625, %v4222_v28 }
 0x9ad   : > { %v4383_v56 = vadd.f32 %v8225_v31, %v4339_v51  ;;  %v4384_v34 = vadd.f32 %v8228_v17, %v4340_v50  ;;  %v4341_v5 = vmul.f32 %v8219_v10, %v4297_v43  ;;  %v4342_v3 = vmul.f32 %v8222_v23, %v4298_v38 }
 0x9ae   : > { %5752 = vrsqrt.f32 %v4261_v62  ;;  %v4262_v54 = vadd.f32 1e-05, %v4246_v45 }
 0x9af   : > { %4415 = vst [vmem:[%s8242_s0 + $0x60] sm:$0xff] %v4383_v56  ;;  %4416 = vst [vmem:[%s8242_s0 + $0x68] sm:$0xff] %v4384_v34  ;;  %v4385_v63 = vadd.f32 %v8225_v31, %v4341_v5  ;;  %v4386_v53 = vadd.f32 %v8228_v17, %v4342_v3 }
 0x9b0   : > { %v5749_v22 = vpop.eup %5748  ;;  %5754 = vrsqrt.f32 %v4262_v54 }
 0x9b1   : > { %4417 = vst [vmem:[%s8242_s0 + $0x70] sm:$0xff] %v4385_v63  ;;  %4418 = vst [vmem:[%s8242_s0 + $0x78] sm:$0xff] %v4386_v53  ;;  %v4299_v20 = vmul.f32 %v5749_v22, %v8059_v37  ;;  %v4300_v19 = vmul.f32 %v5749_v22, %v8062_v11  ;;  %v4225_v13 = vpop.xlane.xlu0 %4224 }
 0x9b2   : > { %v5751_v52 = vpop.eup %5750  ;;  %v4247_v44 = vmul.f32 0.00390625, %v4225_v13 }
 0x9b3   : > { %v4343_v42 = vmul.f32 %v8219_v10, %v4299_v20  ;;  %v4344_v16 = vmul.f32 %v8222_v23, %v4300_v19  ;;  %v4301_v25 = vmul.f32 %v5751_v52, %v8069_v24  ;;  %v4302_v30 = vmul.f32 %v5751_v52, %v8072_v26  ;;  %v4228_v21 = vpop.xlane.xlu1 %4227 }
 0x9b4   : > { %v4263_v4 = vadd.f32 1e-05, %v4247_v44  ;;  %v4248_v37 = vmul.f32 0.00390625, %v4228_v21 }
 0x9b5   : > { %v4387_v11 = vadd.f32 %v8225_v31, %v4343_v42  ;;  %v4388_v33 = vadd.f32 %v8228_v17, %v4344_v16  ;;  %v4345_v29 = vmul.f32 %v8219_v10, %v4301_v25  ;;  %v4346_v7 = vmul.f32 %v8222_v23, %v4302_v30 }
 0x9b6   : > { %5756 = vrsqrt.f32 %v4263_v4  ;;  %v4264_v8 = vadd.f32 1e-05, %v4248_v37 }
 0x9b7   : > { %4419 = vst [vmem:[%s8242_s0 + $0x80] sm:$0xff] %v4387_v11  ;;  %4420 = vst [vmem:[%s8242_s0 + $0x88] sm:$0xff] %v4388_v33  ;;  %v4389_v24 = vadd.f32 %v8225_v31, %v4345_v29  ;;  %v4390_v26 = vadd.f32 %v8228_v17, %v4346_v7 }
 0x9b8   : > { %v5753_v47 = vpop.eup %5752  ;;  %5758 = vrsqrt.f32 %v4264_v8 }
 0x9b9   : > { %4421 = vst [vmem:[%s8242_s0 + $0x90] sm:$0xff] %v4389_v24  ;;  %4422 = vst [vmem:[%s8242_s0 + $0x98] sm:$0xff] %v4390_v26  ;;  %v4303_v12 = vmul.f32 %v5753_v47, %v8079_v39  ;;  %v4304_v36 = vmul.f32 %v5753_v47, %v8082_v0  ;;  %v4231_v58 = vpop.xlane.xlu0 %4230 }
 0x9ba   : > { %v5755_v61 = vpop.eup %5754  ;;  %v4249_v48 = vmul.f32 0.00390625, %v4231_v58 }
 0x9bb   : > { %v4347_v55 = vmul.f32 %v8219_v10, %v4303_v12  ;;  %v4348_v57 = vmul.f32 %v8222_v23, %v4304_v36  ;;  %v4305_v18 = vmul.f32 %v5755_v61, %v8089_v49  ;;  %v4306_v40 = vmul.f32 %v5755_v61, %v8092_v6  ;;  %v4234_v27 = vpop.xlane.xlu1 %4233 }
 0x9bc   : > { %v4265_v41 = vadd.f32 1e-05, %v4249_v48  ;;  %v4250_v39 = vmul.f32 0.00390625, %v4234_v27 }
 0x9bd   : > { %v4391_v0 = vadd.f32 %v8225_v31, %v4347_v55  ;;  %v4392_v15 = vadd.f32 %v8228_v17, %v4348_v57  ;;  %v4349_v46 = vmul.f32 %v8219_v10, %v4305_v18  ;;  %v4350_v51 = vmul.f32 %v8222_v23, %v4306_v40 }
 0x9be   : > { %5760 = vrsqrt.f32 %v4265_v41  ;;  %v4266_v50 = vadd.f32 1e-05, %v4250_v39 }
 0x9bf   : > { %4423 = vst [vmem:[%s8242_s0 + $0xa0] sm:$0xff] %v4391_v0  ;;  %4424 = vst [vmem:[%s8242_s0 + $0xa8] sm:$0xff] %v4392_v15  ;;  %v4393_v49 = vadd.f32 %v8225_v31, %v4349_v46  ;;  %v4394_v6 = vadd.f32 %v8228_v17, %v4350_v51 }
 0x9c0   : > { %v5757_v43 = vpop.eup %5756  ;;  %5762 = vrsqrt.f32 %v4266_v50 }
 0x9c1   : > { %4425 = vst [vmem:[%s8242_s0 + $0xb0] sm:$0xff] %v4393_v49  ;;  %4426 = vst [vmem:[%s8242_s0 + $0xb8] sm:$0xff] %v4394_v6  ;;  %v4307_v38 = vmul.f32 %v5757_v43, %v8099_v59  ;;  %v4308_v28 = vmul.f32 %v5757_v43, %v8102_v32 }
 0x9c2   : > { %v5759_v62 = vpop.eup %5758 }
 0x9c3   : > { %v4351_v45 = vmul.f32 %v8219_v10, %v4307_v38  ;;  %v4352_v56 = vmul.f32 %v8222_v23, %v4308_v28  ;;  %v4309_v34 = vmul.f32 %v5759_v62, %v8109_v35  ;;  %v4310_v5 = vmul.f32 %v5759_v62, %v8112_v1 }
 0x9c5   : > { %v4395_v3 = vadd.f32 %v8225_v31, %v4351_v45  ;;  %v4396_v54 = vadd.f32 %v8228_v17, %v4352_v56  ;;  %v4353_v63 = vmul.f32 %v8219_v10, %v4309_v34  ;;  %v4354_v59 = vmul.f32 %v8222_v23, %v4310_v5 }
 0x9c7   : > { %4427 = vst [vmem:[%s8242_s0 + $0xc0] sm:$0xff] %v4395_v3  ;;  %4428 = vst [vmem:[%s8242_s0 + $0xc8] sm:$0xff] %v4396_v54  ;;  %v4397_v32 = vadd.f32 %v8225_v31, %v4353_v63  ;;  %v4398_v53 = vadd.f32 %v8228_v17, %v4354_v59 }
 0x9c8   : > { %v5761_v22 = vpop.eup %5760 }
 0x9c9   : > { %4429 = vst [vmem:[%s8242_s0 + $0xd0] sm:$0xff] %v4397_v32  ;;  %4430 = vst [vmem:[%s8242_s0 + $0xd8] sm:$0xff] %v4398_v53  ;;  %v4311_v35 = vmul.f32 %v5761_v22, %v8119_v60  ;;  %v4312_v1 = vmul.f32 %v5761_v22, %v8122_v14 }
 0x9ca   : > { %v5763_v20 = vpop.eup %5762 }
 0x9cb   : > { %v4355_v19 = vmul.f32 %v8219_v10, %v4311_v35  ;;  %v4356_v13 = vmul.f32 %v8222_v23, %v4312_v1  ;;  %v4313_v52 = vmul.f32 %v5763_v20, %v8129_v9  ;;  %v4314_v44 = vmul.f32 %v5763_v20, %v8132_v2 }
 0x9cd   : > { %v4399_v60 = vadd.f32 %v8225_v31, %v4355_v19  ;;  %v4400_v42 = vadd.f32 %v8228_v17, %v4356_v13  ;;  %v4357_v14 = vmul.f32 %v8219_v10, %v4313_v52  ;;  %v4358_v16 = vmul.f32 %v8222_v23, %v4314_v44 }
 0x9cf   : > { %4431 = vst [vmem:[%s8242_s0 + $0xe0] sm:$0xff] %v4399_v60  ;;  %4432 = vst [vmem:[%s8242_s0 + $0xe8] sm:$0xff] %v4400_v42  ;;  %v4401_v9 = vadd.f32 %v8225_v31, %v4357_v14  ;;  %v4402_v2 = vadd.f32 %v8228_v17, %v4358_v16 }
 0x9d1   : > { %4433 = vst [vmem:[%s8242_s0 + $0xf0] sm:$0xff] %v4401_v9  ;;  %4434 = vst [vmem:[%s8242_s0 + $0xf8] sm:$0xff] %v4402_v2 }
 0x9d2   : > { %6007 = shalt.err (!%p6004_p4)
}
 0x9d3   : > { %s6008_s27 = scalar_lea.hbm %s8361_s3, 4096  ;;  %s6012_s0 = scalar_lea.hbm %s8534_s8, 8192 }
 0x9d4   : > { %p6009_p8 = scmp.ne.s32.totalorder %s8361_s3, %s6008_s27  ;;  %p6013_p3 = scmp.lt.u32.totalorder %s8361_s3, %s8534_s8 }
 0x9d5   : > { %p6014_p7 = scmp.lt.u32.totalorder %s6012_s0, %s6008_s27  ;;  %p6016_p13 = scmp.lt.u32.totalorder %s6008_s27, %s8361_s3 }
 0x9d6   : > { %p6010_p10 = pnand %p6009_p8, %p6335_p6 }
 0x9d7   : > { %p6015_p9 = por %p6014_p7, %p6013_p3 }
 0x9d8   : > { %p6011_p12 = pneg %p6010_p10 }
 0x9d9   : > { %p6017_p0 = por %p6016_p13, %p6015_p9 }
 0x9db   : > { %p6018_p5 = pnand %p6017_p0, %p6011_p12 }
 0x9dd   : > { %6021 = shalt.err (!%p6018_p5)
}
 0x9de   : > { %s6090_s2 = smov 256   ;;  %s6091_s21 = smov 16  }
 0x9df   : > { %5195 = dma.vmem_to_hbm [thread:$0]  (%p6335_p6), %s8363_s15, 4096, %s8361_s3, %s4436_s26, %s6090_s2, %s6090_s2, %s6091_s21  }
 0x9e0 PF: > { %s8535_s1 = sld [smem:[#allocation20_spill]]  ;;  %s8536_s16 = sld [smem:[#allocation21_spill]] }
 0x9e1   : > { %p8538_p1 = scmp.ge.s32.totalorder %s6072_s25, 2 }
 0x9e6   : > { %s4506_s22 = sand.u32 1, %s8535_s1   ;;  %p8537_p11 = scmp.ne.s32.totalorder %s8536_s16, 0 }
 0x9e7   : > { %s4507_s27 = scalar_lea.sflag [#allocation4], %s4506_s22 }
 0x9e8   : > { %p5219_p2 = pnand %p8538_p1, %p8537_p11 }
 0x9ea   : > { %6051 = dma.done.wait (!%p5219_p2), %s4507_s27, 4096  }
 0x9eb   : > { %6053 = vsyncadd (!%p5219_p2), %s4507_s27, 4294963200  ;;  %s8539_s28 = sadd.s32 4294967294, %s6072_s25  }
 0x9ec   : > { %s4515_s11 = sand.u32 1, %s8539_s28  }
 0x9ed   : > { %s4516_s0 = scalar_lea.sflag [#allocation13], %s4515_s11 }
 0x9ee   : > { %6055 = dma.done.wait (!%p5219_p2), %s4516_s0, 4096  }
 0x9ef   : > { %6057 = vsyncadd (!%p5219_p2), %s4516_s0, 4294963200  ;;  %p36_p6 = scmp.ge.s32.totalorder %s6325_s30, 4   ;;  %s8540_s13 = smov %s6064_s14 }
 0x9f0   : > { %s8541_s14 = smov %s6068_s24  ;;  %s8542_s24 = smov %s6341_s17 }
 0x9f1   : > { %s8543_s25 = smov %s6325_s30  ;;  %38 = sbr.rel (!%p36_p6) target bundleno = 21 (0x15), region = 173 }
 0x9f8   :  { %4530 = vsyncpa [#allocation3], 1 }
 0x9f9   :  { %4532 = vsyncpa [#allocation3 + $0x1], 1 }
 0x9fa   :  { %4533 = vsyncpa [#allocation6], 1 }
 0x9fb   :  { %4534 = vsyncpa [#allocation9], 1 }
 0x9fc   :  { %4535 = vsyncpa [#allocation4], 1 }
 0x9fd   :  { %4537 = vsyncpa [#allocation4 + $0x1], 1 }
 0x9fe   :  { %4538 = vsyncpa [#allocation13], 1 }
 0x9ff   :  { %4540 = vsyncpa [#allocation13 + $0x1], 1 }

</bundles_post_ra>
